<compile_context>
chip_gen: v7x
topology: tpu7x:2x2x1
jax: 0.10.0
libtpu: 0.0.40
codegen_flags: <defaults>
</compile_context>

<pallas_src>
import jax
import jax.numpy as jnp
from jax.experimental import pallas as pl
from jax.experimental.pallas import tpu as pltpu

# raw (module-style) parameters
PARAM_ORDER = (
    "emb_w", "emb_b",
    "msg1_w", "msg1_b", "msg2_w", "msg2_b",
    "ge_iw", "ge_ib", "ge_hw",
    "gn_iw", "gn_ib", "gn_hw",
    "o1_w", "o1_b", "o2_w", "o2_b", "o3_w", "o3_b",
    "q_w", "q_b", "k_w", "k_b", "v_w", "v_b", "ao_w", "ao_b",
)

# fused (kernel-side) parameters
FUSED_ORDER = (
    "emb_cat_w", "emb_cat_b",
    "msg1s_w", "msg1r_w", "msg1_b", "msg2_w", "msg2_b", "msg_sum",
    "ge_iw", "ge_ib", "ge_hw",
    "gn_iw", "gn_ib", "gn_hw",
    "o1_w", "o1_b", "o2_w", "o2_b", "o3_w", "o3_b",
    "q_w", "q_b", "k_w", "k_b", "v_w", "v_b", "ao_w", "ao_b",
)


def _make_fused_kernel(Bc, N, E, n_in, pred_steps):
    BcN = Bc * N
    BcE = Bc * E
    n_params = len(FUSED_ORDER)

    def kernel(*refs):
        ins_ref, rs_ref, rr_ref, rrt_ref, relt_ref = refs[:5]
        p = dict(zip(FUSED_ORDER, refs[5:5 + n_params]))
        pred_ref = refs[5 + n_params]
        hn_ref, he_ref, kh_ref, vh_ref, pp_ref = refs[5 + n_params + 1:]

        t = pl.program_id(1)

        # ------------------------ helpers ---------------------------------
        def mm(a, w):
            # MXU matmul: both operands in the weight's (compute) dtype, f32 accumulate.
            return jnp.dot(a.astype(w.dtype), w, preferred_element_type=jnp.float32)

        def lin(a, wname, bname):
            return mm(a, p[wname][...]) + p[bname][...]

        def relmm(rel_ref, x2d, rows_out):
            # (rel @ x) per batch element of the chunk.  rel_ref: [Bc, rows_out, rows_in].
            d = x2d.shape[-1]
            if Bc == 1:
                rel = rel_ref[0]
                return jnp.dot(rel, x2d.astype(rel.dtype),
                               preferred_element_type=jnp.float32)
            x3 = x2d.reshape(Bc, -1, d).astype(rel_ref.dtype)
            y3 = jnp.einsum('brn,bnd->brd', rel_ref[...], x3,
                            preferred_element_type=jnp.float32)
            return y3.reshape(Bc * rows_out, d)

        def gru(x, h, iw_name, ib_name, hw_name):
            # myGRU (assumed NRI-style): input linears have a bias, hidden linears do not.
            iw, ib, hw = p[iw_name], p[ib_name], p[hw_name]
            r = jax.nn.sigmoid(mm(x, iw[0]) + ib[0] + mm(h, hw[0]))
            z = jax.nn.sigmoid(mm(x, iw[1]) + ib[1] + mm(h, hw[1]))
            g = jnp.tanh(mm(x, iw[2]) + ib[2] + r * mm(h, hw[2]))
            return (1.0 - z) * g + z * h

        def out_mlp(h):
            o = jax.nn.relu(lin(h, "o1_w", "o1_b"))
            o = jax.nn.relu(lin(o, "o2_w", "o2_b"))
            return lin(o, "o3_w", "o3_b")

        def attn_kv(h):
            k = jax.nn.relu(lin(h, "k_w", "k_b"))
            v = jax.nn.relu(lin(h, "v_w", "v_b"))
            return k.astype(kh_ref.dtype), v.astype(vh_ref.dtype)

        # ---- step input (teacher forcing vs. own previous prediction) ----
        x_in = ins_ref[t].reshape(BcN, n_in)
        if pred_steps == 1:
            x = x_in
        else:
            @pl.when(t == 0)
            def _init_pp():
                pp_ref[...] = x_in          # never consumed at t == 0, but initialised
            x = jnp.where((t % pred_steps) == 0, x_in, pp_ref[...])

        # ---- embedding ([emb(x)|x] folded into one matmul) + node2edge ----
        x_emb = lin(x, "emb_cat_w", "emb_cat_b")                   # [BcN, Dcat]
        send = relmm(rs_ref, x_emb, E)                             # [BcE, Dcat]
        recv = relmm(rr_ref, x_emb, E)                             # [BcE, Dcat]

        # ---- all (active) edge-type message MLPs fused along lanes -------
        # TODO(synk): dropout with do_prob=0 is the identity and omitted.
        m = jnp.tanh(mm(send, p["msg1s_w"][...]) + mm(recv, p["msg1r_w"][...])
                     + p["msg1_b"][...])                           # [BcE, nact*H]
        m = jnp.tanh(lin(m, "msg2_w", "msg2_b"))                   # [BcE, nact*H]
        if Bc == 1:
            relt = relt_ref[0]
        else:
            relt = relt_ref[...].reshape(BcE, relt_ref.shape[-1])
        all_msgs = mm(m * relt, p["msg_sum"][...])                 # [BcE, H]

        @pl.when(t == 0)
        def _first_step():
            msgs = all_msgs
            agg = relmm(rrt_ref, msgs, N)          # 1/n_in already folded into rrt
            cat = jnp.concatenate([x, agg], axis=-1)
            he_ref[...] = msgs
            hn_ref[...] = cat
            kh_ref[...] = jnp.zeros(kh_ref.shape, kh_ref.dtype)
            vh_ref[...] = jnp.zeros(vh_ref.shape, vh_ref.dtype)
            k0, v0 = attn_kv(cat)
            kh_ref[0] = k0
            vh_ref[0] = v0
            pred = x + out_mlp(cat)
            pred_ref[t] = pred.reshape(Bc, N, n_in)
            if pred_steps > 1:
                pp_ref[...] = pred

        @pl.when(t > 0)
        def _later_step():
            msgs = gru(all_msgs, he_ref[...], "ge_iw", "ge_ib", "ge_hw")
            agg = relmm(rrt_ref, msgs, N)
            cat0 = jnp.concatenate([x, agg], axis=-1)
            cat = gru(cat0, hn_ref[...], "gn_iw", "gn_ib", "gn_hw")
            he_ref[...] = msgs
            hn_ref[...] = cat

            # ---- temporal attention over the resident K/V history --------
            # The current entry is written into slot t before scoring, so no
            # per-step concatenation of the history is needed.
            q = jax.nn.relu(lin(cat, "q_w", "q_b"))    # 1/sqrt(A) pre-folded into q_w/q_b
            k_cur, v_cur = attn_kv(cat)
            kh_ref[t] = k_cur
            vh_ref[t] = v_cur
            k_hist = kh_ref[...].astype(jnp.float32)   # [Tm1, BcN, A]
            v_hist = vh_ref[...].astype(jnp.float32)
            scores = jnp.sum(q[None] * k_hist, axis=-1)            # [Tm1, BcN]
            slot = jax.lax.broadcasted_iota(jnp.int32, scores.shape, 0)
            scores = jnp.where(slot <= t, scores, -1e30)
            m_max = jnp.max(scores, axis=0, keepdims=True)
            e = jnp.exp(scores - m_max)
            w = e * pl.reciprocal(jnp.sum(e, axis=0, keepdims=True), approx=True)
            attn_value = jnp.sum(w[:, :, None] * v_hist, axis=0)   # [BcN, A]
            cur = jax.nn.relu(lin(attn_value, "ao_w", "ao_b"))     # [BcN, Dcat]

            # slot t permanently caches K/V of the stored history entry (cur_hidden)
            k_t, v_t = attn_kv(cur)
            kh_ref[t] = k_t
            vh_ref[t] = v_t

            pred = x + out_mlp(cur)
            pred_ref[t] = pred.reshape(Bc, N, n_in)
            if pred_steps > 1:
                pp_ref[...] = pred

    return kernel


def _fuse_params(params, n_in, n_hid, attn_hid, edge_types, skip_first, compute_dtype):
    Dcat = n_in + n_hid
    ET, H = edge_types, n_hid
    start = 1 if skip_first else 0
    nact = ET - start
    if nact < 1:
        raise ValueError("skip_first=True requires edge_types >= 2")
    norm = float(nact)
    f32 = jnp.float32
    inv_sqrt_a = 1.0 / float(attn_hid) ** 0.5

    def lanes(w):   # [nact, Din, Dout] -> [Din, nact*Dout] (edge-type major lanes)
        return jnp.transpose(w, (1, 0, 2)).reshape(w.shape[1], -1)

    m1 = params["msg1_w"][start:]           # [nact, 2*Dcat, H]
    m2 = params["msg2_w"][start:]           # [nact, H, H]

    fused = {
        # [emb(x) | x] folded into one matmul
        "emb_cat_w": jnp.concatenate(
            [params["emb_w"], jnp.eye(n_in, dtype=f32)], axis=1),
        "emb_cat_b": jnp.concatenate(
            [params["emb_b"], jnp.zeros((1, n_in), f32)], axis=1),
        # pre_msg = [senders | receivers] concat replaced by two half-matmuls
        "msg1s_w": lanes(m1[:, :Dcat, :]),
        "msg1r_w": lanes(m1[:, Dcat:, :]),
        "msg1_b": params["msg1_b"][start:].reshape(1, nact * H),
        "msg2_w": jax.scipy.linalg.block_diag(*[m2[e] for e in range(nact)]),
        "msg2_b": params["msg2_b"][start:].reshape(1, nact * H),
        "msg_sum": jnp.concatenate(
            [jnp.eye(H, dtype=f32) / norm for _ in range(nact)], axis=0),
        "ge_iw": params["ge_iw"], "ge_ib": params["ge_ib"], "ge_hw": params["ge_hw"],
        "gn_iw": params["gn_iw"], "gn_ib": params["gn_ib"], "gn_hw": params["gn_hw"],
        "o1_w": params["o1_w"], "o1_b": params["o1_b"],
        "o2_w": params["o2_w"], "o2_b": params["o2_b"],
        "o3_w": params["o3_w"], "o3_b": params["o3_b"],
        # 1/sqrt(attn_hid) folded into q (relu(c*x) == c*relu(x) for c > 0)
        "q_w": params["q_w"] * inv_sqrt_a, "q_b": params["q_b"] * inv_sqrt_a,
        "k_w": params["k_w"], "k_b": params["k_b"],
        "v_w": params["v_w"], "v_b": params["v_b"],
        "ao_w": params["ao_w"], "ao_b": params["ao_b"],
    }
    out = {}
    for name, val in fused.items():
        is_bias = name.endswith("_b") or name.endswith("_ib")
        out[name] = val.astype(f32 if is_bias else compute_dtype)
    return out


def attn_spatiotemporal_decoder_forward(data, rel_type, rel_rec, rel_send, params,
                                        n_hid, attn_hid, edge_types,
                                        pred_steps=1, skip_first=False,
                                        num_batch_chunks=1,
                                        compute_dtype=jnp.bfloat16):
    B, N, T, n_in = data.shape
    E = rel_rec.shape[0]
    Dcat = n_in + n_hid
    Tm1 = T - 1
    A = attn_hid
    H = n_hid
    start = 1 if skip_first else 0
    nact = edge_types - start
    f32 = jnp.float32
    cdt = compute_dtype

    if B % num_batch_chunks != 0:
        raise ValueError("num_batch_chunks must divide the batch size")
    Bc = B // num_batch_chunks
    BcN, BcE = Bc * N, Bc * E

    # [B, N, T, F] -> [T-1, B, N, F]
    ins_seq = jnp.transpose(data.astype(f32), (2, 0, 1, 3))[:Tm1]

    # Relation matrices: shared over batch, broadcast so a chunk can be blocked out per
    # grid step.  Memory/FLOPs are linear in B (no B^2 block-diagonal kron matrices).
    rel_rec = rel_rec.astype(f32)
    rel_send = rel_send.astype(f32)
    rs_b = jnp.broadcast_to(rel_send, (B, E, N)).astype(cdt)
    rr_b = jnp.broadcast_to(rel_rec, (B, E, N)).astype(cdt)
    rrt_b = jnp.broadcast_to(rel_rec.T / float(n_in), (B, N, E)).astype(cdt)
    relt = jnp.repeat(rel_type.astype(f32)[:, :, start:], H, axis=-1)   # [B, E, nact*H]

    fused = _fuse_params(params, n_in, n_hid, attn_hid, edge_types, skip_first, cdt)
    param_inputs = [fused[k] for k in FUSED_ORDER]

    kernel = _make_fused_kernel(Bc, N, E, n_in, pred_steps)

    out_spec = pl.BlockSpec((Tm1, Bc, N, n_in), lambda c, t: (0, c, 0, 0))
    scratch_shapes = [
        pltpu.VMEM((BcN, Dcat), f32),       # hidden_node
        pltpu.VMEM((BcE, H), f32),          # hidden_edge
        pltpu.VMEM((Tm1, BcN, A), cdt),     # cached attention keys
        pltpu.VMEM((Tm1, BcN, A), cdt),     # cached attention values
        pltpu.VMEM((BcN, n_in), f32),       # previous prediction (pred_steps > 1)
    ]

    # ---- computed VMEM budget, capped by the device's physical VMEM ----
    csize = jnp.dtype(cdt).itemsize
    block_bytes = 0
    block_bytes += 2 * (Tm1 * Bc * N * n_in * 4)          # resident input (2 buffers)
    block_bytes += 2 * 2 * (Bc * E * N * csize)           # rel_send / rel_rec blocks
    block_bytes += 2 * (Bc * N * E * csize)               # rel_rec^T block
    block_bytes += 2 * (Bc * E * nact * H * 4)            # rel_type mask block
    block_bytes += 2 * (Tm1 * Bc * N * n_in * 4)          # resident output
    block_bytes += sum(int(x.size) * x.dtype.itemsize for x in param_inputs)
    scratch_bytes = ((BcN * Dcat + BcE * H + BcN * n_in) * 4
                     + 2 * Tm1 * BcN * A * csize)
    needed = block_bytes + scratch_bytes
    try:
        phys_vmem = int(pltpu.get_tpu_info().vmem_capacity_bytes)
    except Exception:
        phys_vmem = 64 * 1024 * 1024
    vmem_limit = int(min(max(2 * needed + (8 << 20), 32 << 20), int(0.85 * phys_vmem)))

    def build_in_specs(single_buffer_weights):
        specs = [
            pl.BlockSpec((Tm1, Bc, N, n_in), lambda c, t: (0, c, 0, 0)),
            pl.BlockSpec((Bc, E, N), lambda c, t: (c, 0, 0)),
            pl.BlockSpec((Bc, E, N), lambda c, t: (c, 0, 0)),
            pl.BlockSpec((Bc, N, E), lambda c, t: (c, 0, 0)),
            pl.BlockSpec((Bc, E, nact * H), lambda c, t: (c, 0, 0)),
        ]
        for x in param_inputs:
            imap = (lambda c, t, _nd=x.ndim: (0,) * _nd)
            if single_buffer_weights:
                specs.append(pl.BlockSpec(x.shape, imap,
                                          pipeline_mode=pl.Buffered(1)))
            else:
                specs.append(pl.BlockSpec(x.shape, imap))
        return specs

    def run(single_buffer_weights):
        return pl.pallas_call(
            kernel,
            out_shape=jax.ShapeDtypeStruct((Tm1, B, N, n_in), f32),
            grid_spec=pltpu.PrefetchScalarGridSpec(
                num_scalar_prefetch=0,
                grid=(num_batch_chunks, Tm1),
                in_specs=build_in_specs(single_buffer_weights),
                out_specs=out_spec,
                scratch_shapes=scratch_shapes),
            compiler_params=pltpu.CompilerParams(
                dimension_semantics=("parallel", "arbitrary"),
                vmem_limit_bytes=vmem_limit),
        )(ins_seq, rs_b, rr_b, rrt_b, relt, *param_inputs)

    try:
        preds = run(True)
    except Exception:
        # Single-buffering of the grid-invariant weight blocks is a pure VMEM-footprint
        # optimization; fall back to default double-buffering if rejected.
        preds = run(False)

    return jnp.transpose(preds, (1, 2, 0, 3))          # [B, N, T-1, F]


def init_params(key, n_in, n_hid, attn_hid, edge_types):
    Dcat = n_in + n_hid
    shapes = {
        "emb_w": (n_in, n_hid), "emb_b": (1, n_hid),
        "msg1_w": (edge_types, 2 * Dcat, n_hid), "msg1_b": (edge_types, 1, n_hid),
        "msg2_w": (edge_types, n_hid, n_hid), "msg2_b": (edge_types, 1, n_hid),
        "ge_iw": (3, n_hid, n_hid), "ge_ib": (3, 1, n_hid), "ge_hw": (3, n_hid, n_hid),
        "gn_iw": (3, Dcat, Dcat), "gn_ib": (3, 1, Dcat), "gn_hw": (3, Dcat, Dcat),
        "o1_w": (Dcat, n_hid), "o1_b": (1, n_hid),
        "o2_w": (n_hid, n_hid), "o2_b": (1, n_hid),
        "o3_w": (n_hid, n_in), "o3_b": (1, n_in),
        "q_w": (Dcat, attn_hid), "q_b": (1, attn_hid),
        "k_w": (Dcat, attn_hid), "k_b": (1, attn_hid),
        "v_w": (Dcat, attn_hid), "v_b": (1, attn_hid),
        "ao_w": (attn_hid, Dcat), "ao_b": (1, Dcat),
    }
    keys = jax.random.split(key, len(PARAM_ORDER))
    return {name: 0.1 * jax.random.normal(k, shapes[name], jnp.float32)
            for name, k in zip(PARAM_ORDER, keys)}


def _reference_forward(data, rel_type, rel_rec, rel_send, params,
                       n_hid, attn_hid, edge_types, pred_steps=1, skip_first=False):
    """Pure-JAX reference (unfused weights, f32), mirrors the PyTorch forward."""
    inputs = jnp.transpose(data.astype(jnp.float32), (0, 2, 1, 3))   # [B, T, N, F]
    B, T, N, n_in = inputs.shape
    start_idx = 1 if skip_first else 0
    norm = float(edge_types - 1) if skip_first else float(edge_types)
    p = params

    def lin(x, w, b):
        return x @ w + b

    def gru(x, h, iw, ib, hw):
        r = jax.nn.sigmoid(lin(x, iw[0], ib[0]) + h @ hw[0])
        z = jax.nn.sigmoid(lin(x, iw[1], ib[1]) + h @ hw[1])
        n = jnp.tanh(lin(x, iw[2], ib[2]) + r * (h @ hw[2]))
        return (1.0 - z) * n + z * h

    hidden_node = hidden_edge = None
    hist, preds = [], []
    for step in range(T - 1):
        x = inputs[:, step] if step % pred_steps == 0 else preds[step - 1]
        x_emb = jnp.concatenate([lin(x, p["emb_w"], p["emb_b"]), x], axis=-1)
        recv = jnp.einsum('en,bnd->bed', rel_rec, x_emb)
        send = jnp.einsum('en,bnd->bed', rel_send, x_emb)
        pre_msg = jnp.concatenate([send, recv], axis=-1)
        all_msgs = jnp.zeros((B, rel_rec.shape[0], n_hid), jnp.float32)
        for et in range(start_idx, edge_types):
            m = jnp.tanh(lin(pre_msg, p["msg1_w"][et], p["msg1_b"][et]))
            m = jnp.tanh(lin(m, p["msg2_w"][et], p["msg2_b"][et]))
            all_msgs = all_msgs + m * rel_type[:, :, et:et + 1] / norm
        msgs = all_msgs if hidden_edge is None else gru(
            all_msgs, hidden_edge, p["ge_iw"], p["ge_ib"], p["ge_hw"])
        agg = jnp.einsum('en,beh->bnh', rel_rec, msgs) / float(n_in)
        cat0 = jnp.concatenate([x, agg], axis=-1)
        if hidden_node is None:
            cat = cat0
            h_pred = cat
            hist = [cat]
        else:
            cat = gru(cat0, hidden_node, p["gn_iw"], p["gn_ib"], p["gn_hw"])
            query = jax.nn.relu(lin(cat, p["q_w"], p["q_b"]))
            stack = jnp.stack(hist + [cat], axis=0)
            keys = jax.nn.relu(lin(stack, p["k_w"], p["k_b"]))
            vals = jax.nn.relu(lin(stack, p["v_w"], p["v_b"]))
            scores = jnp.sum(query[None] * keys, axis=-1) / (attn_hid ** 0.5)
            w = jax.nn.softmax(scores, axis=0)
            attn_value = jnp.sum(w[..., None] * vals, axis=0)
            cur_hidden = jax.nn.relu(lin(attn_value, p["ao_w"], p["ao_b"]))
            h_pred = cur_hidden
            hist.append(cur_hidden)
        out = jax.nn.relu(lin(h_pred, p["o1_w"], p["o1_b"]))
        out = jax.nn.relu(lin(out, p["o2_w"], p["o2_b"]))
        out = lin(out, p["o3_w"], p["o3_b"])
        preds.append(x + out)
        hidden_node, hidden_edge = cat, msgs
    out = jnp.stack(preds, axis=1)
    return jnp.transpose(out, (0, 2, 1, 3))


if __name__ == "__main__":
    B, N, T = 2, 4, 6
    n_in, n_hid, attn_hid, edge_types = 4, 16, 8, 2
    E = N * (N - 1)

    key = jax.random.PRNGKey(0)
    k_data, k_rel, k_par = jax.random.split(key, 3)

    data = jax.random.normal(k_data, (B, N, T, n_in), jnp.float32)

    # fully-connected directed graph without self loops
    recv_idx, send_idx = [], []
    for r in range(N):
        for s in range(N):
            if r != s:
                recv_idx.append(r)
                send_idx.append(s)
    rel_rec = jax.nn.one_hot(jnp.array(recv_idx), N, dtype=jnp.float32)    # [E, N]
    rel_send = jax.nn.one_hot(jnp.array(send_idx), N, dtype=jnp.float32)   # [E, N]
    rel_type = jax.nn.softmax(jax.random.normal(k_rel, (B, E, edge_types)), axis=-1)

    params = init_params(k_par, n_in, n_hid, attn_hid, edge_types)

    ref = _reference_forward(
        data, rel_type, rel_rec, rel_send, params,
        n_hid=n_hid, attn_hid=attn_hid, edge_types=edge_types,
        pred_steps=1, skip_first=False)

    # f32 compute path: strict semantic check (2 batch chunks = one per TC on v7x).
    out_f32 = attn_spatiotemporal_decoder_forward(
        data, rel_type, rel_rec, rel_send, params,
        n_hid=n_hid, attn_hid=attn_hid, edge_types=edge_types,
        pred_steps=1, skip_first=False, num_batch_chunks=2,
        compute_dtype=jnp.float32)
    out_f32 = jax.block_until_ready(out_f32)
    assert out_f32.shape == (B, N, T - 1, n_in), out_f32.shape
    assert bool(jnp.all(jnp.isfinite(out_f32)))
    err32 = float(jnp.max(jnp.abs(out_f32 - ref)))
    assert err32 < 1e-2, f"f32 max abs error vs reference: {err32}"

    # bf16 compute path (MXU-friendly weights / rel matrices / K-V cache): looser check.
    out_bf16 = attn_spatiotemporal_decoder_forward(
        data, rel_type, rel_rec, rel_send, params,
        n_hid=n_hid, attn_hid=attn_hid, edge_types=edge_types,
        pred_steps=1, skip_first=False, num_batch_chunks=2,
        compute_dtype=jnp.bfloat16)
    out_bf16 = jax.block_until_ready(out_bf16)
    assert out_bf16.shape == (B, N, T - 1, n_in), out_bf16.shape
    assert bool(jnp.all(jnp.isfinite(out_bf16)))
    err16 = float(jnp.max(jnp.abs(out_bf16 - ref)))
    assert err16 < 1e-1, f"bf16 max abs error vs reference: {err16}"

    print("KERNEL_OK")
</pallas_src>

<mosaic_0001>
module attributes {stable_mosaic.version = 11 : i64} {
  func.func @kernel(%arg0: i32, %arg1: i32, %arg2: memref<5x1x4x4xf32, #tpu.memory_space<vmem>>, %arg3: memref<1x12x4xf32, #tpu.memory_space<vmem>>, %arg4: memref<1x12x4xf32, #tpu.memory_space<vmem>>, %arg5: memref<1x4x12xf32, #tpu.memory_space<vmem>>, %arg6: memref<1x12x32xf32, #tpu.memory_space<vmem>>, %arg7: memref<4x20xf32, #tpu.memory_space<vmem>>, %arg8: memref<1x20xf32, #tpu.memory_space<vmem>>, %arg9: memref<20x32xf32, #tpu.memory_space<vmem>>, %arg10: memref<20x32xf32, #tpu.memory_space<vmem>>, %arg11: memref<1x32xf32, #tpu.memory_space<vmem>>, %arg12: memref<32x32xf32, #tpu.memory_space<vmem>>, %arg13: memref<1x32xf32, #tpu.memory_space<vmem>>, %arg14: memref<32x16xf32, #tpu.memory_space<vmem>>, %arg15: memref<3x16x16xf32, #tpu.memory_space<vmem>>, %arg16: memref<3x1x16xf32, #tpu.memory_space<vmem>>, %arg17: memref<3x16x16xf32, #tpu.memory_space<vmem>>, %arg18: memref<3x20x20xf32, #tpu.memory_space<vmem>>, %arg19: memref<3x1x20xf32, #tpu.memory_space<vmem>>, %arg20: memref<3x20x20xf32, #tpu.memory_space<vmem>>, %arg21: memref<20x16xf32, #tpu.memory_space<vmem>>, %arg22: memref<1x16xf32, #tpu.memory_space<vmem>>, %arg23: memref<16x16xf32, #tpu.memory_space<vmem>>, %arg24: memref<1x16xf32, #tpu.memory_space<vmem>>, %arg25: memref<16x4xf32, #tpu.memory_space<vmem>>, %arg26: memref<1x4xf32, #tpu.memory_space<vmem>>, %arg27: memref<20x8xf32, #tpu.memory_space<vmem>>, %arg28: memref<1x8xf32, #tpu.memory_space<vmem>>, %arg29: memref<20x8xf32, #tpu.memory_space<vmem>>, %arg30: memref<1x8xf32, #tpu.memory_space<vmem>>, %arg31: memref<20x8xf32, #tpu.memory_space<vmem>>, %arg32: memref<1x8xf32, #tpu.memory_space<vmem>>, %arg33: memref<8x20xf32, #tpu.memory_space<vmem>>, %arg34: memref<1x20xf32, #tpu.memory_space<vmem>>, %arg35: memref<5x1x4x4xf32, #tpu.memory_space<vmem>>, %arg36: memref<4x20xf32, #tpu.memory_space<vmem>>, %arg37: memref<12x16xf32, #tpu.memory_space<vmem>>, %arg38: memref<5x4x8xf32, #tpu.memory_space<vmem>>, %arg39: memref<5x4x8xf32, #tpu.memory_space<vmem>>, %arg40: memref<4x4xf32, #tpu.memory_space<vmem>>) attributes {dimension_semantics = [#tpu.dimension_semantics<parallel>, #tpu.dimension_semantics<arbitrary>], iteration_bounds = array<i64: 2, 5>, scalar_prefetch = 0 : i64, scratch_operands = 5 : i64, tpu.core_type = #tpu.core_type<tc>, window_params = [{transform_indices = @transform_0, window_bounds = array<i64: 5, 1, 4, 4>}, {transform_indices = @transform_1, window_bounds = array<i64: 1, 12, 4>}, {transform_indices = @transform_2, window_bounds = array<i64: 1, 12, 4>}, {transform_indices = @transform_3, window_bounds = array<i64: 1, 4, 12>}, {transform_indices = @transform_4, window_bounds = array<i64: 1, 12, 32>}, {pipeline_mode = #tpu.pipeline_mode<synchronous>, transform_indices = @transform_5, window_bounds = array<i64: 4, 20>}, {pipeline_mode = #tpu.pipeline_mode<synchronous>, transform_indices = @transform_6, window_bounds = array<i64: 1, 20>}, {pipeline_mode = #tpu.pipeline_mode<synchronous>, transform_indices = @transform_7, window_bounds = array<i64: 20, 32>}, {pipeline_mode = #tpu.pipeline_mode<synchronous>, transform_indices = @transform_8, window_bounds = array<i64: 20, 32>}, {pipeline_mode = #tpu.pipeline_mode<synchronous>, transform_indices = @transform_9, window_bounds = array<i64: 1, 32>}, {pipeline_mode = #tpu.pipeline_mode<synchronous>, transform_indices = @transform_10, window_bounds = array<i64: 32, 32>}, {pipeline_mode = #tpu.pipeline_mode<synchronous>, transform_indices = @transform_11, window_bounds = array<i64: 1, 32>}, {pipeline_mode = #tpu.pipeline_mode<synchronous>, transform_indices = @transform_12, window_bounds = array<i64: 32, 16>}, {pipeline_mode = #tpu.pipeline_mode<synchronous>, transform_indices = @transform_13, window_bounds = array<i64: 3, 16, 16>}, {pipeline_mode = #tpu.pipeline_mode<synchronous>, transform_indices = @transform_14, window_bounds = array<i64: 3, 1, 16>}, {pipeline_mode = #tpu.pipeline_mode<synchronous>, transform_indices = @transform_15, window_bounds = array<i64: 3, 16, 16>}, {pipeline_mode = #tpu.pipeline_mode<synchronous>, transform_indices = @transform_16, window_bounds = array<i64: 3, 20, 20>}, {pipeline_mode = #tpu.pipeline_mode<synchronous>, transform_indices = @transform_17, window_bounds = array<i64: 3, 1, 20>}, {pipeline_mode = #tpu.pipeline_mode<synchronous>, transform_indices = @transform_18, window_bounds = array<i64: 3, 20, 20>}, {pipeline_mode = #tpu.pipeline_mode<synchronous>, transform_indices = @transform_19, window_bounds = array<i64: 20, 16>}, {pipeline_mode = #tpu.pipeline_mode<synchronous>, transform_indices = @transform_20, window_bounds = array<i64: 1, 16>}, {pipeline_mode = #tpu.pipeline_mode<synchronous>, transform_indices = @transform_21, window_bounds = array<i64: 16, 16>}, {pipeline_mode = #tpu.pipeline_mode<synchronous>, transform_indices = @transform_22, window_bounds = array<i64: 1, 16>}, {pipeline_mode = #tpu.pipeline_mode<synchronous>, transform_indices = @transform_23, window_bounds = array<i64: 16, 4>}, {pipeline_mode = #tpu.pipeline_mode<synchronous>, transform_indices = @transform_24, window_bounds = array<i64: 1, 4>}, {pipeline_mode = #tpu.pipeline_mode<synchronous>, transform_indices = @transform_25, window_bounds = array<i64: 20, 8>}, {pipeline_mode = #tpu.pipeline_mode<synchronous>, transform_indices = @transform_26, window_bounds = array<i64: 1, 8>}, {pipeline_mode = #tpu.pipeline_mode<synchronous>, transform_indices = @transform_27, window_bounds = array<i64: 20, 8>}, {pipeline_mode = #tpu.pipeline_mode<synchronous>, transform_indices = @transform_28, window_bounds = array<i64: 1, 8>}, {pipeline_mode = #tpu.pipeline_mode<synchronous>, transform_indices = @transform_29, window_bounds = array<i64: 20, 8>}, {pipeline_mode = #tpu.pipeline_mode<synchronous>, transform_indices = @transform_30, window_bounds = array<i64: 1, 8>}, {pipeline_mode = #tpu.pipeline_mode<synchronous>, transform_indices = @transform_31, window_bounds = array<i64: 8, 20>}, {pipeline_mode = #tpu.pipeline_mode<synchronous>, transform_indices = @transform_32, window_bounds = array<i64: 1, 20>}, {transform_indices = @transform_33, window_bounds = array<i64: 5, 1, 4, 4>}]} {
    %0 = arith.index_cast %arg1 : i32 to index
    %c0 = arith.constant 0 : index
    %c0_0 = arith.constant 0 : index
    %c0_1 = arith.constant 0 : index
    %1 = vector.load %arg2[%0, %c0, %c0_0, %c0_1] : memref<5x1x4x4xf32, #tpu.memory_space<vmem>>, vector<1x1x4x4xf32>
    %2 = vector.shape_cast %1 : vector<1x1x4x4xf32> to vector<1x4x4xf32>
    %3 = vector.shape_cast %2 : vector<1x4x4xf32> to vector<4x4xf32>
    %c0_2 = arith.constant 0 : index
    %c0_3 = arith.constant 0 : index
    %4 = vector.load %arg7[%c0_2, %c0_3] : memref<4x20xf32, #tpu.memory_space<vmem>>, vector<4x20xf32>
    %cst = arith.constant dense<0.000000e+00> : vector<4x20xf32>
    %5 = tpu.matmul %3, %4, %cst {dimension_numbers = #tpu.dot_dimension_numbers<[1], [0], [0], [1], [0, 0, 1, 1], [], []>} : vector<4x4xf32>, vector<4x20xf32>, vector<4x20xf32> -> vector<4x20xf32>
    %c0_4 = arith.constant 0 : index
    %c0_5 = arith.constant 0 : index
    %6 = vector.load %arg8[%c0_4, %c0_5] : memref<1x20xf32, #tpu.memory_space<vmem>>, vector<1x20xf32>
    %7 = vector.broadcast %6 : vector<1x20xf32> to vector<4x20xf32>
    %8 = arith.addf %5, %7 : vector<4x20xf32>
    %c0_6 = arith.constant 0 : index
    %c0_7 = arith.constant 0 : index
    %c0_8 = arith.constant 0 : index
    %9 = vector.load %arg3[%c0_6, %c0_7, %c0_8] : memref<1x12x4xf32, #tpu.memory_space<vmem>>, vector<1x12x4xf32>
    %10 = vector.shape_cast %9 : vector<1x12x4xf32> to vector<12x4xf32>
    %cst_9 = arith.constant dense<0.000000e+00> : vector<12x20xf32>
    %11 = tpu.matmul %10, %8, %cst_9 {dimension_numbers = #tpu.dot_dimension_numbers<[1], [0], [0], [1], [0, 0, 1, 1], [], []>} : vector<12x4xf32>, vector<4x20xf32>, vector<12x20xf32> -> vector<12x20xf32>
    %c0_10 = arith.constant 0 : index
    %c0_11 = arith.constant 0 : index
    %c0_12 = arith.constant 0 : index
    %12 = vector.load %arg4[%c0_10, %c0_11, %c0_12] : memref<1x12x4xf32, #tpu.memory_space<vmem>>, vector<1x12x4xf32>
    %13 = vector.shape_cast %12 : vector<1x12x4xf32> to vector<12x4xf32>
    %cst_13 = arith.constant dense<0.000000e+00> : vector<12x20xf32>
    %14 = tpu.matmul %13, %8, %cst_13 {dimension_numbers = #tpu.dot_dimension_numbers<[1], [0], [0], [1], [0, 0, 1, 1], [], []>} : vector<12x4xf32>, vector<4x20xf32>, vector<12x20xf32> -> vector<12x20xf32>
    %c0_14 = arith.constant 0 : index
    %c0_15 = arith.constant 0 : index
    %15 = vector.load %arg9[%c0_14, %c0_15] : memref<20x32xf32, #tpu.memory_space<vmem>>, vector<20x32xf32>
    %cst_16 = arith.constant dense<0.000000e+00> : vector<12x32xf32>
    %16 = tpu.matmul %11, %15, %cst_16 {dimension_numbers = #tpu.dot_dimension_numbers<[1], [0], [0], [1], [0, 0, 1, 1], [], []>} : vector<12x20xf32>, vector<20x32xf32>, vector<12x32xf32> -> vector<12x32xf32>
    %c0_17 = arith.constant 0 : index
    %c0_18 = arith.constant 0 : index
    %17 = vector.load %arg10[%c0_17, %c0_18] : memref<20x32xf32, #tpu.memory_space<vmem>>, vector<20x32xf32>
    %cst_19 = arith.constant dense<0.000000e+00> : vector<12x32xf32>
    %18 = tpu.matmul %14, %17, %cst_19 {dimension_numbers = #tpu.dot_dimension_numbers<[1], [0], [0], [1], [0, 0, 1, 1], [], []>} : vector<12x20xf32>, vector<20x32xf32>, vector<12x32xf32> -> vector<12x32xf32>
    %19 = arith.addf %16, %18 : vector<12x32xf32>
    %c0_20 = arith.constant 0 : index
    %c0_21 = arith.constant 0 : index
    %20 = vector.load %arg11[%c0_20, %c0_21] : memref<1x32xf32, #tpu.memory_space<vmem>>, vector<1x32xf32>
    %21 = vector.broadcast %20 : vector<1x32xf32> to vector<12x32xf32>
    %22 = arith.addf %19, %21 : vector<12x32xf32>
    %23 = math.tanh %22 : vector<12x32xf32>
    %c0_22 = arith.constant 0 : index
    %c0_23 = arith.constant 0 : index
    %24 = vector.load %arg12[%c0_22, %c0_23] : memref<32x32xf32, #tpu.memory_space<vmem>>, vector<32x32xf32>
    %cst_24 = arith.constant dense<0.000000e+00> : vector<12x32xf32>
    %25 = tpu.matmul %23, %24, %cst_24 {dimension_numbers = #tpu.dot_dimension_numbers<[1], [0], [0], [1], [0, 0, 1, 1], [], []>} : vector<12x32xf32>, vector<32x32xf32>, vector<12x32xf32> -> vector<12x32xf32>
    %c0_25 = arith.constant 0 : index
    %c0_26 = arith.constant 0 : index
    %26 = vector.load %arg13[%c0_25, %c0_26] : memref<1x32xf32, #tpu.memory_space<vmem>>, vector<1x32xf32>
    %27 = vector.broadcast %26 : vector<1x32xf32> to vector<12x32xf32>
    %28 = arith.addf %25, %27 : vector<12x32xf32>
    %29 = math.tanh %28 : vector<12x32xf32>
    %c0_27 = arith.constant 0 : index
    %c0_28 = arith.constant 0 : index
    %c0_29 = arith.constant 0 : index
    %30 = vector.load %arg6[%c0_27, %c0_28, %c0_29] : memref<1x12x32xf32, #tpu.memory_space<vmem>>, vector<1x12x32xf32>
    %31 = vector.shape_cast %30 : vector<1x12x32xf32> to vector<12x32xf32>
    %32 = arith.mulf %29, %31 : vector<12x32xf32>
    %c0_30 = arith.constant 0 : index
    %c0_31 = arith.constant 0 : index
    %33 = vector.load %arg14[%c0_30, %c0_31] : memref<32x16xf32, #tpu.memory_space<vmem>>, vector<32x16xf32>
    %cst_32 = arith.constant dense<0.000000e+00> : vector<12x16xf32>
    %34 = tpu.matmul %32, %33, %cst_32 {dimension_numbers = #tpu.dot_dimension_numbers<[1], [0], [0], [1], [0, 0, 1, 1], [], []>} : vector<12x32xf32>, vector<32x16xf32>, vector<12x16xf32> -> vector<12x16xf32>
    %c0_i32 = arith.constant 0 : i32
    %35 = arith.cmpi eq, %arg1, %c0_i32 : i32
    %36 = arith.extui %35 : i1 to i32
    %c0_i32_33 = arith.constant 0 : i32
    %37 = arith.cmpi ne, %36, %c0_i32_33 : i32
    scf.if %37 {
      %c0_36 = arith.constant 0 : index
      %c0_37 = arith.constant 0 : index
      %c0_38 = arith.constant 0 : index
      %41 = vector.load %arg5[%c0_36, %c0_37, %c0_38] : memref<1x4x12xf32, #tpu.memory_space<vmem>>, vector<1x4x12xf32>
      %42 = vector.shape_cast %41 : vector<1x4x12xf32> to vector<4x12xf32>
      %cst_39 = arith.constant dense<0.000000e+00> : vector<4x16xf32>
      %43 = tpu.matmul %42, %34, %cst_39 {dimension_numbers = #tpu.dot_dimension_numbers<[1], [0], [0], [1], [0, 0, 1, 1], [], []>} : vector<4x12xf32>, vector<12x16xf32>, vector<4x16xf32> -> vector<4x16xf32>
      %44 = tpu.concatenate %3, %43 in 1 : vector<4x4xf32>, vector<4x16xf32> -> vector<4x20xf32>
      %c0_40 = arith.constant 0 : index
      %c0_41 = arith.constant 0 : index
      %45 = vector.load %arg37[%c0_40, %c0_41] : memref<12x16xf32, #tpu.memory_space<vmem>>, vector<12x16xf32>
      tpu.vector_store %arg37[%c0_40, %c0_41], %34 {strides = array<i32>} : memref<12x16xf32, #tpu.memory_space<vmem>>, vector<12x16xf32>,
      %c0_42 = arith.constant 0 : index
      %c0_43 = arith.constant 0 : index
      %46 = vector.load %arg36[%c0_42, %c0_43] : memref<4x20xf32, #tpu.memory_space<vmem>>, vector<4x20xf32>
      tpu.vector_store %arg36[%c0_42, %c0_43], %44 {strides = array<i32>} : memref<4x20xf32, #tpu.memory_space<vmem>>, vector<4x20xf32>,
      %cst_44 = arith.constant 0.000000e+00 : f32
      %47 = vector.broadcast %cst_44 : f32 to vector<5x4x8xf32>
      %c0_45 = arith.constant 0 : index
      %c0_46 = arith.constant 0 : index
      %c0_47 = arith.constant 0 : index
      %48 = vector.load %arg38[%c0_45, %c0_46, %c0_47] : memref<5x4x8xf32, #tpu.memory_space<vmem>>, vector<5x4x8xf32>
      tpu.vector_store %arg38[%c0_45, %c0_46, %c0_47], %47 {strides = array<i32>} : memref<5x4x8xf32, #tpu.memory_space<vmem>>, vector<5x4x8xf32>,
      %cst_48 = arith.constant 0.000000e+00 : f32
      %49 = vector.broadcast %cst_48 : f32 to vector<5x4x8xf32>
      %c0_49 = arith.constant 0 : index
      %c0_50 = arith.constant 0 : index
      %c0_51 = arith.constant 0 : index
      %50 = vector.load %arg39[%c0_49, %c0_50, %c0_51] : memref<5x4x8xf32, #tpu.memory_space<vmem>>, vector<5x4x8xf32>
      tpu.vector_store %arg39[%c0_49, %c0_50, %c0_51], %49 {strides = array<i32>} : memref<5x4x8xf32, #tpu.memory_space<vmem>>, vector<5x4x8xf32>,
      %c0_52 = arith.constant 0 : index
      %c0_53 = arith.constant 0 : index
      %51 = vector.load %arg29[%c0_52, %c0_53] : memref<20x8xf32, #tpu.memory_space<vmem>>, vector<20x8xf32>
      %cst_54 = arith.constant dense<0.000000e+00> : vector<4x8xf32>
      %52 = tpu.matmul %44, %51, %cst_54 {dimension_numbers = #tpu.dot_dimension_numbers<[1], [0], [0], [1], [0, 0, 1, 1], [], []>} : vector<4x20xf32>, vector<20x8xf32>, vector<4x8xf32> -> vector<4x8xf32>
      %c0_55 = arith.constant 0 : index
      %c0_56 = arith.constant 0 : index
      %53 = vector.load %arg30[%c0_55, %c0_56] : memref<1x8xf32, #tpu.memory_space<vmem>>, vector<1x8xf32>
      %54 = vector.broadcast %53 : vector<1x8xf32> to vector<4x8xf32>
      %55 = arith.addf %52, %54 : vector<4x8xf32>
      %cst_57 = arith.constant 0.000000e+00 : f32
      %56 = vector.broadcast %cst_57 : f32 to vector<4x8xf32>
      %57 = arith.maximumf %55, %56 : vector<4x8xf32>
      %c0_58 = arith.constant 0 : index
      %c0_59 = arith.constant 0 : index
      %58 = vector.load %arg31[%c0_58, %c0_59] : memref<20x8xf32, #tpu.memory_space<vmem>>, vector<20x8xf32>
      %cst_60 = arith.constant dense<0.000000e+00> : vector<4x8xf32>
      %59 = tpu.matmul %44, %58, %cst_60 {dimension_numbers = #tpu.dot_dimension_numbers<[1], [0], [0], [1], [0, 0, 1, 1], [], []>} : vector<4x20xf32>, vector<20x8xf32>, vector<4x8xf32> -> vector<4x8xf32>
      %c0_61 = arith.constant 0 : index
      %c0_62 = arith.constant 0 : index
      %60 = vector.load %arg32[%c0_61, %c0_62] : memref<1x8xf32, #tpu.memory_space<vmem>>, vector<1x8xf32>
      %61 = vector.broadcast %60 : vector<1x8xf32> to vector<4x8xf32>
      %62 = arith.addf %59, %61 : vector<4x8xf32>
      %cst_63 = arith.constant 0.000000e+00 : f32
      %63 = vector.broadcast %cst_63 : f32 to vector<4x8xf32>
      %64 = arith.maximumf %62, %63 : vector<4x8xf32>
      %c0_64 = arith.constant 0 : index
      %c0_65 = arith.constant 0 : index
      %c0_66 = arith.constant 0 : index
      %65 = vector.load %arg38[%c0_64, %c0_65, %c0_66] : memref<5x4x8xf32, #tpu.memory_space<vmem>>, vector<1x4x8xf32>
      %66 = vector.shape_cast %65 : vector<1x4x8xf32> to vector<4x8xf32>
      %67 = vector.shape_cast %57 : vector<4x8xf32> to vector<1x4x8xf32>
      tpu.vector_store %arg38[%c0_64, %c0_65, %c0_66], %67 {strides = array<i32>} : memref<5x4x8xf32, #tpu.memory_space<vmem>>, vector<1x4x8xf32>,
      %c0_67 = arith.constant 0 : index
      %c0_68 = arith.constant 0 : index
      %c0_69 = arith.constant 0 : index
      %68 = vector.load %arg39[%c0_67, %c0_68, %c0_69] : memref<5x4x8xf32, #tpu.memory_space<vmem>>, vector<1x4x8xf32>
      %69 = vector.shape_cast %68 : vector<1x4x8xf32> to vector<4x8xf32>
      %70 = vector.shape_cast %64 : vector<4x8xf32> to vector<1x4x8xf32>
      tpu.vector_store %arg39[%c0_67, %c0_68, %c0_69], %70 {strides = array<i32>} : memref<5x4x8xf32, #tpu.memory_space<vmem>>, vector<1x4x8xf32>,
      %c0_70 = arith.constant 0 : index
      %c0_71 = arith.constant 0 : index
      %71 = vector.load %arg21[%c0_70, %c0_71] : memref<20x16xf32, #tpu.memory_space<vmem>>, vector<20x16xf32>
      %cst_72 = arith.constant dense<0.000000e+00> : vector<4x16xf32>
      %72 = tpu.matmul %44, %71, %cst_72 {dimension_numbers = #tpu.dot_dimension_numbers<[1], [0], [0], [1], [0, 0, 1, 1], [], []>} : vector<4x20xf32>, vector<20x16xf32>, vector<4x16xf32> -> vector<4x16xf32>
      %c0_73 = arith.constant 0 : index
      %c0_74 = arith.constant 0 : index
      %73 = vector.load %arg22[%c0_73, %c0_74] : memref<1x16xf32, #tpu.memory_space<vmem>>, vector<1x16xf32>
      %74 = vector.broadcast %73 : vector<1x16xf32> to vector<4x16xf32>
      %75 = arith.addf %72, %74 : vector<4x16xf32>
      %cst_75 = arith.constant 0.000000e+00 : f32
      %76 = vector.broadcast %cst_75 : f32 to vector<4x16xf32>
      %77 = arith.maximumf %75, %76 : vector<4x16xf32>
      %c0_76 = arith.constant 0 : index
      %c0_77 = arith.constant 0 : index
      %78 = vector.load %arg23[%c0_76, %c0_77] : memref<16x16xf32, #tpu.memory_space<vmem>>, vector<16x16xf32>
      %cst_78 = arith.constant dense<0.000000e+00> : vector<4x16xf32>
      %79 = tpu.matmul %77, %78, %cst_78 {dimension_numbers = #tpu.dot_dimension_numbers<[1], [0], [0], [1], [0, 0, 1, 1], [], []>} : vector<4x16xf32>, vector<16x16xf32>, vector<4x16xf32> -> vector<4x16xf32>
      %c0_79 = arith.constant 0 : index
      %c0_80 = arith.constant 0 : index
      %80 = vector.load %arg24[%c0_79, %c0_80] : memref<1x16xf32, #tpu.memory_space<vmem>>, vector<1x16xf32>
      %81 = vector.broadcast %80 : vector<1x16xf32> to vector<4x16xf32>
      %82 = arith.addf %79, %81 : vector<4x16xf32>
      %cst_81 = arith.constant 0.000000e+00 : f32
      %83 = vector.broadcast %cst_81 : f32 to vector<4x16xf32>
      %84 = arith.maximumf %82, %83 : vector<4x16xf32>
      %c0_82 = arith.constant 0 : index
      %c0_83 = arith.constant 0 : index
      %85 = vector.load %arg25[%c0_82, %c0_83] : memref<16x4xf32, #tpu.memory_space<vmem>>, vector<16x4xf32>
      %cst_84 = arith.constant dense<0.000000e+00> : vector<4x4xf32>
      %86 = tpu.matmul %84, %85, %cst_84 {dimension_numbers = #tpu.dot_dimension_numbers<[1], [0], [0], [1], [0, 0, 1, 1], [], []>} : vector<4x16xf32>, vector<16x4xf32>, vector<4x4xf32> -> vector<4x4xf32>
      %c0_85 = arith.constant 0 : index
      %c0_86 = arith.constant 0 : index
      %87 = vector.load %arg26[%c0_85, %c0_86] : memref<1x4xf32, #tpu.memory_space<vmem>>, vector<1x4xf32>
      %88 = vector.broadcast %87 : vector<1x4xf32> to vector<4x4xf32>
      %89 = arith.addf %86, %88 : vector<4x4xf32>
      %90 = arith.addf %3, %89 : vector<4x4xf32>
      %91 = vector.shape_cast %90 : vector<4x4xf32> to vector<1x4x4xf32>
      %92 = arith.index_cast %arg1 : i32 to index
      %c0_87 = arith.constant 0 : index
      %c0_88 = arith.constant 0 : index
      %c0_89 = arith.constant 0 : index
      %93 = vector.load %arg35[%92, %c0_87, %c0_88, %c0_89] : memref<5x1x4x4xf32, #tpu.memory_space<vmem>>, vector<1x1x4x4xf32>
      %94 = vector.shape_cast %93 : vector<1x1x4x4xf32> to vector<1x4x4xf32>
      %95 = vector.shape_cast %91 : vector<1x4x4xf32> to vector<1x1x4x4xf32>
      tpu.vector_store %arg35[%92, %c0_87, %c0_88, %c0_89], %95 {strides = array<i32>} : memref<5x1x4x4xf32, #tpu.memory_space<vmem>>, vector<1x1x4x4xf32>,
    } else {
    }
    %c0_i32_34 = arith.constant 0 : i32
    %38 = arith.cmpi sgt, %arg1, %c0_i32_34 : i32
    %39 = arith.extui %38 : i1 to i32
    %c0_i32_35 = arith.constant 0 : i32
    %40 = arith.cmpi ne, %39, %c0_i32_35 : i32
    scf.if %40 {
      %c0_36 = arith.constant 0 : index
      %c0_37 = arith.constant 0 : index
      %41 = vector.load %arg37[%c0_36, %c0_37] : memref<12x16xf32, #tpu.memory_space<vmem>>, vector<12x16xf32>
      %c0_38 = arith.constant 0 : index
      %c0_39 = arith.constant 0 : index
      %c0_40 = arith.constant 0 : index
      %42 = vector.load %arg15[%c0_38, %c0_39, %c0_40] : memref<3x16x16xf32, #tpu.memory_space<vmem>>, vector<1x16x16xf32>
      %43 = vector.shape_cast %42 : vector<1x16x16xf32> to vector<16x16xf32>
      %cst_41 = arith.constant dense<0.000000e+00> : vector<12x16xf32>
      %44 = tpu.matmul %34, %43, %cst_41 {dimension_numbers = #tpu.dot_dimension_numbers<[1], [0], [0], [1], [0, 0, 1, 1], [], []>} : vector<12x16xf32>, vector<16x16xf32>, vector<12x16xf32> -> vector<12x16xf32>
      %c0_42 = arith.constant 0 : index
      %c0_43 = arith.constant 0 : index
      %c0_44 = arith.constant 0 : index
      %45 = vector.load %arg16[%c0_42, %c0_43, %c0_44] : memref<3x1x16xf32, #tpu.memory_space<vmem>>, vector<1x1x16xf32>
      %46 = vector.shape_cast %45 : vector<1x1x16xf32> to vector<1x16xf32>
      %47 = vector.broadcast %46 : vector<1x16xf32> to vector<12x16xf32>
      %48 = arith.addf %44, %47 : vector<12x16xf32>
      %c0_45 = arith.constant 0 : index
      %c0_46 = arith.constant 0 : index
      %c0_47 = arith.constant 0 : index
      %49 = vector.load %arg17[%c0_45, %c0_46, %c0_47] : memref<3x16x16xf32, #tpu.memory_space<vmem>>, vector<1x16x16xf32>
      %50 = vector.shape_cast %49 : vector<1x16x16xf32> to vector<16x16xf32>
      %cst_48 = arith.constant dense<0.000000e+00> : vector<12x16xf32>
      %51 = tpu.matmul %41, %50, %cst_48 {dimension_numbers = #tpu.dot_dimension_numbers<[1], [0], [0], [1], [0, 0, 1, 1], [], []>} : vector<12x16xf32>, vector<16x16xf32>, vector<12x16xf32> -> vector<12x16xf32>
      %52 = arith.addf %48, %51 : vector<12x16xf32>
      %53 = arith.negf %52 : vector<12x16xf32>
      %54 = math.exp %53 : vector<12x16xf32>
      %cst_49 = arith.constant 1.000000e+00 : f32
      %55 = vector.broadcast %cst_49 : f32 to vector<12x16xf32>
      %56 = arith.addf %55, %54 : vector<12x16xf32>
      %57 = arith.divf %55, %56 : vector<12x16xf32>
      %c1 = arith.constant 1 : index
      %c0_50 = arith.constant 0 : index
      %c0_51 = arith.constant 0 : index
      %58 = vector.load %arg15[%c1, %c0_50, %c0_51] : memref<3x16x16xf32, #tpu.memory_space<vmem>>, vector<1x16x16xf32>
      %59 = vector.shape_cast %58 : vector<1x16x16xf32> to vector<16x16xf32>
      %cst_52 = arith.constant dense<0.000000e+00> : vector<12x16xf32>
      %60 = tpu.matmul %34, %59, %cst_52 {dimension_numbers = #tpu.dot_dimension_numbers<[1], [0], [0], [1], [0, 0, 1, 1], [], []>} : vector<12x16xf32>, vector<16x16xf32>, vector<12x16xf32> -> vector<12x16xf32>
      %c1_53 = arith.constant 1 : index
      %c0_54 = arith.constant 0 : index
      %c0_55 = arith.constant 0 : index
      %61 = vector.load %arg16[%c1_53, %c0_54, %c0_55] : memref<3x1x16xf32, #tpu.memory_space<vmem>>, vector<1x1x16xf32>
      %62 = vector.shape_cast %61 : vector<1x1x16xf32> to vector<1x16xf32>
      %63 = vector.broadcast %62 : vector<1x16xf32> to vector<12x16xf32>
      %64 = arith.addf %60, %63 : vector<12x16xf32>
      %c1_56 = arith.constant 1 : index
      %c0_57 = arith.constant 0 : index
      %c0_58 = arith.constant 0 : index
      %65 = vector.load %arg17[%c1_56, %c0_57, %c0_58] : memref<3x16x16xf32, #tpu.memory_space<vmem>>, vector<1x16x16xf32>
      %66 = vector.shape_cast %65 : vector<1x16x16xf32> to vector<16x16xf32>
      %cst_59 = arith.constant dense<0.000000e+00> : vector<12x16xf32>
      %67 = tpu.matmul %41, %66, %cst_59 {dimension_numbers = #tpu.dot_dimension_numbers<[1], [0], [0], [1], [0, 0, 1, 1], [], []>} : vector<12x16xf32>, vector<16x16xf32>, vector<12x16xf32> -> vector<12x16xf32>
      %68 = arith.addf %64, %67 : vector<12x16xf32>
      %69 = arith.negf %68 : vector<12x16xf32>
      %70 = math.exp %69 : vector<12x16xf32>
      %cst_60 = arith.constant 1.000000e+00 : f32
      %71 = vector.broadcast %cst_60 : f32 to vector<12x16xf32>
      %72 = arith.addf %71, %70 : vector<12x16xf32>
      %73 = arith.divf %71, %72 : vector<12x16xf32>
      %c2 = arith.constant 2 : index
      %c0_61 = arith.constant 0 : index
      %c0_62 = arith.constant 0 : index
      %74 = vector.load %arg15[%c2, %c0_61, %c0_62] : memref<3x16x16xf32, #tpu.memory_space<vmem>>, vector<1x16x16xf32>
      %75 = vector.shape_cast %74 : vector<1x16x16xf32> to vector<16x16xf32>
      %cst_63 = arith.constant dense<0.000000e+00> : vector<12x16xf32>
      %76 = tpu.matmul %34, %75, %cst_63 {dimension_numbers = #tpu.dot_dimension_numbers<[1], [0], [0], [1], [0, 0, 1, 1], [], []>} : vector<12x16xf32>, vector<16x16xf32>, vector<12x16xf32> -> vector<12x16xf32>
      %c2_64 = arith.constant 2 : index
      %c0_65 = arith.constant 0 : index
      %c0_66 = arith.constant 0 : index
      %77 = vector.load %arg16[%c2_64, %c0_65, %c0_66] : memref<3x1x16xf32, #tpu.memory_space<vmem>>, vector<1x1x16xf32>
      %78 = vector.shape_cast %77 : vector<1x1x16xf32> to vector<1x16xf32>
      %79 = vector.broadcast %78 : vector<1x16xf32> to vector<12x16xf32>
      %80 = arith.addf %76, %79 : vector<12x16xf32>
      %c2_67 = arith.constant 2 : index
      %c0_68 = arith.constant 0 : index
      %c0_69 = arith.constant 0 : index
      %81 = vector.load %arg17[%c2_67, %c0_68, %c0_69] : memref<3x16x16xf32, #tpu.memory_space<vmem>>, vector<1x16x16xf32>
      %82 = vector.shape_cast %81 : vector<1x16x16xf32> to vector<16x16xf32>
      %cst_70 = arith.constant dense<0.000000e+00> : vector<12x16xf32>
      %83 = tpu.matmul %41, %82, %cst_70 {dimension_numbers = #tpu.dot_dimension_numbers<[1], [0], [0], [1], [0, 0, 1, 1], [], []>} : vector<12x16xf32>, vector<16x16xf32>, vector<12x16xf32> -> vector<12x16xf32>
      %84 = arith.mulf %57, %83 : vector<12x16xf32>
      %85 = arith.addf %80, %84 : vector<12x16xf32>
      %86 = math.tanh %85 : vector<12x16xf32>
      %cst_71 = arith.constant 1.000000e+00 : f32
      %87 = vector.broadcast %cst_71 : f32 to vector<12x16xf32>
      %88 = arith.subf %87, %73 : vector<12x16xf32>
      %89 = arith.mulf %88, %86 : vector<12x16xf32>
      %90 = arith.mulf %73, %41 : vector<12x16xf32>
      %91 = arith.addf %89, %90 : vector<12x16xf32>
      %c0_72 = arith.constant 0 : index
      %c0_73 = arith.constant 0 : index
      %c0_74 = arith.constant 0 : index
      %92 = vector.load %arg5[%c0_72, %c0_73, %c0_74] : memref<1x4x12xf32, #tpu.memory_space<vmem>>, vector<1x4x12xf32>
      %93 = vector.shape_cast %92 : vector<1x4x12xf32> to vector<4x12xf32>
      %cst_75 = arith.constant dense<0.000000e+00> : vector<4x16xf32>
      %94 = tpu.matmul %93, %91, %cst_75 {dimension_numbers = #tpu.dot_dimension_numbers<[1], [0], [0], [1], [0, 0, 1, 1], [], []>} : vector<4x12xf32>, vector<12x16xf32>, vector<4x16xf32> -> vector<4x16xf32>
      %95 = tpu.concatenate %3, %94 in 1 : vector<4x4xf32>, vector<4x16xf32> -> vector<4x20xf32>
      %c0_76 = arith.constant 0 : index
      %c0_77 = arith.constant 0 : index
      %96 = vector.load %arg36[%c0_76, %c0_77] : memref<4x20xf32, #tpu.memory_space<vmem>>, vector<4x20xf32>
      %c0_78 = arith.constant 0 : index
      %c0_79 = arith.constant 0 : index
      %c0_80 = arith.constant 0 : index
      %97 = vector.load %arg18[%c0_78, %c0_79, %c0_80] : memref<3x20x20xf32, #tpu.memory_space<vmem>>, vector<1x20x20xf32>
      %98 = vector.shape_cast %97 : vector<1x20x20xf32> to vector<20x20xf32>
      %cst_81 = arith.constant dense<0.000000e+00> : vector<4x20xf32>
      %99 = tpu.matmul %95, %98, %cst_81 {dimension_numbers = #tpu.dot_dimension_numbers<[1], [0], [0], [1], [0, 0, 1, 1], [], []>} : vector<4x20xf32>, vector<20x20xf32>, vector<4x20xf32> -> vector<4x20xf32>
      %c0_82 = arith.constant 0 : index
      %c0_83 = arith.constant 0 : index
      %c0_84 = arith.constant 0 : index
      %100 = vector.load %arg19[%c0_82, %c0_83, %c0_84] : memref<3x1x20xf32, #tpu.memory_space<vmem>>, vector<1x1x20xf32>
      %101 = vector.shape_cast %100 : vector<1x1x20xf32> to vector<1x20xf32>
      %102 = vector.broadcast %101 : vector<1x20xf32> to vector<4x20xf32>
      %103 = arith.addf %99, %102 : vector<4x20xf32>
      %c0_85 = arith.constant 0 : index
      %c0_86 = arith.constant 0 : index
      %c0_87 = arith.constant 0 : index
      %104 = vector.load %arg20[%c0_85, %c0_86, %c0_87] : memref<3x20x20xf32, #tpu.memory_space<vmem>>, vector<1x20x20xf32>
      %105 = vector.shape_cast %104 : vector<1x20x20xf32> to vector<20x20xf32>
      %cst_88 = arith.constant dense<0.000000e+00> : vector<4x20xf32>
      %106 = tpu.matmul %96, %105, %cst_88 {dimension_numbers = #tpu.dot_dimension_numbers<[1], [0], [0], [1], [0, 0, 1, 1], [], []>} : vector<4x20xf32>, vector<20x20xf32>, vector<4x20xf32> -> vector<4x20xf32>
      %107 = arith.addf %103, %106 : vector<4x20xf32>
      %108 = arith.negf %107 : vector<4x20xf32>
      %109 = math.exp %108 : vector<4x20xf32>
      %cst_89 = arith.constant 1.000000e+00 : f32
      %110 = vector.broadcast %cst_89 : f32 to vector<4x20xf32>
      %111 = arith.addf %110, %109 : vector<4x20xf32>
      %112 = arith.divf %110, %111 : vector<4x20xf32>
      %c1_90 = arith.constant 1 : index
      %c0_91 = arith.constant 0 : index
      %c0_92 = arith.constant 0 : index
      %113 = vector.load %arg18[%c1_90, %c0_91, %c0_92] : memref<3x20x20xf32, #tpu.memory_space<vmem>>, vector<1x20x20xf32>
      %114 = vector.shape_cast %113 : vector<1x20x20xf32> to vector<20x20xf32>
      %cst_93 = arith.constant dense<0.000000e+00> : vector<4x20xf32>
      %115 = tpu.matmul %95, %114, %cst_93 {dimension_numbers = #tpu.dot_dimension_numbers<[1], [0], [0], [1], [0, 0, 1, 1], [], []>} : vector<4x20xf32>, vector<20x20xf32>, vector<4x20xf32> -> vector<4x20xf32>
      %c1_94 = arith.constant 1 : index
      %c0_95 = arith.constant 0 : index
      %c0_96 = arith.constant 0 : index
      %116 = vector.load %arg19[%c1_94, %c0_95, %c0_96] : memref<3x1x20xf32, #tpu.memory_space<vmem>>, vector<1x1x20xf32>
      %117 = vector.shape_cast %116 : vector<1x1x20xf32> to vector<1x20xf32>
      %118 = vector.broadcast %117 : vector<1x20xf32> to vector<4x20xf32>
      %119 = arith.addf %115, %118 : vector<4x20xf32>
      %c1_97 = arith.constant 1 : index
      %c0_98 = arith.constant 0 : index
      %c0_99 = arith.constant 0 : index
      %120 = vector.load %arg20[%c1_97, %c0_98, %c0_99] : memref<3x20x20xf32, #tpu.memory_space<vmem>>, vector<1x20x20xf32>
      %121 = vector.shape_cast %120 : vector<1x20x20xf32> to vector<20x20xf32>
      %cst_100 = arith.constant dense<0.000000e+00> : vector<4x20xf32>
      %122 = tpu.matmul %96, %121, %cst_100 {dimension_numbers = #tpu.dot_dimension_numbers<[1], [0], [0], [1], [0, 0, 1, 1], [], []>} : vector<4x20xf32>, vector<20x20xf32>, vector<4x20xf32> -> vector<4x20xf32>
      %123 = arith.addf %119, %122 : vector<4x20xf32>
      %124 = arith.negf %123 : vector<4x20xf32>
      %125 = math.exp %124 : vector<4x20xf32>
      %cst_101 = arith.constant 1.000000e+00 : f32
      %126 = vector.broadcast %cst_101 : f32 to vector<4x20xf32>
      %127 = arith.addf %126, %125 : vector<4x20xf32>
      %128 = arith.divf %126, %127 : vector<4x20xf32>
      %c2_102 = arith.constant 2 : index
      %c0_103 = arith.constant 0 : index
      %c0_104 = arith.constant 0 : index
      %129 = vector.load %arg18[%c2_102, %c0_103, %c0_104] : memref<3x20x20xf32, #tpu.memory_space<vmem>>, vector<1x20x20xf32>
      %130 = vector.shape_cast %129 : vector<1x20x20xf32> to vector<20x20xf32>
      %cst_105 = arith.constant dense<0.000000e+00> : vector<4x20xf32>
      %131 = tpu.matmul %95, %130, %cst_105 {dimension_numbers = #tpu.dot_dimension_numbers<[1], [0], [0], [1], [0, 0, 1, 1], [], []>} : vector<4x20xf32>, vector<20x20xf32>, vector<4x20xf32> -> vector<4x20xf32>
      %c2_106 = arith.constant 2 : index
      %c0_107 = arith.constant 0 : index
      %c0_108 = arith.constant 0 : index
      %132 = vector.load %arg19[%c2_106, %c0_107, %c0_108] : memref<3x1x20xf32, #tpu.memory_space<vmem>>, vector<1x1x20xf32>
      %133 = vector.shape_cast %132 : vector<1x1x20xf32> to vector<1x20xf32>
      %134 = vector.broadcast %133 : vector<1x20xf32> to vector<4x20xf32>
      %135 = arith.addf %131, %134 : vector<4x20xf32>
      %c2_109 = arith.constant 2 : index
      %c0_110 = arith.constant 0 : index
      %c0_111 = arith.constant 0 : index
      %136 = vector.load %arg20[%c2_109, %c0_110, %c0_111] : memref<3x20x20xf32, #tpu.memory_space<vmem>>, vector<1x20x20xf32>
      %137 = vector.shape_cast %136 : vector<1x20x20xf32> to vector<20x20xf32>
      %cst_112 = arith.constant dense<0.000000e+00> : vector<4x20xf32>
      %138 = tpu.matmul %96, %137, %cst_112 {dimension_numbers = #tpu.dot_dimension_numbers<[1], [0], [0], [1], [0, 0, 1, 1], [], []>} : vector<4x20xf32>, vector<20x20xf32>, vector<4x20xf32> -> vector<4x20xf32>
      %139 = arith.mulf %112, %138 : vector<4x20xf32>
      %140 = arith.addf %135, %139 : vector<4x20xf32>
      %141 = math.tanh %140 : vector<4x20xf32>
      %cst_113 = arith.constant 1.000000e+00 : f32
      %142 = vector.broadcast %cst_113 : f32 to vector<4x20xf32>
      %143 = arith.subf %142, %128 : vector<4x20xf32>
      %144 = arith.mulf %143, %141 : vector<4x20xf32>
      %145 = arith.mulf %128, %96 : vector<4x20xf32>
      %146 = arith.addf %144, %145 : vector<4x20xf32>
      %c0_114 = arith.constant 0 : index
      %c0_115 = arith.constant 0 : index
      %147 = vector.load %arg37[%c0_114, %c0_115] : memref<12x16xf32, #tpu.memory_space<vmem>>, vector<12x16xf32>
      tpu.vector_store %arg37[%c0_114, %c0_115], %91 {strides = array<i32>} : memref<12x16xf32, #tpu.memory_space<vmem>>, vector<12x16xf32>,
      %c0_116 = arith.constant 0 : index
      %c0_117 = arith.constant 0 : index
      %148 = vector.load %arg36[%c0_116, %c0_117] : memref<4x20xf32, #tpu.memory_space<vmem>>, vector<4x20xf32>
      tpu.vector_store %arg36[%c0_116, %c0_117], %146 {strides = array<i32>} : memref<4x20xf32, #tpu.memory_space<vmem>>, vector<4x20xf32>,
      %c0_118 = arith.constant 0 : index
      %c0_119 = arith.constant 0 : index
      %149 = vector.load %arg27[%c0_118, %c0_119] : memref<20x8xf32, #tpu.memory_space<vmem>>, vector<20x8xf32>
      %cst_120 = arith.constant dense<0.000000e+00> : vector<4x8xf32>
      %150 = tpu.matmul %146, %149, %cst_120 {dimension_numbers = #tpu.dot_dimension_numbers<[1], [0], [0], [1], [0, 0, 1, 1], [], []>} : vector<4x20xf32>, vector<20x8xf32>, vector<4x8xf32> -> vector<4x8xf32>
      %c0_121 = arith.constant 0 : index
      %c0_122 = arith.constant 0 : index
      %151 = vector.load %arg28[%c0_121, %c0_122] : memref<1x8xf32, #tpu.memory_space<vmem>>, vector<1x8xf32>
      %152 = vector.broadcast %151 : vector<1x8xf32> to vector<4x8xf32>
      %153 = arith.addf %150, %152 : vector<4x8xf32>
      %cst_123 = arith.constant 0.000000e+00 : f32
      %154 = vector.broadcast %cst_123 : f32 to vector<4x8xf32>
      %155 = arith.maximumf %153, %154 : vector<4x8xf32>
      %c0_124 = arith.constant 0 : index
      %c0_125 = arith.constant 0 : index
      %156 = vector.load %arg29[%c0_124, %c0_125] : memref<20x8xf32, #tpu.memory_space<vmem>>, vector<20x8xf32>
      %cst_126 = arith.constant dense<0.000000e+00> : vector<4x8xf32>
      %157 = tpu.matmul %146, %156, %cst_126 {dimension_numbers = #tpu.dot_dimension_numbers<[1], [0], [0], [1], [0, 0, 1, 1], [], []>} : vector<4x20xf32>, vector<20x8xf32>, vector<4x8xf32> -> vector<4x8xf32>
      %c0_127 = arith.constant 0 : index
      %c0_128 = arith.constant 0 : index
      %158 = vector.load %arg30[%c0_127, %c0_128] : memref<1x8xf32, #tpu.memory_space<vmem>>, vector<1x8xf32>
      %159 = vector.broadcast %158 : vector<1x8xf32> to vector<4x8xf32>
      %160 = arith.addf %157, %159 : vector<4x8xf32>
      %cst_129 = arith.constant 0.000000e+00 : f32
      %161 = vector.broadcast %cst_129 : f32 to vector<4x8xf32>
      %162 = arith.maximumf %160, %161 : vector<4x8xf32>
      %c0_130 = arith.constant 0 : index
      %c0_131 = arith.constant 0 : index
      %163 = vector.load %arg31[%c0_130, %c0_131] : memref<20x8xf32, #tpu.memory_space<vmem>>, vector<20x8xf32>
      %cst_132 = arith.constant dense<0.000000e+00> : vector<4x8xf32>
      %164 = tpu.matmul %146, %163, %cst_132 {dimension_numbers = #tpu.dot_dimension_numbers<[1], [0], [0], [1], [0, 0, 1, 1], [], []>} : vector<4x20xf32>, vector<20x8xf32>, vector<4x8xf32> -> vector<4x8xf32>
      %c0_133 = arith.constant 0 : index
      %c0_134 = arith.constant 0 : index
      %165 = vector.load %arg32[%c0_133, %c0_134] : memref<1x8xf32, #tpu.memory_space<vmem>>, vector<1x8xf32>
      %166 = vector.broadcast %165 : vector<1x8xf32> to vector<4x8xf32>
      %167 = arith.addf %164, %166 : vector<4x8xf32>
      %cst_135 = arith.constant 0.000000e+00 : f32
      %168 = vector.broadcast %cst_135 : f32 to vector<4x8xf32>
      %169 = arith.maximumf %167, %168 : vector<4x8xf32>
      %170 = arith.index_cast %arg1 : i32 to index
      %c0_136 = arith.constant 0 : index
      %c0_137 = arith.constant 0 : index
      %171 = vector.load %arg38[%170, %c0_136, %c0_137] : memref<5x4x8xf32, #tpu.memory_space<vmem>>, vector<1x4x8xf32>
      %172 = vector.shape_cast %171 : vector<1x4x8xf32> to vector<4x8xf32>
      %173 = vector.shape_cast %162 : vector<4x8xf32> to vector<1x4x8xf32>
      tpu.vector_store %arg38[%170, %c0_136, %c0_137], %173 {strides = array<i32>} : memref<5x4x8xf32, #tpu.memory_space<vmem>>, vector<1x4x8xf32>,
      %174 = arith.index_cast %arg1 : i32 to index
      %c0_138 = arith.constant 0 : index
      %c0_139 = arith.constant 0 : index
      %175 = vector.load %arg39[%174, %c0_138, %c0_139] : memref<5x4x8xf32, #tpu.memory_space<vmem>>, vector<1x4x8xf32>
      %176 = vector.shape_cast %175 : vector<1x4x8xf32> to vector<4x8xf32>
      %177 = vector.shape_cast %169 : vector<4x8xf32> to vector<1x4x8xf32>
      tpu.vector_store %arg39[%174, %c0_138, %c0_139], %177 {strides = array<i32>} : memref<5x4x8xf32, #tpu.memory_space<vmem>>, vector<1x4x8xf32>,
      %c0_140 = arith.constant 0 : index
      %c0_141 = arith.constant 0 : index
      %c0_142 = arith.constant 0 : index
      %178 = vector.load %arg38[%c0_140, %c0_141, %c0_142] : memref<5x4x8xf32, #tpu.memory_space<vmem>>, vector<5x4x8xf32>
      %c0_143 = arith.constant 0 : index
      %c0_144 = arith.constant 0 : index
      %c0_145 = arith.constant 0 : index
      %179 = vector.load %arg39[%c0_143, %c0_144, %c0_145] : memref<5x4x8xf32, #tpu.memory_space<vmem>>, vector<5x4x8xf32>
      %180 = vector.shape_cast %155 : vector<4x8xf32> to vector<1x4x8xf32>
      %181 = vector.broadcast %180 : vector<1x4x8xf32> to vector<5x4x8xf32>
      %182 = arith.mulf %181, %178 : vector<5x4x8xf32>
      %cst_146 = arith.constant dense<0.000000e+00> : vector<5x4xf32>
      %183 = vector.multi_reduction <add>, %182, %cst_146 [2] : vector<5x4x8xf32> to vector<5x4xf32>
      %184 = tpu.iota {dimensions = array<i32: 0>} : vector<5x4xi32>
      %185 = vector.broadcast %arg1 : i32 to vector<5x4xi32>
      %186 = arith.cmpi sle, %184, %185 : vector<5x4xi32>
      %cst_147 = arith.constant -1.000000e+30 : f32
      %187 = vector.broadcast %cst_147 : f32 to vector<5x4xf32>
      %188 = arith.select %186, %183, %187 : vector<5x4xi1>, vector<5x4xf32>
      %cst_148 = arith.constant dense<0xFF800000> : vector<4xf32>
      %189 = vector.multi_reduction <maximumf>, %188, %cst_148 [0] : vector<5x4xf32> to vector<4xf32>
      %190 = vector.shape_cast %189 : vector<4xf32> to vector<1x4xf32>
      %191 = vector.broadcast %190 : vector<1x4xf32> to vector<5x4xf32>
      %192 = arith.subf %188, %191 : vector<5x4xf32>
      %193 = math.exp %192 : vector<5x4xf32>
      %cst_149 = arith.constant dense<0.000000e+00> : vector<4xf32>
      %194 = vector.multi_reduction <add>, %193, %cst_149 [0] : vector<5x4xf32> to vector<4xf32>
      %195 = vector.shape_cast %194 : vector<4xf32> to vector<1x4xf32>
      %196 = tpu.reciprocal %195 {approx = true} : vector<1x4xf32> -> vector<1x4xf32>
      %197 = vector.broadcast %196 : vector<1x4xf32> to vector<5x4xf32>
      %198 = arith.mulf %193, %197 : vector<5x4xf32>
      %199 = vector.shape_cast %198 : vector<5x4xf32> to vector<5x4x1xf32>
      %200 = vector.broadcast %199 : vector<5x4x1xf32> to vector<5x4x8xf32>
      %201 = arith.mulf %200, %179 : vector<5x4x8xf32>
      %cst_150 = arith.constant dense<0.000000e+00> : vector<4x8xf32>
      %202 = vector.multi_reduction <add>, %201, %cst_150 [0] : vector<5x4x8xf32> to vector<4x8xf32>
      %c0_151 = arith.constant 0 : index
      %c0_152 = arith.constant 0 : index
      %203 = vector.load %arg33[%c0_151, %c0_152] : memref<8x20xf32, #tpu.memory_space<vmem>>, vector<8x20xf32>
      %cst_153 = arith.constant dense<0.000000e+00> : vector<4x20xf32>
      %204 = tpu.matmul %202, %203, %cst_153 {dimension_numbers = #tpu.dot_dimension_numbers<[1], [0], [0], [1], [0, 0, 1, 1], [], []>} : vector<4x8xf32>, vector<8x20xf32>, vector<4x20xf32> -> vector<4x20xf32>
      %c0_154 = arith.constant 0 : index
      %c0_155 = arith.constant 0 : index
      %205 = vector.load %arg34[%c0_154, %c0_155] : memref<1x20xf32, #tpu.memory_space<vmem>>, vector<1x20xf32>
      %206 = vector.broadcast %205 : vector<1x20xf32> to vector<4x20xf32>
      %207 = arith.addf %204, %206 : vector<4x20xf32>
      %cst_156 = arith.constant 0.000000e+00 : f32
      %208 = vector.broadcast %cst_156 : f32 to vector<4x20xf32>
      %209 = arith.maximumf %207, %208 : vector<4x20xf32>
      %c0_157 = arith.constant 0 : index
      %c0_158 = arith.constant 0 : index
      %210 = vector.load %arg29[%c0_157, %c0_158] : memref<20x8xf32, #tpu.memory_space<vmem>>, vector<20x8xf32>
      %cst_159 = arith.constant dense<0.000000e+00> : vector<4x8xf32>
      %211 = tpu.matmul %209, %210, %cst_159 {dimension_numbers = #tpu.dot_dimension_numbers<[1], [0], [0], [1], [0, 0, 1, 1], [], []>} : vector<4x20xf32>, vector<20x8xf32>, vector<4x8xf32> -> vector<4x8xf32>
      %c0_160 = arith.constant 0 : index
      %c0_161 = arith.constant 0 : index
      %212 = vector.load %arg30[%c0_160, %c0_161] : memref<1x8xf32, #tpu.memory_space<vmem>>, vector<1x8xf32>
      %213 = vector.broadcast %212 : vector<1x8xf32> to vector<4x8xf32>
      %214 = arith.addf %211, %213 : vector<4x8xf32>
      %cst_162 = arith.constant 0.000000e+00 : f32
      %215 = vector.broadcast %cst_162 : f32 to vector<4x8xf32>
      %216 = arith.maximumf %214, %215 : vector<4x8xf32>
      %c0_163 = arith.constant 0 : index
      %c0_164 = arith.constant 0 : index
      %217 = vector.load %arg31[%c0_163, %c0_164] : memref<20x8xf32, #tpu.memory_space<vmem>>, vector<20x8xf32>
      %cst_165 = arith.constant dense<0.000000e+00> : vector<4x8xf32>
      %218 = tpu.matmul %209, %217, %cst_165 {dimension_numbers = #tpu.dot_dimension_numbers<[1], [0], [0], [1], [0, 0, 1, 1], [], []>} : vector<4x20xf32>, vector<20x8xf32>, vector<4x8xf32> -> vector<4x8xf32>
      %c0_166 = arith.constant 0 : index
      %c0_167 = arith.constant 0 : index
      %219 = vector.load %arg32[%c0_166, %c0_167] : memref<1x8xf32, #tpu.memory_space<vmem>>, vector<1x8xf32>
      %220 = vector.broadcast %219 : vector<1x8xf32> to vector<4x8xf32>
      %221 = arith.addf %218, %220 : vector<4x8xf32>
      %cst_168 = arith.constant 0.000000e+00 : f32
      %222 = vector.broadcast %cst_168 : f32 to vector<4x8xf32>
      %223 = arith.maximumf %221, %222 : vector<4x8xf32>
      %224 = arith.index_cast %arg1 : i32 to index
      %c0_169 = arith.constant 0 : index
      %c0_170 = arith.constant 0 : index
      %225 = vector.load %arg38[%224, %c0_169, %c0_170] : memref<5x4x8xf32, #tpu.memory_space<vmem>>, vector<1x4x8xf32>
      %226 = vector.shape_cast %225 : vector<1x4x8xf32> to vector<4x8xf32>
      %227 = vector.shape_cast %216 : vector<4x8xf32> to vector<1x4x8xf32>
      tpu.vector_store %arg38[%224, %c0_169, %c0_170], %227 {strides = array<i32>} : memref<5x4x8xf32, #tpu.memory_space<vmem>>, vector<1x4x8xf32>,
      %228 = arith.index_cast %arg1 : i32 to index
      %c0_171 = arith.constant 0 : index
      %c0_172 = arith.constant 0 : index
      %229 = vector.load %arg39[%228, %c0_171, %c0_172] : memref<5x4x8xf32, #tpu.memory_space<vmem>>, vector<1x4x8xf32>
      %230 = vector.shape_cast %229 : vector<1x4x8xf32> to vector<4x8xf32>
      %231 = vector.shape_cast %223 : vector<4x8xf32> to vector<1x4x8xf32>
      tpu.vector_store %arg39[%228, %c0_171, %c0_172], %231 {strides = array<i32>} : memref<5x4x8xf32, #tpu.memory_space<vmem>>, vector<1x4x8xf32>,
      %c0_173 = arith.constant 0 : index
      %c0_174 = arith.constant 0 : index
      %232 = vector.load %arg21[%c0_173, %c0_174] : memref<20x16xf32, #tpu.memory_space<vmem>>, vector<20x16xf32>
      %cst_175 = arith.constant dense<0.000000e+00> : vector<4x16xf32>
      %233 = tpu.matmul %209, %232, %cst_175 {dimension_numbers = #tpu.dot_dimension_numbers<[1], [0], [0], [1], [0, 0, 1, 1], [], []>} : vector<4x20xf32>, vector<20x16xf32>, vector<4x16xf32> -> vector<4x16xf32>
      %c0_176 = arith.constant 0 : index
      %c0_177 = arith.constant 0 : index
      %234 = vector.load %arg22[%c0_176, %c0_177] : memref<1x16xf32, #tpu.memory_space<vmem>>, vector<1x16xf32>
      %235 = vector.broadcast %234 : vector<1x16xf32> to vector<4x16xf32>
      %236 = arith.addf %233, %235 : vector<4x16xf32>
      %cst_178 = arith.constant 0.000000e+00 : f32
      %237 = vector.broadcast %cst_178 : f32 to vector<4x16xf32>
      %238 = arith.maximumf %236, %237 : vector<4x16xf32>
      %c0_179 = arith.constant 0 : index
      %c0_180 = arith.constant 0 : index
      %239 = vector.load %arg23[%c0_179, %c0_180] : memref<16x16xf32, #tpu.memory_space<vmem>>, vector<16x16xf32>
      %cst_181 = arith.constant dense<0.000000e+00> : vector<4x16xf32>
      %240 = tpu.matmul %238, %239, %cst_181 {dimension_numbers = #tpu.dot_dimension_numbers<[1], [0], [0], [1], [0, 0, 1, 1], [], []>} : vector<4x16xf32>, vector<16x16xf32>, vector<4x16xf32> -> vector<4x16xf32>
      %c0_182 = arith.constant 0 : index
      %c0_183 = arith.constant 0 : index
      %241 = vector.load %arg24[%c0_182, %c0_183] : memref<1x16xf32, #tpu.memory_space<vmem>>, vector<1x16xf32>
      %242 = vector.broadcast %241 : vector<1x16xf32> to vector<4x16xf32>
      %243 = arith.addf %240, %242 : vector<4x16xf32>
      %cst_184 = arith.constant 0.000000e+00 : f32
      %244 = vector.broadcast %cst_184 : f32 to vector<4x16xf32>
      %245 = arith.maximumf %243, %244 : vector<4x16xf32>
      %c0_185 = arith.constant 0 : index
      %c0_186 = arith.constant 0 : index
      %246 = vector.load %arg25[%c0_185, %c0_186] : memref<16x4xf32, #tpu.memory_space<vmem>>, vector<16x4xf32>
      %cst_187 = arith.constant dense<0.000000e+00> : vector<4x4xf32>
      %247 = tpu.matmul %245, %246, %cst_187 {dimension_numbers = #tpu.dot_dimension_numbers<[1], [0], [0], [1], [0, 0, 1, 1], [], []>} : vector<4x16xf32>, vector<16x4xf32>, vector<4x4xf32> -> vector<4x4xf32>
      %c0_188 = arith.constant 0 : index
      %c0_189 = arith.constant 0 : index
      %248 = vector.load %arg26[%c0_188, %c0_189] : memref<1x4xf32, #tpu.memory_space<vmem>>, vector<1x4xf32>
      %249 = vector.broadcast %248 : vector<1x4xf32> to vector<4x4xf32>
      %250 = arith.addf %247, %249 : vector<4x4xf32>
      %251 = arith.addf %3, %250 : vector<4x4xf32>
      %252 = vector.shape_cast %251 : vector<4x4xf32> to vector<1x4x4xf32>
      %253 = arith.index_cast %arg1 : i32 to index
      %c0_190 = arith.constant 0 : index
      %c0_191 = arith.constant 0 : index
      %c0_192 = arith.constant 0 : index
      %254 = vector.load %arg35[%253, %c0_190, %c0_191, %c0_192] : memref<5x1x4x4xf32, #tpu.memory_space<vmem>>, vector<1x1x4x4xf32>
      %255 = vector.shape_cast %254 : vector<1x1x4x4xf32> to vector<1x4x4xf32>
      %256 = vector.shape_cast %252 : vector<1x4x4xf32> to vector<1x1x4x4xf32>
      tpu.vector_store %arg35[%253, %c0_190, %c0_191, %c0_192], %256 {strides = array<i32>} : memref<5x1x4x4xf32, #tpu.memory_space<vmem>>, vector<1x1x4x4xf32>,
    } else {
    }
    return
  }
  func.func @transform_0(%arg0: i32, %arg1: i32) -> (i32, i32, i32, i32) {
    %c0_i32 = arith.constant 0 : i32
    %c0_i32_0 = arith.constant 0 : i32
    %c0_i32_1 = arith.constant 0 : i32
    %c0_i32_2 = arith.constant 0 : i32
    return %c0_i32, %arg0, %c0_i32_0, %c0_i32_1 : i32, i32, i32, i32
  }
  func.func @transform_1(%arg0: i32, %arg1: i32) -> (i32, i32, i32) {
    %c0_i32 = arith.constant 0 : i32
    %c0_i32_0 = arith.constant 0 : i32
    %c0_i32_1 = arith.constant 0 : i32
    return %arg0, %c0_i32, %c0_i32_0 : i32, i32, i32
  }
  func.func @transform_2(%arg0: i32, %arg1: i32) -> (i32, i32, i32) {
    %c0_i32 = arith.constant 0 : i32
    %c0_i32_0 = arith.constant 0 : i32
    %c0_i32_1 = arith.constant 0 : i32
    return %arg0, %c0_i32, %c0_i32_0 : i32, i32, i32
  }
  func.func @transform_3(%arg0: i32, %arg1: i32) -> (i32, i32, i32) {
    %c0_i32 = arith.constant 0 : i32
    %c0_i32_0 = arith.constant 0 : i32
    %c0_i32_1 = arith.constant 0 : i32
    return %arg0, %c0_i32, %c0_i32_0 : i32, i32, i32
  }
  func.func @transform_4(%arg0: i32, %arg1: i32) -> (i32, i32, i32) {
    %c0_i32 = arith.constant 0 : i32
    %c0_i32_0 = arith.constant 0 : i32
    %c0_i32_1 = arith.constant 0 : i32
    return %arg0, %c0_i32, %c0_i32_0 : i32, i32, i32
  }
  func.func @transform_5(%arg0: i32, %arg1: i32) -> (i32, i32) {
    %c0_i32 = arith.constant 0 : i32
    %c0_i32_0 = arith.constant 0 : i32
    %c0_i32_1 = arith.constant 0 : i32
    return %c0_i32, %c0_i32_0 : i32, i32
  }
  func.func @transform_6(%arg0: i32, %arg1: i32) -> (i32, i32) {
    %c0_i32 = arith.constant 0 : i32
    %c0_i32_0 = arith.constant 0 : i32
    %c0_i32_1 = arith.constant 0 : i32
    return %c0_i32, %c0_i32_0 : i32, i32
  }
  func.func @transform_7(%arg0: i32, %arg1: i32) -> (i32, i32) {
    %c0_i32 = arith.constant 0 : i32
    %c0_i32_0 = arith.constant 0 : i32
    %c0_i32_1 = arith.constant 0 : i32
    return %c0_i32, %c0_i32_0 : i32, i32
  }
  func.func @transform_8(%arg0: i32, %arg1: i32) -> (i32, i32) {
    %c0_i32 = arith.constant 0 : i32
    %c0_i32_0 = arith.constant 0 : i32
    %c0_i32_1 = arith.constant 0 : i32
    return %c0_i32, %c0_i32_0 : i32, i32
  }
  func.func @transform_9(%arg0: i32, %arg1: i32) -> (i32, i32) {
    %c0_i32 = arith.constant 0 : i32
    %c0_i32_0 = arith.constant 0 : i32
    %c0_i32_1 = arith.constant 0 : i32
    return %c0_i32, %c0_i32_0 : i32, i32
  }
  func.func @transform_10(%arg0: i32, %arg1: i32) -> (i32, i32) {
    %c0_i32 = arith.constant 0 : i32
    %c0_i32_0 = arith.constant 0 : i32
    %c0_i32_1 = arith.constant 0 : i32
    return %c0_i32, %c0_i32_0 : i32, i32
  }
  func.func @transform_11(%arg0: i32, %arg1: i32) -> (i32, i32) {
    %c0_i32 = arith.constant 0 : i32
    %c0_i32_0 = arith.constant 0 : i32
    %c0_i32_1 = arith.constant 0 : i32
    return %c0_i32, %c0_i32_0 : i32, i32
  }
  func.func @transform_12(%arg0: i32, %arg1: i32) -> (i32, i32) {
    %c0_i32 = arith.constant 0 : i32
    %c0_i32_0 = arith.constant 0 : i32
    %c0_i32_1 = arith.constant 0 : i32
    return %c0_i32, %c0_i32_0 : i32, i32
  }
  func.func @transform_13(%arg0: i32, %arg1: i32) -> (i32, i32, i32) {
    %c0_i32 = arith.constant 0 : i32
    %c0_i32_0 = arith.constant 0 : i32
    %c0_i32_1 = arith.constant 0 : i32
    %c0_i32_2 = arith.constant 0 : i32
    return %c0_i32, %c0_i32_0, %c0_i32_1 : i32, i32, i32
  }
  func.func @transform_14(%arg0: i32, %arg1: i32) -> (i32, i32, i32) {
    %c0_i32 = arith.constant 0 : i32
    %c0_i32_0 = arith.constant 0 : i32
    %c0_i32_1 = arith.constant 0 : i32
    %c0_i32_2 = arith.constant 0 : i32
    return %c0_i32, %c0_i32_0, %c0_i32_1 : i32, i32, i32
  }
  func.func @transform_15(%arg0: i32, %arg1: i32) -> (i32, i32, i32) {
    %c0_i32 = arith.constant 0 : i32
    %c0_i32_0 = arith.constant 0 : i32
    %c0_i32_1 = arith.constant 0 : i32
    %c0_i32_2 = arith.constant 0 : i32
    return %c0_i32, %c0_i32_0, %c0_i32_1 : i32, i32, i32
  }
  func.func @transform_16(%arg0: i32, %arg1: i32) -> (i32, i32, i32) {
    %c0_i32 = arith.constant 0 : i32
    %c0_i32_0 = arith.constant 0 : i32
    %c0_i32_1 = arith.constant 0 : i32
    %c0_i32_2 = arith.constant 0 : i32
    return %c0_i32, %c0_i32_0, %c0_i32_1 : i32, i32, i32
  }
  func.func @transform_17(%arg0: i32, %arg1: i32) -> (i32, i32, i32) {
    %c0_i32 = arith.constant 0 : i32
    %c0_i32_0 = arith.constant 0 : i32
    %c0_i32_1 = arith.constant 0 : i32
    %c0_i32_2 = arith.constant 0 : i32
    return %c0_i32, %c0_i32_0, %c0_i32_1 : i32, i32, i32
  }
  func.func @transform_18(%arg0: i32, %arg1: i32) -> (i32, i32, i32) {
    %c0_i32 = arith.constant 0 : i32
    %c0_i32_0 = arith.constant 0 : i32
    %c0_i32_1 = arith.constant 0 : i32
    %c0_i32_2 = arith.constant 0 : i32
    return %c0_i32, %c0_i32_0, %c0_i32_1 : i32, i32, i32
  }
  func.func @transform_19(%arg0: i32, %arg1: i32) -> (i32, i32) {
    %c0_i32 = arith.constant 0 : i32
    %c0_i32_0 = arith.constant 0 : i32
    %c0_i32_1 = arith.constant 0 : i32
    return %c0_i32, %c0_i32_0 : i32, i32
  }
  func.func @transform_20(%arg0: i32, %arg1: i32) -> (i32, i32) {
    %c0_i32 = arith.constant 0 : i32
    %c0_i32_0 = arith.constant 0 : i32
    %c0_i32_1 = arith.constant 0 : i32
    return %c0_i32, %c0_i32_0 : i32, i32
  }
  func.func @transform_21(%arg0: i32, %arg1: i32) -> (i32, i32) {
    %c0_i32 = arith.constant 0 : i32
    %c0_i32_0 = arith.constant 0 : i32
    %c0_i32_1 = arith.constant 0 : i32
    return %c0_i32, %c0_i32_0 : i32, i32
  }
  func.func @transform_22(%arg0: i32, %arg1: i32) -> (i32, i32) {
    %c0_i32 = arith.constant 0 : i32
    %c0_i32_0 = arith.constant 0 : i32
    %c0_i32_1 = arith.constant 0 : i32
    return %c0_i32, %c0_i32_0 : i32, i32
  }
  func.func @transform_23(%arg0: i32, %arg1: i32) -> (i32, i32) {
    %c0_i32 = arith.constant 0 : i32
    %c0_i32_0 = arith.constant 0 : i32
    %c0_i32_1 = arith.constant 0 : i32
    return %c0_i32, %c0_i32_0 : i32, i32
  }
  func.func @transform_24(%arg0: i32, %arg1: i32) -> (i32, i32) {
    %c0_i32 = arith.constant 0 : i32
    %c0_i32_0 = arith.constant 0 : i32
    %c0_i32_1 = arith.constant 0 : i32
    return %c0_i32, %c0_i32_0 : i32, i32
  }
  func.func @transform_25(%arg0: i32, %arg1: i32) -> (i32, i32) {
    %c0_i32 = arith.constant 0 : i32
    %c0_i32_0 = arith.constant 0 : i32
    %c0_i32_1 = arith.constant 0 : i32
    return %c0_i32, %c0_i32_0 : i32, i32
  }
  func.func @transform_26(%arg0: i32, %arg1: i32) -> (i32, i32) {
    %c0_i32 = arith.constant 0 : i32
    %c0_i32_0 = arith.constant 0 : i32
    %c0_i32_1 = arith.constant 0 : i32
    return %c0_i32, %c0_i32_0 : i32, i32
  }
  func.func @transform_27(%arg0: i32, %arg1: i32) -> (i32, i32) {
    %c0_i32 = arith.constant 0 : i32
    %c0_i32_0 = arith.constant 0 : i32
    %c0_i32_1 = arith.constant 0 : i32
    return %c0_i32, %c0_i32_0 : i32, i32
  }
  func.func @transform_28(%arg0: i32, %arg1: i32) -> (i32, i32) {
    %c0_i32 = arith.constant 0 : i32
    %c0_i32_0 = arith.constant 0 : i32
    %c0_i32_1 = arith.constant 0 : i32
    return %c0_i32, %c0_i32_0 : i32, i32
  }
  func.func @transform_29(%arg0: i32, %arg1: i32) -> (i32, i32) {
    %c0_i32 = arith.constant 0 : i32
    %c0_i32_0 = arith.constant 0 : i32
    %c0_i32_1 = arith.constant 0 : i32
    return %c0_i32, %c0_i32_0 : i32, i32
  }
  func.func @transform_30(%arg0: i32, %arg1: i32) -> (i32, i32) {
    %c0_i32 = arith.constant 0 : i32
    %c0_i32_0 = arith.constant 0 : i32
    %c0_i32_1 = arith.constant 0 : i32
    return %c0_i32, %c0_i32_0 : i32, i32
  }
  func.func @transform_31(%arg0: i32, %arg1: i32) -> (i32, i32) {
    %c0_i32 = arith.constant 0 : i32
    %c0_i32_0 = arith.constant 0 : i32
    %c0_i32_1 = arith.constant 0 : i32
    return %c0_i32, %c0_i32_0 : i32, i32
  }
  func.func @transform_32(%arg0: i32, %arg1: i32) -> (i32, i32) {
    %c0_i32 = arith.constant 0 : i32
    %c0_i32_0 = arith.constant 0 : i32
    %c0_i32_1 = arith.constant 0 : i32
    return %c0_i32, %c0_i32_0 : i32, i32
  }
  func.func @transform_33(%arg0: i32, %arg1: i32) -> (i32, i32, i32, i32) {
    %c0_i32 = arith.constant 0 : i32
    %c0_i32_0 = arith.constant 0 : i32
    %c0_i32_1 = arith.constant 0 : i32
    %c0_i32_2 = arith.constant 0 : i32
    return %c0_i32, %arg0, %c0_i32_0, %c0_i32_1 : i32, i32, i32, i32
  }
}

module attributes {stable_mosaic.version = 11 : i64} {
  func.func @kernel(%arg0: i32, %arg1: i32, %arg2: memref<5x1x4x4xf32, #tpu.memory_space<vmem>>, %arg3: memref<1x12x4xf32, #tpu.memory_space<vmem>>, %arg4: memref<1x12x4xf32, #tpu.memory_space<vmem>>, %arg5: memref<1x4x12xf32, #tpu.memory_space<vmem>>, %arg6: memref<1x12x32xf32, #tpu.memory_space<vmem>>, %arg7: memref<4x20xf32, #tpu.memory_space<vmem>>, %arg8: memref<1x20xf32, #tpu.memory_space<vmem>>, %arg9: memref<20x32xf32, #tpu.memory_space<vmem>>, %arg10: memref<20x32xf32, #tpu.memory_space<vmem>>, %arg11: memref<1x32xf32, #tpu.memory_space<vmem>>, %arg12: memref<32x32xf32, #tpu.memory_space<vmem>>, %arg13: memref<1x32xf32, #tpu.memory_space<vmem>>, %arg14: memref<32x16xf32, #tpu.memory_space<vmem>>, %arg15: memref<3x16x16xf32, #tpu.memory_space<vmem>>, %arg16: memref<3x1x16xf32, #tpu.memory_space<vmem>>, %arg17: memref<3x16x16xf32, #tpu.memory_space<vmem>>, %arg18: memref<3x20x20xf32, #tpu.memory_space<vmem>>, %arg19: memref<3x1x20xf32, #tpu.memory_space<vmem>>, %arg20: memref<3x20x20xf32, #tpu.memory_space<vmem>>, %arg21: memref<20x16xf32, #tpu.memory_space<vmem>>, %arg22: memref<1x16xf32, #tpu.memory_space<vmem>>, %arg23: memref<16x16xf32, #tpu.memory_space<vmem>>, %arg24: memref<1x16xf32, #tpu.memory_space<vmem>>, %arg25: memref<16x4xf32, #tpu.memory_space<vmem>>, %arg26: memref<1x4xf32, #tpu.memory_space<vmem>>, %arg27: memref<20x8xf32, #tpu.memory_space<vmem>>, %arg28: memref<1x8xf32, #tpu.memory_space<vmem>>, %arg29: memref<20x8xf32, #tpu.memory_space<vmem>>, %arg30: memref<1x8xf32, #tpu.memory_space<vmem>>, %arg31: memref<20x8xf32, #tpu.memory_space<vmem>>, %arg32: memref<1x8xf32, #tpu.memory_space<vmem>>, %arg33: memref<8x20xf32, #tpu.memory_space<vmem>>, %arg34: memref<1x20xf32, #tpu.memory_space<vmem>>, %arg35: memref<5x1x4x4xf32, #tpu.memory_space<vmem>>, %arg36: memref<4x20xf32, #tpu.memory_space<vmem>>, %arg37: memref<12x16xf32, #tpu.memory_space<vmem>>, %arg38: memref<5x4x8xf32, #tpu.memory_space<vmem>>, %arg39: memref<5x4x8xf32, #tpu.memory_space<vmem>>, %arg40: memref<4x4xf32, #tpu.memory_space<vmem>>) attributes {dimension_semantics = [#tpu.dimension_semantics<parallel>, #tpu.dimension_semantics<arbitrary>], iteration_bounds = array<i64: 2, 5>, scalar_prefetch = 0 : i64, scratch_operands = 5 : i64, tpu.core_type = #tpu.core_type<tc>, window_params = [{transform_indices = @transform_0, window_bounds = array<i64: 5, 1, 4, 4>}, {transform_indices = @transform_1, window_bounds = array<i64: 1, 12, 4>}, {transform_indices = @transform_2, window_bounds = array<i64: 1, 12, 4>}, {transform_indices = @transform_3, window_bounds = array<i64: 1, 4, 12>}, {transform_indices = @transform_4, window_bounds = array<i64: 1, 12, 32>}, {pipeline_mode = #tpu.pipeline_mode<synchronous>, transform_indices = @transform_5, window_bounds = array<i64: 4, 20>}, {pipeline_mode = #tpu.pipeline_mode<synchronous>, transform_indices = @transform_6, window_bounds = array<i64: 1, 20>}, {pipeline_mode = #tpu.pipeline_mode<synchronous>, transform_indices = @transform_7, window_bounds = array<i64: 20, 32>}, {pipeline_mode = #tpu.pipeline_mode<synchronous>, transform_indices = @transform_8, window_bounds = array<i64: 20, 32>}, {pipeline_mode = #tpu.pipeline_mode<synchronous>, transform_indices = @transform_9, window_bounds = array<i64: 1, 32>}, {pipeline_mode = #tpu.pipeline_mode<synchronous>, transform_indices = @transform_10, window_bounds = array<i64: 32, 32>}, {pipeline_mode = #tpu.pipeline_mode<synchronous>, transform_indices = @transform_11, window_bounds = array<i64: 1, 32>}, {pipeline_mode = #tpu.pipeline_mode<synchronous>, transform_indices = @transform_12, window_bounds = array<i64: 32, 16>}, {pipeline_mode = #tpu.pipeline_mode<synchronous>, transform_indices = @transform_13, window_bounds = array<i64: 3, 16, 16>}, {pipeline_mode = #tpu.pipeline_mode<synchronous>, transform_indices = @transform_14, window_bounds = array<i64: 3, 1, 16>}, {pipeline_mode = #tpu.pipeline_mode<synchronous>, transform_indices = @transform_15, window_bounds = array<i64: 3, 16, 16>}, {pipeline_mode = #tpu.pipeline_mode<synchronous>, transform_indices = @transform_16, window_bounds = array<i64: 3, 20, 20>}, {pipeline_mode = #tpu.pipeline_mode<synchronous>, transform_indices = @transform_17, window_bounds = array<i64: 3, 1, 20>}, {pipeline_mode = #tpu.pipeline_mode<synchronous>, transform_indices = @transform_18, window_bounds = array<i64: 3, 20, 20>}, {pipeline_mode = #tpu.pipeline_mode<synchronous>, transform_indices = @transform_19, window_bounds = array<i64: 20, 16>}, {pipeline_mode = #tpu.pipeline_mode<synchronous>, transform_indices = @transform_20, window_bounds = array<i64: 1, 16>}, {pipeline_mode = #tpu.pipeline_mode<synchronous>, transform_indices = @transform_21, window_bounds = array<i64: 16, 16>}, {pipeline_mode = #tpu.pipeline_mode<synchronous>, transform_indices = @transform_22, window_bounds = array<i64: 1, 16>}, {pipeline_mode = #tpu.pipeline_mode<synchronous>, transform_indices = @transform_23, window_bounds = array<i64: 16, 4>}, {pipeline_mode = #tpu.pipeline_mode<synchronous>, transform_indices = @transform_24, window_bounds = array<i64: 1, 4>}, {pipeline_mode = #tpu.pipeline_mode<synchronous>, transform_indices = @transform_25, window_bounds = array<i64: 20, 8>}, {pipeline_mode = #tpu.pipeline_mode<synchronous>, transform_indices = @transform_26, window_bounds = array<i64: 1, 8>}, {pipeline_mode = #tpu.pipeline_mode<synchronous>, transform_indices = @transform_27, window_bounds = array<i64: 20, 8>}, {pipeline_mode = #tpu.pipeline_mode<synchronous>, transform_indices = @transform_28, window_bounds = array<i64: 1, 8>}, {pipeline_mode = #tpu.pipeline_mode<synchronous>, transform_indices = @transform_29, window_bounds = array<i64: 20, 8>}, {pipeline_mode = #tpu.pipeline_mode<synchronous>, transform_indices = @transform_30, window_bounds = array<i64: 1, 8>}, {pipeline_mode = #tpu.pipeline_mode<synchronous>, transform_indices = @transform_31, window_bounds = array<i64: 8, 20>}, {pipeline_mode = #tpu.pipeline_mode<synchronous>, transform_indices = @transform_32, window_bounds = array<i64: 1, 20>}, {transform_indices = @transform_33, window_bounds = array<i64: 5, 1, 4, 4>}]} {
    %0 = arith.index_cast %arg1 : i32 to index
    %c0 = arith.constant 0 : index
    %c0_0 = arith.constant 0 : index
    %c0_1 = arith.constant 0 : index
    %1 = vector.load %arg2[%0, %c0, %c0_0, %c0_1] : memref<5x1x4x4xf32, #tpu.memory_space<vmem>>, vector<1x1x4x4xf32>
    %2 = vector.shape_cast %1 : vector<1x1x4x4xf32> to vector<1x4x4xf32>
    %3 = vector.shape_cast %2 : vector<1x4x4xf32> to vector<4x4xf32>
    %c0_2 = arith.constant 0 : index
    %c0_3 = arith.constant 0 : index
    %4 = vector.load %arg7[%c0_2, %c0_3] : memref<4x20xf32, #tpu.memory_space<vmem>>, vector<4x20xf32>
    %cst = arith.constant dense<0.000000e+00> : vector<4x20xf32>
    %5 = tpu.matmul %3, %4, %cst {dimension_numbers = #tpu.dot_dimension_numbers<[1], [0], [0], [1], [0, 0, 1, 1], [], []>} : vector<4x4xf32>, vector<4x20xf32>, vector<4x20xf32> -> vector<4x20xf32>
    %c0_4 = arith.constant 0 : index
    %c0_5 = arith.constant 0 : index
    %6 = vector.load %arg8[%c0_4, %c0_5] : memref<1x20xf32, #tpu.memory_space<vmem>>, vector<1x20xf32>
    %7 = vector.broadcast %6 : vector<1x20xf32> to vector<4x20xf32>
    %8 = arith.addf %5, %7 : vector<4x20xf32>
    %c0_6 = arith.constant 0 : index
    %c0_7 = arith.constant 0 : index
    %c0_8 = arith.constant 0 : index
    %9 = vector.load %arg3[%c0_6, %c0_7, %c0_8] : memref<1x12x4xf32, #tpu.memory_space<vmem>>, vector<1x12x4xf32>
    %10 = vector.shape_cast %9 : vector<1x12x4xf32> to vector<12x4xf32>
    %cst_9 = arith.constant dense<0.000000e+00> : vector<12x20xf32>
    %11 = tpu.matmul %10, %8, %cst_9 {dimension_numbers = #tpu.dot_dimension_numbers<[1], [0], [0], [1], [0, 0, 1, 1], [], []>} : vector<12x4xf32>, vector<4x20xf32>, vector<12x20xf32> -> vector<12x20xf32>
    %c0_10 = arith.constant 0 : index
    %c0_11 = arith.constant 0 : index
    %c0_12 = arith.constant 0 : index
    %12 = vector.load %arg4[%c0_10, %c0_11, %c0_12] : memref<1x12x4xf32, #tpu.memory_space<vmem>>, vector<1x12x4xf32>
    %13 = vector.shape_cast %12 : vector<1x12x4xf32> to vector<12x4xf32>
    %cst_13 = arith.constant dense<0.000000e+00> : vector<12x20xf32>
    %14 = tpu.matmul %13, %8, %cst_13 {dimension_numbers = #tpu.dot_dimension_numbers<[1], [0], [0], [1], [0, 0, 1, 1], [], []>} : vector<12x4xf32>, vector<4x20xf32>, vector<12x20xf32> -> vector<12x20xf32>
    %c0_14 = arith.constant 0 : index
    %c0_15 = arith.constant 0 : index
    %15 = vector.load %arg9[%c0_14, %c0_15] : memref<20x32xf32, #tpu.memory_space<vmem>>, vector<20x32xf32>
    %cst_16 = arith.constant dense<0.000000e+00> : vector<12x32xf32>
    %16 = tpu.matmul %11, %15, %cst_16 {dimension_numbers = #tpu.dot_dimension_numbers<[1], [0], [0], [1], [0, 0, 1, 1], [], []>} : vector<12x20xf32>, vector<20x32xf32>, vector<12x32xf32> -> vector<12x32xf32>
    %c0_17 = arith.constant 0 : index
    %c0_18 = arith.constant 0 : index
    %17 = vector.load %arg10[%c0_17, %c0_18] : memref<20x32xf32, #tpu.memory_space<vmem>>, vector<20x32xf32>
    %cst_19 = arith.constant dense<0.000000e+00> : vector<12x32xf32>
    %18 = tpu.matmul %14, %17, %cst_19 {dimension_numbers = #tpu.dot_dimension_numbers<[1], [0], [0], [1], [0, 0, 1, 1], [], []>} : vector<12x20xf32>, vector<20x32xf32>, vector<12x32xf32> -> vector<12x32xf32>
    %19 = arith.addf %16, %18 : vector<12x32xf32>
    %c0_20 = arith.constant 0 : index
    %c0_21 = arith.constant 0 : index
    %20 = vector.load %arg11[%c0_20, %c0_21] : memref<1x32xf32, #tpu.memory_space<vmem>>, vector<1x32xf32>
    %21 = vector.broadcast %20 : vector<1x32xf32> to vector<12x32xf32>
    %22 = arith.addf %19, %21 : vector<12x32xf32>
    %23 = math.tanh %22 : vector<12x32xf32>
    %c0_22 = arith.constant 0 : index
    %c0_23 = arith.constant 0 : index
    %24 = vector.load %arg12[%c0_22, %c0_23] : memref<32x32xf32, #tpu.memory_space<vmem>>, vector<32x32xf32>
    %cst_24 = arith.constant dense<0.000000e+00> : vector<12x32xf32>
    %25 = tpu.matmul %23, %24, %cst_24 {dimension_numbers = #tpu.dot_dimension_numbers<[1], [0], [0], [1], [0, 0, 1, 1], [], []>} : vector<12x32xf32>, vector<32x32xf32>, vector<12x32xf32> -> vector<12x32xf32>
    %c0_25 = arith.constant 0 : index
    %c0_26 = arith.constant 0 : index
    %26 = vector.load %arg13[%c0_25, %c0_26] : memref<1x32xf32, #tpu.memory_space<vmem>>, vector<1x32xf32>
    %27 = vector.broadcast %26 : vector<1x32xf32> to vector<12x32xf32>
    %28 = arith.addf %25, %27 : vector<12x32xf32>
    %29 = math.tanh %28 : vector<12x32xf32>
    %c0_27 = arith.constant 0 : index
    %c0_28 = arith.constant 0 : index
    %c0_29 = arith.constant 0 : index
    %30 = vector.load %arg6[%c0_27, %c0_28, %c0_29] : memref<1x12x32xf32, #tpu.memory_space<vmem>>, vector<1x12x32xf32>
    %31 = vector.shape_cast %30 : vector<1x12x32xf32> to vector<12x32xf32>
    %32 = arith.mulf %29, %31 : vector<12x32xf32>
    %c0_30 = arith.constant 0 : index
    %c0_31 = arith.constant 0 : index
    %33 = vector.load %arg14[%c0_30, %c0_31] : memref<32x16xf32, #tpu.memory_space<vmem>>, vector<32x16xf32>
    %cst_32 = arith.constant dense<0.000000e+00> : vector<12x16xf32>
    %34 = tpu.matmul %32, %33, %cst_32 {dimension_numbers = #tpu.dot_dimension_numbers<[1], [0], [0], [1], [0, 0, 1, 1], [], []>} : vector<12x32xf32>, vector<32x16xf32>, vector<12x16xf32> -> vector<12x16xf32>
    %c0_i32 = arith.constant 0 : i32
    %35 = arith.cmpi eq, %arg1, %c0_i32 : i32
    %36 = arith.extui %35 : i1 to i32
    %c0_i32_33 = arith.constant 0 : i32
    %37 = arith.cmpi ne, %36, %c0_i32_33 : i32
    scf.if %37 {
      %c0_36 = arith.constant 0 : index
      %c0_37 = arith.constant 0 : index
      %c0_38 = arith.constant 0 : index
      %41 = vector.load %arg5[%c0_36, %c0_37, %c0_38] : memref<1x4x12xf32, #tpu.memory_space<vmem>>, vector<1x4x12xf32>
      %42 = vector.shape_cast %41 : vector<1x4x12xf32> to vector<4x12xf32>
      %cst_39 = arith.constant dense<0.000000e+00> : vector<4x16xf32>
      %43 = tpu.matmul %42, %34, %cst_39 {dimension_numbers = #tpu.dot_dimension_numbers<[1], [0], [0], [1], [0, 0, 1, 1], [], []>} : vector<4x12xf32>, vector<12x16xf32>, vector<4x16xf32> -> vector<4x16xf32>
      %44 = tpu.concatenate %3, %43 in 1 : vector<4x4xf32>, vector<4x16xf32> -> vector<4x20xf32>
      %c0_40 = arith.constant 0 : index
      %c0_41 = arith.constant 0 : index
      %45 = vector.load %arg37[%c0_40, %c0_41] : memref<12x16xf32, #tpu.memory_space<vmem>>, vector<12x16xf32>
      tpu.vector_store %arg37[%c0_40, %c0_41], %34 {strides = array<i32>} : memref<12x16xf32, #tpu.memory_space<vmem>>, vector<12x16xf32>,
      %c0_42 = arith.constant 0 : index
      %c0_43 = arith.constant 0 : index
      %46 = vector.load %arg36[%c0_42, %c0_43] : memref<4x20xf32, #tpu.memory_space<vmem>>, vector<4x20xf32>
      tpu.vector_store %arg36[%c0_42, %c0_43], %44 {strides = array<i32>} : memref<4x20xf32, #tpu.memory_space<vmem>>, vector<4x20xf32>,
      %cst_44 = arith.constant 0.000000e+00 : f32
      %47 = vector.broadcast %cst_44 : f32 to vector<5x4x8xf32>
      %c0_45 = arith.constant 0 : index
      %c0_46 = arith.constant 0 : index
      %c0_47 = arith.constant 0 : index
      %48 = vector.load %arg38[%c0_45, %c0_46, %c0_47] : memref<5x4x8xf32, #tpu.memory_space<vmem>>, vector<5x4x8xf32>
      tpu.vector_store %arg38[%c0_45, %c0_46, %c0_47], %47 {strides = array<i32>} : memref<5x4x8xf32, #tpu.memory_space<vmem>>, vector<5x4x8xf32>,
      %cst_48 = arith.constant 0.000000e+00 : f32
      %49 = vector.broadcast %cst_48 : f32 to vector<5x4x8xf32>
      %c0_49 = arith.constant 0 : index
      %c0_50 = arith.constant 0 : index
      %c0_51 = arith.constant 0 : index
      %50 = vector.load %arg39[%c0_49, %c0_50, %c0_51] : memref<5x4x8xf32, #tpu.memory_space<vmem>>, vector<5x4x8xf32>
      tpu.vector_store %arg39[%c0_49, %c0_50, %c0_51], %49 {strides = array<i32>} : memref<5x4x8xf32, #tpu.memory_space<vmem>>, vector<5x4x8xf32>,
      %c0_52 = arith.constant 0 : index
      %c0_53 = arith.constant 0 : index
      %51 = vector.load %arg29[%c0_52, %c0_53] : memref<20x8xf32, #tpu.memory_space<vmem>>, vector<20x8xf32>
      %cst_54 = arith.constant dense<0.000000e+00> : vector<4x8xf32>
      %52 = tpu.matmul %44, %51, %cst_54 {dimension_numbers = #tpu.dot_dimension_numbers<[1], [0], [0], [1], [0, 0, 1, 1], [], []>} : vector<4x20xf32>, vector<20x8xf32>, vector<4x8xf32> -> vector<4x8xf32>
      %c0_55 = arith.constant 0 : index
      %c0_56 = arith.constant 0 : index
      %53 = vector.load %arg30[%c0_55, %c0_56] : memref<1x8xf32, #tpu.memory_space<vmem>>, vector<1x8xf32>
      %54 = vector.broadcast %53 : vector<1x8xf32> to vector<4x8xf32>
      %55 = arith.addf %52, %54 : vector<4x8xf32>
      %cst_57 = arith.constant 0.000000e+00 : f32
      %56 = vector.broadcast %cst_57 : f32 to vector<4x8xf32>
      %57 = arith.maximumf %55, %56 : vector<4x8xf32>
      %c0_58 = arith.constant 0 : index
      %c0_59 = arith.constant 0 : index
      %58 = vector.load %arg31[%c0_58, %c0_59] : memref<20x8xf32, #tpu.memory_space<vmem>>, vector<20x8xf32>
      %cst_60 = arith.constant dense<0.000000e+00> : vector<4x8xf32>
      %59 = tpu.matmul %44, %58, %cst_60 {dimension_numbers = #tpu.dot_dimension_numbers<[1], [0], [0], [1], [0, 0, 1, 1], [], []>} : vector<4x20xf32>, vector<20x8xf32>, vector<4x8xf32> -> vector<4x8xf32>
      %c0_61 = arith.constant 0 : index
      %c0_62 = arith.constant 0 : index
      %60 = vector.load %arg32[%c0_61, %c0_62] : memref<1x8xf32, #tpu.memory_space<vmem>>, vector<1x8xf32>
      %61 = vector.broadcast %60 : vector<1x8xf32> to vector<4x8xf32>
      %62 = arith.addf %59, %61 : vector<4x8xf32>
      %cst_63 = arith.constant 0.000000e+00 : f32
      %63 = vector.broadcast %cst_63 : f32 to vector<4x8xf32>
      %64 = arith.maximumf %62, %63 : vector<4x8xf32>
      %c0_64 = arith.constant 0 : index
      %c0_65 = arith.constant 0 : index
      %c0_66 = arith.constant 0 : index
      %65 = vector.load %arg38[%c0_64, %c0_65, %c0_66] : memref<5x4x8xf32, #tpu.memory_space<vmem>>, vector<1x4x8xf32>
      %66 = vector.shape_cast %65 : vector<1x4x8xf32> to vector<4x8xf32>
      %67 = vector.shape_cast %57 : vector<4x8xf32> to vector<1x4x8xf32>
      tpu.vector_store %arg38[%c0_64, %c0_65, %c0_66], %67 {strides = array<i32>} : memref<5x4x8xf32, #tpu.memory_space<vmem>>, vector<1x4x8xf32>,
      %c0_67 = arith.constant 0 : index
      %c0_68 = arith.constant 0 : index
      %c0_69 = arith.constant 0 : index
      %68 = vector.load %arg39[%c0_67, %c0_68, %c0_69] : memref<5x4x8xf32, #tpu.memory_space<vmem>>, vector<1x4x8xf32>
      %69 = vector.shape_cast %68 : vector<1x4x8xf32> to vector<4x8xf32>
      %70 = vector.shape_cast %64 : vector<4x8xf32> to vector<1x4x8xf32>
      tpu.vector_store %arg39[%c0_67, %c0_68, %c0_69], %70 {strides = array<i32>} : memref<5x4x8xf32, #tpu.memory_space<vmem>>, vector<1x4x8xf32>,
      %c0_70 = arith.constant 0 : index
      %c0_71 = arith.constant 0 : index
      %71 = vector.load %arg21[%c0_70, %c0_71] : memref<20x16xf32, #tpu.memory_space<vmem>>, vector<20x16xf32>
      %cst_72 = arith.constant dense<0.000000e+00> : vector<4x16xf32>
      %72 = tpu.matmul %44, %71, %cst_72 {dimension_numbers = #tpu.dot_dimension_numbers<[1], [0], [0], [1], [0, 0, 1, 1], [], []>} : vector<4x20xf32>, vector<20x16xf32>, vector<4x16xf32> -> vector<4x16xf32>
      %c0_73 = arith.constant 0 : index
      %c0_74 = arith.constant 0 : index
      %73 = vector.load %arg22[%c0_73, %c0_74] : memref<1x16xf32, #tpu.memory_space<vmem>>, vector<1x16xf32>
      %74 = vector.broadcast %73 : vector<1x16xf32> to vector<4x16xf32>
      %75 = arith.addf %72, %74 : vector<4x16xf32>
      %cst_75 = arith.constant 0.000000e+00 : f32
      %76 = vector.broadcast %cst_75 : f32 to vector<4x16xf32>
      %77 = arith.maximumf %75, %76 : vector<4x16xf32>
      %c0_76 = arith.constant 0 : index
      %c0_77 = arith.constant 0 : index
      %78 = vector.load %arg23[%c0_76, %c0_77] : memref<16x16xf32, #tpu.memory_space<vmem>>, vector<16x16xf32>
      %cst_78 = arith.constant dense<0.000000e+00> : vector<4x16xf32>
      %79 = tpu.matmul %77, %78, %cst_78 {dimension_numbers = #tpu.dot_dimension_numbers<[1], [0], [0], [1], [0, 0, 1, 1], [], []>} : vector<4x16xf32>, vector<16x16xf32>, vector<4x16xf32> -> vector<4x16xf32>
      %c0_79 = arith.constant 0 : index
      %c0_80 = arith.constant 0 : index
      %80 = vector.load %arg24[%c0_79, %c0_80] : memref<1x16xf32, #tpu.memory_space<vmem>>, vector<1x16xf32>
      %81 = vector.broadcast %80 : vector<1x16xf32> to vector<4x16xf32>
      %82 = arith.addf %79, %81 : vector<4x16xf32>
      %cst_81 = arith.constant 0.000000e+00 : f32
      %83 = vector.broadcast %cst_81 : f32 to vector<4x16xf32>
      %84 = arith.maximumf %82, %83 : vector<4x16xf32>
      %c0_82 = arith.constant 0 : index
      %c0_83 = arith.constant 0 : index
      %85 = vector.load %arg25[%c0_82, %c0_83] : memref<16x4xf32, #tpu.memory_space<vmem>>, vector<16x4xf32>
      %cst_84 = arith.constant dense<0.000000e+00> : vector<4x4xf32>
      %86 = tpu.matmul %84, %85, %cst_84 {dimension_numbers = #tpu.dot_dimension_numbers<[1], [0], [0], [1], [0, 0, 1, 1], [], []>} : vector<4x16xf32>, vector<16x4xf32>, vector<4x4xf32> -> vector<4x4xf32>
      %c0_85 = arith.constant 0 : index
      %c0_86 = arith.constant 0 : index
      %87 = vector.load %arg26[%c0_85, %c0_86] : memref<1x4xf32, #tpu.memory_space<vmem>>, vector<1x4xf32>
      %88 = vector.broadcast %87 : vector<1x4xf32> to vector<4x4xf32>
      %89 = arith.addf %86, %88 : vector<4x4xf32>
      %90 = arith.addf %3, %89 : vector<4x4xf32>
      %91 = vector.shape_cast %90 : vector<4x4xf32> to vector<1x4x4xf32>
      %92 = arith.index_cast %arg1 : i32 to index
      %c0_87 = arith.constant 0 : index
      %c0_88 = arith.constant 0 : index
      %c0_89 = arith.constant 0 : index
      %93 = vector.load %arg35[%92, %c0_87, %c0_88, %c0_89] : memref<5x1x4x4xf32, #tpu.memory_space<vmem>>, vector<1x1x4x4xf32>
      %94 = vector.shape_cast %93 : vector<1x1x4x4xf32> to vector<1x4x4xf32>
      %95 = vector.shape_cast %91 : vector<1x4x4xf32> to vector<1x1x4x4xf32>
      tpu.vector_store %arg35[%92, %c0_87, %c0_88, %c0_89], %95 {strides = array<i32>} : memref<5x1x4x4xf32, #tpu.memory_space<vmem>>, vector<1x1x4x4xf32>,
    } else {
    }
    %c0_i32_34 = arith.constant 0 : i32
    %38 = arith.cmpi sgt, %arg1, %c0_i32_34 : i32
    %39 = arith.extui %38 : i1 to i32
    %c0_i32_35 = arith.constant 0 : i32
    %40 = arith.cmpi ne, %39, %c0_i32_35 : i32
    scf.if %40 {
      %c0_36 = arith.constant 0 : index
      %c0_37 = arith.constant 0 : index
      %41 = vector.load %arg37[%c0_36, %c0_37] : memref<12x16xf32, #tpu.memory_space<vmem>>, vector<12x16xf32>
      %c0_38 = arith.constant 0 : index
      %c0_39 = arith.constant 0 : index
      %c0_40 = arith.constant 0 : index
      %42 = vector.load %arg15[%c0_38, %c0_39, %c0_40] : memref<3x16x16xf32, #tpu.memory_space<vmem>>, vector<1x16x16xf32>
      %43 = vector.shape_cast %42 : vector<1x16x16xf32> to vector<16x16xf32>
      %cst_41 = arith.constant dense<0.000000e+00> : vector<12x16xf32>
      %44 = tpu.matmul %34, %43, %cst_41 {dimension_numbers = #tpu.dot_dimension_numbers<[1], [0], [0], [1], [0, 0, 1, 1], [], []>} : vector<12x16xf32>, vector<16x16xf32>, vector<12x16xf32> -> vector<12x16xf32>
      %c0_42 = arith.constant 0 : index
      %c0_43 = arith.constant 0 : index
      %c0_44 = arith.constant 0 : index
      %45 = vector.load %arg16[%c0_42, %c0_43, %c0_44] : memref<3x1x16xf32, #tpu.memory_space<vmem>>, vector<1x1x16xf32>
      %46 = vector.shape_cast %45 : vector<1x1x16xf32> to vector<1x16xf32>
      %47 = vector.broadcast %46 : vector<1x16xf32> to vector<12x16xf32>
      %48 = arith.addf %44, %47 : vector<12x16xf32>
      %c0_45 = arith.constant 0 : index
      %c0_46 = arith.constant 0 : index
      %c0_47 = arith.constant 0 : index
      %49 = vector.load %arg17[%c0_45, %c0_46, %c0_47] : memref<3x16x16xf32, #tpu.memory_space<vmem>>, vector<1x16x16xf32>
      %50 = vector.shape_cast %49 : vector<1x16x16xf32> to vector<16x16xf32>
      %cst_48 = arith.constant dense<0.000000e+00> : vector<12x16xf32>
      %51 = tpu.matmul %41, %50, %cst_48 {dimension_numbers = #tpu.dot_dimension_numbers<[1], [0], [0], [1], [0, 0, 1, 1], [], []>} : vector<12x16xf32>, vector<16x16xf32>, vector<12x16xf32> -> vector<12x16xf32>
      %52 = arith.addf %48, %51 : vector<12x16xf32>
      %53 = arith.negf %52 : vector<12x16xf32>
      %54 = math.exp %53 : vector<12x16xf32>
      %cst_49 = arith.constant 1.000000e+00 : f32
      %55 = vector.broadcast %cst_49 : f32 to vector<12x16xf32>
      %56 = arith.addf %55, %54 : vector<12x16xf32>
      %57 = arith.divf %55, %56 : vector<12x16xf32>
      %c1 = arith.constant 1 : index
      %c0_50 = arith.constant 0 : index
      %c0_51 = arith.constant 0 : index
      %58 = vector.load %arg15[%c1, %c0_50, %c0_51] : memref<3x16x16xf32, #tpu.memory_space<vmem>>, vector<1x16x16xf32>
      %59 = vector.shape_cast %58 : vector<1x16x16xf32> to vector<16x16xf32>
      %cst_52 = arith.constant dense<0.000000e+00> : vector<12x16xf32>
      %60 = tpu.matmul %34, %59, %cst_52 {dimension_numbers = #tpu.dot_dimension_numbers<[1], [0], [0], [1], [0, 0, 1, 1], [], []>} : vector<12x16xf32>, vector<16x16xf32>, vector<12x16xf32> -> vector<12x16xf32>
      %c1_53 = arith.constant 1 : index
      %c0_54 = arith.constant 0 : index
      %c0_55 = arith.constant 0 : index
      %61 = vector.load %arg16[%c1_53, %c0_54, %c0_55] : memref<3x1x16xf32, #tpu.memory_space<vmem>>, vector<1x1x16xf32>
      %62 = vector.shape_cast %61 : vector<1x1x16xf32> to vector<1x16xf32>
      %63 = vector.broadcast %62 : vector<1x16xf32> to vector<12x16xf32>
      %64 = arith.addf %60, %63 : vector<12x16xf32>
      %c1_56 = arith.constant 1 : index
      %c0_57 = arith.constant 0 : index
      %c0_58 = arith.constant 0 : index
      %65 = vector.load %arg17[%c1_56, %c0_57, %c0_58] : memref<3x16x16xf32, #tpu.memory_space<vmem>>, vector<1x16x16xf32>
      %66 = vector.shape_cast %65 : vector<1x16x16xf32> to vector<16x16xf32>
      %cst_59 = arith.constant dense<0.000000e+00> : vector<12x16xf32>
      %67 = tpu.matmul %41, %66, %cst_59 {dimension_numbers = #tpu.dot_dimension_numbers<[1], [0], [0], [1], [0, 0, 1, 1], [], []>} : vector<12x16xf32>, vector<16x16xf32>, vector<12x16xf32> -> vector<12x16xf32>
      %68 = arith.addf %64, %67 : vector<12x16xf32>
      %69 = arith.negf %68 : vector<12x16xf32>
      %70 = math.exp %69 : vector<12x16xf32>
      %cst_60 = arith.constant 1.000000e+00 : f32
      %71 = vector.broadcast %cst_60 : f32 to vector<12x16xf32>
      %72 = arith.addf %71, %70 : vector<12x16xf32>
      %73 = arith.divf %71, %72 : vector<12x16xf32>
      %c2 = arith.constant 2 : index
      %c0_61 = arith.constant 0 : index
      %c0_62 = arith.constant 0 : index
      %74 = vector.load %arg15[%c2, %c0_61, %c0_62] : memref<3x16x16xf32, #tpu.memory_space<vmem>>, vector<1x16x16xf32>
      %75 = vector.shape_cast %74 : vector<1x16x16xf32> to vector<16x16xf32>
      %cst_63 = arith.constant dense<0.000000e+00> : vector<12x16xf32>
      %76 = tpu.matmul %34, %75, %cst_63 {dimension_numbers = #tpu.dot_dimension_numbers<[1], [0], [0], [1], [0, 0, 1, 1], [], []>} : vector<12x16xf32>, vector<16x16xf32>, vector<12x16xf32> -> vector<12x16xf32>
      %c2_64 = arith.constant 2 : index
      %c0_65 = arith.constant 0 : index
      %c0_66 = arith.constant 0 : index
      %77 = vector.load %arg16[%c2_64, %c0_65, %c0_66] : memref<3x1x16xf32, #tpu.memory_space<vmem>>, vector<1x1x16xf32>
      %78 = vector.shape_cast %77 : vector<1x1x16xf32> to vector<1x16xf32>
      %79 = vector.broadcast %78 : vector<1x16xf32> to vector<12x16xf32>
      %80 = arith.addf %76, %79 : vector<12x16xf32>
      %c2_67 = arith.constant 2 : index
      %c0_68 = arith.constant 0 : index
      %c0_69 = arith.constant 0 : index
      %81 = vector.load %arg17[%c2_67, %c0_68, %c0_69] : memref<3x16x16xf32, #tpu.memory_space<vmem>>, vector<1x16x16xf32>
      %82 = vector.shape_cast %81 : vector<1x16x16xf32> to vector<16x16xf32>
      %cst_70 = arith.constant dense<0.000000e+00> : vector<12x16xf32>
      %83 = tpu.matmul %41, %82, %cst_70 {dimension_numbers = #tpu.dot_dimension_numbers<[1], [0], [0], [1], [0, 0, 1, 1], [], []>} : vector<12x16xf32>, vector<16x16xf32>, vector<12x16xf32> -> vector<12x16xf32>
      %84 = arith.mulf %57, %83 : vector<12x16xf32>
      %85 = arith.addf %80, %84 : vector<12x16xf32>
      %86 = math.tanh %85 : vector<12x16xf32>
      %cst_71 = arith.constant 1.000000e+00 : f32
      %87 = vector.broadcast %cst_71 : f32 to vector<12x16xf32>
      %88 = arith.subf %87, %73 : vector<12x16xf32>
      %89 = arith.mulf %88, %86 : vector<12x16xf32>
      %90 = arith.mulf %73, %41 : vector<12x16xf32>
      %91 = arith.addf %89, %90 : vector<12x16xf32>
      %c0_72 = arith.constant 0 : index
      %c0_73 = arith.constant 0 : index
      %c0_74 = arith.constant 0 : index
      %92 = vector.load %arg5[%c0_72, %c0_73, %c0_74] : memref<1x4x12xf32, #tpu.memory_space<vmem>>, vector<1x4x12xf32>
      %93 = vector.shape_cast %92 : vector<1x4x12xf32> to vector<4x12xf32>
      %cst_75 = arith.constant dense<0.000000e+00> : vector<4x16xf32>
      %94 = tpu.matmul %93, %91, %cst_75 {dimension_numbers = #tpu.dot_dimension_numbers<[1], [0], [0], [1], [0, 0, 1, 1], [], []>} : vector<4x12xf32>, vector<12x16xf32>, vector<4x16xf32> -> vector<4x16xf32>
      %95 = tpu.concatenate %3, %94 in 1 : vector<4x4xf32>, vector<4x16xf32> -> vector<4x20xf32>
      %c0_76 = arith.constant 0 : index
      %c0_77 = arith.constant 0 : index
      %96 = vector.load %arg36[%c0_76, %c0_77] : memref<4x20xf32, #tpu.memory_space<vmem>>, vector<4x20xf32>
      %c0_78 = arith.constant 0 : index
      %c0_79 = arith.constant 0 : index
      %c0_80 = arith.constant 0 : index
      %97 = vector.load %arg18[%c0_78, %c0_79, %c0_80] : memref<3x20x20xf32, #tpu.memory_space<vmem>>, vector<1x20x20xf32>
      %98 = vector.shape_cast %97 : vector<1x20x20xf32> to vector<20x20xf32>
      %cst_81 = arith.constant dense<0.000000e+00> : vector<4x20xf32>
      %99 = tpu.matmul %95, %98, %cst_81 {dimension_numbers = #tpu.dot_dimension_numbers<[1], [0], [0], [1], [0, 0, 1, 1], [], []>} : vector<4x20xf32>, vector<20x20xf32>, vector<4x20xf32> -> vector<4x20xf32>
      %c0_82 = arith.constant 0 : index
      %c0_83 = arith.constant 0 : index
      %c0_84 = arith.constant 0 : index
      %100 = vector.load %arg19[%c0_82, %c0_83, %c0_84] : memref<3x1x20xf32, #tpu.memory_space<vmem>>, vector<1x1x20xf32>
      %101 = vector.shape_cast %100 : vector<1x1x20xf32> to vector<1x20xf32>
      %102 = vector.broadcast %101 : vector<1x20xf32> to vector<4x20xf32>
      %103 = arith.addf %99, %102 : vector<4x20xf32>
      %c0_85 = arith.constant 0 : index
      %c0_86 = arith.constant 0 : index
      %c0_87 = arith.constant 0 : index
      %104 = vector.load %arg20[%c0_85, %c0_86, %c0_87] : memref<3x20x20xf32, #tpu.memory_space<vmem>>, vector<1x20x20xf32>
      %105 = vector.shape_cast %104 : vector<1x20x20xf32> to vector<20x20xf32>
      %cst_88 = arith.constant dense<0.000000e+00> : vector<4x20xf32>
      %106 = tpu.matmul %96, %105, %cst_88 {dimension_numbers = #tpu.dot_dimension_numbers<[1], [0], [0], [1], [0, 0, 1, 1], [], []>} : vector<4x20xf32>, vector<20x20xf32>, vector<4x20xf32> -> vector<4x20xf32>
      %107 = arith.addf %103, %106 : vector<4x20xf32>
      %108 = arith.negf %107 : vector<4x20xf32>
      %109 = math.exp %108 : vector<4x20xf32>
      %cst_89 = arith.constant 1.000000e+00 : f32
      %110 = vector.broadcast %cst_89 : f32 to vector<4x20xf32>
      %111 = arith.addf %110, %109 : vector<4x20xf32>
      %112 = arith.divf %110, %111 : vector<4x20xf32>
      %c1_90 = arith.constant 1 : index
      %c0_91 = arith.constant 0 : index
      %c0_92 = arith.constant 0 : index
      %113 = vector.load %arg18[%c1_90, %c0_91, %c0_92] : memref<3x20x20xf32, #tpu.memory_space<vmem>>, vector<1x20x20xf32>
      %114 = vector.shape_cast %113 : vector<1x20x20xf32> to vector<20x20xf32>
      %cst_93 = arith.constant dense<0.000000e+00> : vector<4x20xf32>
      %115 = tpu.matmul %95, %114, %cst_93 {dimension_numbers = #tpu.dot_dimension_numbers<[1], [0], [0], [1], [0, 0, 1, 1], [], []>} : vector<4x20xf32>, vector<20x20xf32>, vector<4x20xf32> -> vector<4x20xf32>
      %c1_94 = arith.constant 1 : index
      %c0_95 = arith.constant 0 : index
      %c0_96 = arith.constant 0 : index
      %116 = vector.load %arg19[%c1_94, %c0_95, %c0_96] : memref<3x1x20xf32, #tpu.memory_space<vmem>>, vector<1x1x20xf32>
      %117 = vector.shape_cast %116 : vector<1x1x20xf32> to vector<1x20xf32>
      %118 = vector.broadcast %117 : vector<1x20xf32> to vector<4x20xf32>
      %119 = arith.addf %115, %118 : vector<4x20xf32>
      %c1_97 = arith.constant 1 : index
      %c0_98 = arith.constant 0 : index
      %c0_99 = arith.constant 0 : index
      %120 = vector.load %arg20[%c1_97, %c0_98, %c0_99] : memref<3x20x20xf32, #tpu.memory_space<vmem>>, vector<1x20x20xf32>
      %121 = vector.shape_cast %120 : vector<1x20x20xf32> to vector<20x20xf32>
      %cst_100 = arith.constant dense<0.000000e+00> : vector<4x20xf32>
      %122 = tpu.matmul %96, %121, %cst_100 {dimension_numbers = #tpu.dot_dimension_numbers<[1], [0], [0], [1], [0, 0, 1, 1], [], []>} : vector<4x20xf32>, vector<20x20xf32>, vector<4x20xf32> -> vector<4x20xf32>
      %123 = arith.addf %119, %122 : vector<4x20xf32>
      %124 = arith.negf %123 : vector<4x20xf32>
      %125 = math.exp %124 : vector<4x20xf32>
      %cst_101 = arith.constant 1.000000e+00 : f32
      %126 = vector.broadcast %cst_101 : f32 to vector<4x20xf32>
      %127 = arith.addf %126, %125 : vector<4x20xf32>
      %128 = arith.divf %126, %127 : vector<4x20xf32>
      %c2_102 = arith.constant 2 : index
      %c0_103 = arith.constant 0 : index
      %c0_104 = arith.constant 0 : index
      %129 = vector.load %arg18[%c2_102, %c0_103, %c0_104] : memref<3x20x20xf32, #tpu.memory_space<vmem>>, vector<1x20x20xf32>
      %130 = vector.shape_cast %129 : vector<1x20x20xf32> to vector<20x20xf32>
      %cst_105 = arith.constant dense<0.000000e+00> : vector<4x20xf32>
      %131 = tpu.matmul %95, %130, %cst_105 {dimension_numbers = #tpu.dot_dimension_numbers<[1], [0], [0], [1], [0, 0, 1, 1], [], []>} : vector<4x20xf32>, vector<20x20xf32>, vector<4x20xf32> -> vector<4x20xf32>
      %c2_106 = arith.constant 2 : index
      %c0_107 = arith.constant 0 : index
      %c0_108 = arith.constant 0 : index
      %132 = vector.load %arg19[%c2_106, %c0_107, %c0_108] : memref<3x1x20xf32, #tpu.memory_space<vmem>>, vector<1x1x20xf32>
      %133 = vector.shape_cast %132 : vector<1x1x20xf32> to vector<1x20xf32>
      %134 = vector.broadcast %133 : vector<1x20xf32> to vector<4x20xf32>
      %135 = arith.addf %131, %134 : vector<4x20xf32>
      %c2_109 = arith.constant 2 : index
      %c0_110 = arith.constant 0 : index
      %c0_111 = arith.constant 0 : index
      %136 = vector.load %arg20[%c2_109, %c0_110, %c0_111] : memref<3x20x20xf32, #tpu.memory_space<vmem>>, vector<1x20x20xf32>
      %137 = vector.shape_cast %136 : vector<1x20x20xf32> to vector<20x20xf32>
      %cst_112 = arith.constant dense<0.000000e+00> : vector<4x20xf32>
      %138 = tpu.matmul %96, %137, %cst_112 {dimension_numbers = #tpu.dot_dimension_numbers<[1], [0], [0], [1], [0, 0, 1, 1], [], []>} : vector<4x20xf32>, vector<20x20xf32>, vector<4x20xf32> -> vector<4x20xf32>
      %139 = arith.mulf %112, %138 : vector<4x20xf32>
      %140 = arith.addf %135, %139 : vector<4x20xf32>
      %141 = math.tanh %140 : vector<4x20xf32>
      %cst_113 = arith.constant 1.000000e+00 : f32
      %142 = vector.broadcast %cst_113 : f32 to vector<4x20xf32>
      %143 = arith.subf %142, %128 : vector<4x20xf32>
      %144 = arith.mulf %143, %141 : vector<4x20xf32>
      %145 = arith.mulf %128, %96 : vector<4x20xf32>
      %146 = arith.addf %144, %145 : vector<4x20xf32>
      %c0_114 = arith.constant 0 : index
      %c0_115 = arith.constant 0 : index
      %147 = vector.load %arg37[%c0_114, %c0_115] : memref<12x16xf32, #tpu.memory_space<vmem>>, vector<12x16xf32>
      tpu.vector_store %arg37[%c0_114, %c0_115], %91 {strides = array<i32>} : memref<12x16xf32, #tpu.memory_space<vmem>>, vector<12x16xf32>,
      %c0_116 = arith.constant 0 : index
      %c0_117 = arith.constant 0 : index
      %148 = vector.load %arg36[%c0_116, %c0_117] : memref<4x20xf32, #tpu.memory_space<vmem>>, vector<4x20xf32>
      tpu.vector_store %arg36[%c0_116, %c0_117], %146 {strides = array<i32>} : memref<4x20xf32, #tpu.memory_space<vmem>>, vector<4x20xf32>,
      %c0_118 = arith.constant 0 : index
      %c0_119 = arith.constant 0 : index
      %149 = vector.load %arg27[%c0_118, %c0_119] : memref<20x8xf32, #tpu.memory_space<vmem>>, vector<20x8xf32>
      %cst_120 = arith.constant dense<0.000000e+00> : vector<4x8xf32>
      %150 = tpu.matmul %146, %149, %cst_120 {dimension_numbers = #tpu.dot_dimension_numbers<[1], [0], [0], [1], [0, 0, 1, 1], [], []>} : vector<4x20xf32>, vector<20x8xf32>, vector<4x8xf32> -> vector<4x8xf32>
      %c0_121 = arith.constant 0 : index
      %c0_122 = arith.constant 0 : index
      %151 = vector.load %arg28[%c0_121, %c0_122] : memref<1x8xf32, #tpu.memory_space<vmem>>, vector<1x8xf32>
      %152 = vector.broadcast %151 : vector<1x8xf32> to vector<4x8xf32>
      %153 = arith.addf %150, %152 : vector<4x8xf32>
      %cst_123 = arith.constant 0.000000e+00 : f32
      %154 = vector.broadcast %cst_123 : f32 to vector<4x8xf32>
      %155 = arith.maximumf %153, %154 : vector<4x8xf32>
      %c0_124 = arith.constant 0 : index
      %c0_125 = arith.constant 0 : index
      %156 = vector.load %arg29[%c0_124, %c0_125] : memref<20x8xf32, #tpu.memory_space<vmem>>, vector<20x8xf32>
      %cst_126 = arith.constant dense<0.000000e+00> : vector<4x8xf32>
      %157 = tpu.matmul %146, %156, %cst_126 {dimension_numbers = #tpu.dot_dimension_numbers<[1], [0], [0], [1], [0, 0, 1, 1], [], []>} : vector<4x20xf32>, vector<20x8xf32>, vector<4x8xf32> -> vector<4x8xf32>
      %c0_127 = arith.constant 0 : index
      %c0_128 = arith.constant 0 : index
      %158 = vector.load %arg30[%c0_127, %c0_128] : memref<1x8xf32, #tpu.memory_space<vmem>>, vector<1x8xf32>
      %159 = vector.broadcast %158 : vector<1x8xf32> to vector<4x8xf32>
      %160 = arith.addf %157, %159 : vector<4x8xf32>
      %cst_129 = arith.constant 0.000000e+00 : f32
      %161 = vector.broadcast %cst_129 : f32 to vector<4x8xf32>
      %162 = arith.maximumf %160, %161 : vector<4x8xf32>
      %c0_130 = arith.constant 0 : index
      %c0_131 = arith.constant 0 : index
      %163 = vector.load %arg31[%c0_130, %c0_131] : memref<20x8xf32, #tpu.memory_space<vmem>>, vector<20x8xf32>
      %cst_132 = arith.constant dense<0.000000e+00> : vector<4x8xf32>
      %164 = tpu.matmul %146, %163, %cst_132 {dimension_numbers = #tpu.dot_dimension_numbers<[1], [0], [0], [1], [0, 0, 1, 1], [], []>} : vector<4x20xf32>, vector<20x8xf32>, vector<4x8xf32> -> vector<4x8xf32>
      %c0_133 = arith.constant 0 : index
      %c0_134 = arith.constant 0 : index
      %165 = vector.load %arg32[%c0_133, %c0_134] : memref<1x8xf32, #tpu.memory_space<vmem>>, vector<1x8xf32>
      %166 = vector.broadcast %165 : vector<1x8xf32> to vector<4x8xf32>
      %167 = arith.addf %164, %166 : vector<4x8xf32>
      %cst_135 = arith.constant 0.000000e+00 : f32
      %168 = vector.broadcast %cst_135 : f32 to vector<4x8xf32>
      %169 = arith.maximumf %167, %168 : vector<4x8xf32>
      %170 = arith.index_cast %arg1 : i32 to index
      %c0_136 = arith.constant 0 : index
      %c0_137 = arith.constant 0 : index
      %171 = vector.load %arg38[%170, %c0_136, %c0_137] : memref<5x4x8xf32, #tpu.memory_space<vmem>>, vector<1x4x8xf32>
      %172 = vector.shape_cast %171 : vector<1x4x8xf32> to vector<4x8xf32>
      %173 = vector.shape_cast %162 : vector<4x8xf32> to vector<1x4x8xf32>
      tpu.vector_store %arg38[%170, %c0_136, %c0_137], %173 {strides = array<i32>} : memref<5x4x8xf32, #tpu.memory_space<vmem>>, vector<1x4x8xf32>,
      %174 = arith.index_cast %arg1 : i32 to index
      %c0_138 = arith.constant 0 : index
      %c0_139 = arith.constant 0 : index
      %175 = vector.load %arg39[%174, %c0_138, %c0_139] : memref<5x4x8xf32, #tpu.memory_space<vmem>>, vector<1x4x8xf32>
      %176 = vector.shape_cast %175 : vector<1x4x8xf32> to vector<4x8xf32>
      %177 = vector.shape_cast %169 : vector<4x8xf32> to vector<1x4x8xf32>
      tpu.vector_store %arg39[%174, %c0_138, %c0_139], %177 {strides = array<i32>} : memref<5x4x8xf32, #tpu.memory_space<vmem>>, vector<1x4x8xf32>,
      %c0_140 = arith.constant 0 : index
      %c0_141 = arith.constant 0 : index
      %c0_142 = arith.constant 0 : index
      %178 = vector.load %arg38[%c0_140, %c0_141, %c0_142] : memref<5x4x8xf32, #tpu.memory_space<vmem>>, vector<5x4x8xf32>
      %c0_143 = arith.constant 0 : index
      %c0_144 = arith.constant 0 : index
      %c0_145 = arith.constant 0 : index
      %179 = vector.load %arg39[%c0_143, %c0_144, %c0_145] : memref<5x4x8xf32, #tpu.memory_space<vmem>>, vector<5x4x8xf32>
      %180 = vector.shape_cast %155 : vector<4x8xf32> to vector<1x4x8xf32>
      %181 = vector.broadcast %180 : vector<1x4x8xf32> to vector<5x4x8xf32>
      %182 = arith.mulf %181, %178 : vector<5x4x8xf32>
      %cst_146 = arith.constant dense<0.000000e+00> : vector<5x4xf32>
      %183 = vector.multi_reduction <add>, %182, %cst_146 [2] : vector<5x4x8xf32> to vector<5x4xf32>
      %184 = tpu.iota {dimensions = array<i32: 0>} : vector<5x4xi32>
      %185 = vector.broadcast %arg1 : i32 to vector<5x4xi32>
      %186 = arith.cmpi sle, %184, %185 : vector<5x4xi32>
      %cst_147 = arith.constant -1.000000e+30 : f32
      %187 = vector.broadcast %cst_147 : f32 to vector<5x4xf32>
      %188 = arith.select %186, %183, %187 : vector<5x4xi1>, vector<5x4xf32>
      %cst_148 = arith.constant dense<0xFF800000> : vector<4xf32>
      %189 = vector.multi_reduction <maximumf>, %188, %cst_148 [0] : vector<5x4xf32> to vector<4xf32>
      %190 = vector.shape_cast %189 : vector<4xf32> to vector<1x4xf32>
      %191 = vector.broadcast %190 : vector<1x4xf32> to vector<5x4xf32>
      %192 = arith.subf %188, %191 : vector<5x4xf32>
      %193 = math.exp %192 : vector<5x4xf32>
      %cst_149 = arith.constant dense<0.000000e+00> : vector<4xf32>
      %194 = vector.multi_reduction <add>, %193, %cst_149 [0] : vector<5x4xf32> to vector<4xf32>
      %195 = vector.shape_cast %194 : vector<4xf32> to vector<1x4xf32>
      %196 = tpu.reciprocal %195 {approx = true} : vector<1x4xf32> -> vector<1x4xf32>
      %197 = vector.broadcast %196 : vector<1x4xf32> to vector<5x4xf32>
      %198 = arith.mulf %193, %197 : vector<5x4xf32>
      %199 = vector.shape_cast %198 : vector<5x4xf32> to vector<5x4x1xf32>
      %200 = vector.broadcast %199 : vector<5x4x1xf32> to vector<5x4x8xf32>
      %201 = arith.mulf %200, %179 : vector<5x4x8xf32>
      %cst_150 = arith.constant dense<0.000000e+00> : vector<4x8xf32>
      %202 = vector.multi_reduction <add>, %201, %cst_150 [0] : vector<5x4x8xf32> to vector<4x8xf32>
      %c0_151 = arith.constant 0 : index
      %c0_152 = arith.constant 0 : index
      %203 = vector.load %arg33[%c0_151, %c0_152] : memref<8x20xf32, #tpu.memory_space<vmem>>, vector<8x20xf32>
      %cst_153 = arith.constant dense<0.000000e+00> : vector<4x20xf32>
      %204 = tpu.matmul %202, %203, %cst_153 {dimension_numbers = #tpu.dot_dimension_numbers<[1], [0], [0], [1], [0, 0, 1, 1], [], []>} : vector<4x8xf32>, vector<8x20xf32>, vector<4x20xf32> -> vector<4x20xf32>
      %c0_154 = arith.constant 0 : index
      %c0_155 = arith.constant 0 : index
      %205 = vector.load %arg34[%c0_154, %c0_155] : memref<1x20xf32, #tpu.memory_space<vmem>>, vector<1x20xf32>
      %206 = vector.broadcast %205 : vector<1x20xf32> to vector<4x20xf32>
      %207 = arith.addf %204, %206 : vector<4x20xf32>
      %cst_156 = arith.constant 0.000000e+00 : f32
      %208 = vector.broadcast %cst_156 : f32 to vector<4x20xf32>
      %209 = arith.maximumf %207, %208 : vector<4x20xf32>
      %c0_157 = arith.constant 0 : index
      %c0_158 = arith.constant 0 : index
      %210 = vector.load %arg29[%c0_157, %c0_158] : memref<20x8xf32, #tpu.memory_space<vmem>>, vector<20x8xf32>
      %cst_159 = arith.constant dense<0.000000e+00> : vector<4x8xf32>
      %211 = tpu.matmul %209, %210, %cst_159 {dimension_numbers = #tpu.dot_dimension_numbers<[1], [0], [0], [1], [0, 0, 1, 1], [], []>} : vector<4x20xf32>, vector<20x8xf32>, vector<4x8xf32> -> vector<4x8xf32>
      %c0_160 = arith.constant 0 : index
      %c0_161 = arith.constant 0 : index
      %212 = vector.load %arg30[%c0_160, %c0_161] : memref<1x8xf32, #tpu.memory_space<vmem>>, vector<1x8xf32>
      %213 = vector.broadcast %212 : vector<1x8xf32> to vector<4x8xf32>
      %214 = arith.addf %211, %213 : vector<4x8xf32>
      %cst_162 = arith.constant 0.000000e+00 : f32
      %215 = vector.broadcast %cst_162 : f32 to vector<4x8xf32>
      %216 = arith.maximumf %214, %215 : vector<4x8xf32>
      %c0_163 = arith.constant 0 : index
      %c0_164 = arith.constant 0 : index
      %217 = vector.load %arg31[%c0_163, %c0_164] : memref<20x8xf32, #tpu.memory_space<vmem>>, vector<20x8xf32>
      %cst_165 = arith.constant dense<0.000000e+00> : vector<4x8xf32>
      %218 = tpu.matmul %209, %217, %cst_165 {dimension_numbers = #tpu.dot_dimension_numbers<[1], [0], [0], [1], [0, 0, 1, 1], [], []>} : vector<4x20xf32>, vector<20x8xf32>, vector<4x8xf32> -> vector<4x8xf32>
      %c0_166 = arith.constant 0 : index
      %c0_167 = arith.constant 0 : index
      %219 = vector.load %arg32[%c0_166, %c0_167] : memref<1x8xf32, #tpu.memory_space<vmem>>, vector<1x8xf32>
      %220 = vector.broadcast %219 : vector<1x8xf32> to vector<4x8xf32>
      %221 = arith.addf %218, %220 : vector<4x8xf32>
      %cst_168 = arith.constant 0.000000e+00 : f32
      %222 = vector.broadcast %cst_168 : f32 to vector<4x8xf32>
      %223 = arith.maximumf %221, %222 : vector<4x8xf32>
      %224 = arith.index_cast %arg1 : i32 to index
      %c0_169 = arith.constant 0 : index
      %c0_170 = arith.constant 0 : index
      %225 = vector.load %arg38[%224, %c0_169, %c0_170] : memref<5x4x8xf32, #tpu.memory_space<vmem>>, vector<1x4x8xf32>
      %226 = vector.shape_cast %225 : vector<1x4x8xf32> to vector<4x8xf32>
      %227 = vector.shape_cast %216 : vector<4x8xf32> to vector<1x4x8xf32>
      tpu.vector_store %arg38[%224, %c0_169, %c0_170], %227 {strides = array<i32>} : memref<5x4x8xf32, #tpu.memory_space<vmem>>, vector<1x4x8xf32>,
      %228 = arith.index_cast %arg1 : i32 to index
      %c0_171 = arith.constant 0 : index
      %c0_172 = arith.constant 0 : index
      %229 = vector.load %arg39[%228, %c0_171, %c0_172] : memref<5x4x8xf32, #tpu.memory_space<vmem>>, vector<1x4x8xf32>
      %230 = vector.shape_cast %229 : vector<1x4x8xf32> to vector<4x8xf32>
      %231 = vector.shape_cast %223 : vector<4x8xf32> to vector<1x4x8xf32>
      tpu.vector_store %arg39[%228, %c0_171, %c0_172], %231 {strides = array<i32>} : memref<5x4x8xf32, #tpu.memory_space<vmem>>, vector<1x4x8xf32>,
      %c0_173 = arith.constant 0 : index
      %c0_174 = arith.constant 0 : index
      %232 = vector.load %arg21[%c0_173, %c0_174] : memref<20x16xf32, #tpu.memory_space<vmem>>, vector<20x16xf32>
      %cst_175 = arith.constant dense<0.000000e+00> : vector<4x16xf32>
      %233 = tpu.matmul %209, %232, %cst_175 {dimension_numbers = #tpu.dot_dimension_numbers<[1], [0], [0], [1], [0, 0, 1, 1], [], []>} : vector<4x20xf32>, vector<20x16xf32>, vector<4x16xf32> -> vector<4x16xf32>
      %c0_176 = arith.constant 0 : index
      %c0_177 = arith.constant 0 : index
      %234 = vector.load %arg22[%c0_176, %c0_177] : memref<1x16xf32, #tpu.memory_space<vmem>>, vector<1x16xf32>
      %235 = vector.broadcast %234 : vector<1x16xf32> to vector<4x16xf32>
      %236 = arith.addf %233, %235 : vector<4x16xf32>
      %cst_178 = arith.constant 0.000000e+00 : f32
      %237 = vector.broadcast %cst_178 : f32 to vector<4x16xf32>
      %238 = arith.maximumf %236, %237 : vector<4x16xf32>
      %c0_179 = arith.constant 0 : index
      %c0_180 = arith.constant 0 : index
      %239 = vector.load %arg23[%c0_179, %c0_180] : memref<16x16xf32, #tpu.memory_space<vmem>>, vector<16x16xf32>
      %cst_181 = arith.constant dense<0.000000e+00> : vector<4x16xf32>
      %240 = tpu.matmul %238, %239, %cst_181 {dimension_numbers = #tpu.dot_dimension_numbers<[1], [0], [0], [1], [0, 0, 1, 1], [], []>} : vector<4x16xf32>, vector<16x16xf32>, vector<4x16xf32> -> vector<4x16xf32>
      %c0_182 = arith.constant 0 : index
      %c0_183 = arith.constant 0 : index
      %241 = vector.load %arg24[%c0_182, %c0_183] : memref<1x16xf32, #tpu.memory_space<vmem>>, vector<1x16xf32>
      %242 = vector.broadcast %241 : vector<1x16xf32> to vector<4x16xf32>
      %243 = arith.addf %240, %242 : vector<4x16xf32>
      %cst_184 = arith.constant 0.000000e+00 : f32
      %244 = vector.broadcast %cst_184 : f32 to vector<4x16xf32>
      %245 = arith.maximumf %243, %244 : vector<4x16xf32>
      %c0_185 = arith.constant 0 : index
      %c0_186 = arith.constant 0 : index
      %246 = vector.load %arg25[%c0_185, %c0_186] : memref<16x4xf32, #tpu.memory_space<vmem>>, vector<16x4xf32>
      %cst_187 = arith.constant dense<0.000000e+00> : vector<4x4xf32>
      %247 = tpu.matmul %245, %246, %cst_187 {dimension_numbers = #tpu.dot_dimension_numbers<[1], [0], [0], [1], [0, 0, 1, 1], [], []>} : vector<4x16xf32>, vector<16x4xf32>, vector<4x4xf32> -> vector<4x4xf32>
      %c0_188 = arith.constant 0 : index
      %c0_189 = arith.constant 0 : index
      %248 = vector.load %arg26[%c0_188, %c0_189] : memref<1x4xf32, #tpu.memory_space<vmem>>, vector<1x4xf32>
      %249 = vector.broadcast %248 : vector<1x4xf32> to vector<4x4xf32>
      %250 = arith.addf %247, %249 : vector<4x4xf32>
      %251 = arith.addf %3, %250 : vector<4x4xf32>
      %252 = vector.shape_cast %251 : vector<4x4xf32> to vector<1x4x4xf32>
      %253 = arith.index_cast %arg1 : i32 to index
      %c0_190 = arith.constant 0 : index
      %c0_191 = arith.constant 0 : index
      %c0_192 = arith.constant 0 : index
      %254 = vector.load %arg35[%253, %c0_190, %c0_191, %c0_192] : memref<5x1x4x4xf32, #tpu.memory_space<vmem>>, vector<1x1x4x4xf32>
      %255 = vector.shape_cast %254 : vector<1x1x4x4xf32> to vector<1x4x4xf32>
      %256 = vector.shape_cast %252 : vector<1x4x4xf32> to vector<1x1x4x4xf32>
      tpu.vector_store %arg35[%253, %c0_190, %c0_191, %c0_192], %256 {strides = array<i32>} : memref<5x1x4x4xf32, #tpu.memory_space<vmem>>, vector<1x1x4x4xf32>,
    } else {
    }
    return
  }
  func.func @transform_0(%arg0: i32, %arg1: i32) -> (i32, i32, i32, i32) {
    %c0_i32 = arith.constant 0 : i32
    %c0_i32_0 = arith.constant 0 : i32
    %c0_i32_1 = arith.constant 0 : i32
    %c0_i32_2 = arith.constant 0 : i32
    return %c0_i32, %arg0, %c0_i32_0, %c0_i32_1 : i32, i32, i32, i32
  }
  func.func @transform_1(%arg0: i32, %arg1: i32) -> (i32, i32, i32) {
    %c0_i32 = arith.constant 0 : i32
    %c0_i32_0 = arith.constant 0 : i32
    %c0_i32_1 = arith.constant 0 : i32
    return %arg0, %c0_i32, %c0_i32_0 : i32, i32, i32
  }
  func.func @transform_2(%arg0: i32, %arg1: i32) -> (i32, i32, i32) {
    %c0_i32 = arith.constant 0 : i32
    %c0_i32_0 = arith.constant 0 : i32
    %c0_i32_1 = arith.constant 0 : i32
    return %arg0, %c0_i32, %c0_i32_0 : i32, i32, i32
  }
  func.func @transform_3(%arg0: i32, %arg1: i32) -> (i32, i32, i32) {
    %c0_i32 = arith.constant 0 : i32
    %c0_i32_0 = arith.constant 0 : i32
    %c0_i32_1 = arith.constant 0 : i32
    return %arg0, %c0_i32, %c0_i32_0 : i32, i32, i32
  }
  func.func @transform_4(%arg0: i32, %arg1: i32) -> (i32, i32, i32) {
    %c0_i32 = arith.constant 0 : i32
    %c0_i32_0 = arith.constant 0 : i32
    %c0_i32_1 = arith.constant 0 : i32
    return %arg0, %c0_i32, %c0_i32_0 : i32, i32, i32
  }
  func.func @transform_5(%arg0: i32, %arg1: i32) -> (i32, i32) {
    %c0_i32 = arith.constant 0 : i32
    %c0_i32_0 = arith.constant 0 : i32
    %c0_i32_1 = arith.constant 0 : i32
    return %c0_i32, %c0_i32_0 : i32, i32
  }
  func.func @transform_6(%arg0: i32, %arg1: i32) -> (i32, i32) {
    %c0_i32 = arith.constant 0 : i32
    %c0_i32_0 = arith.constant 0 : i32
    %c0_i32_1 = arith.constant 0 : i32
    return %c0_i32, %c0_i32_0 : i32, i32
  }
  func.func @transform_7(%arg0: i32, %arg1: i32) -> (i32, i32) {
    %c0_i32 = arith.constant 0 : i32
    %c0_i32_0 = arith.constant 0 : i32
    %c0_i32_1 = arith.constant 0 : i32
    return %c0_i32, %c0_i32_0 : i32, i32
  }
  func.func @transform_8(%arg0: i32, %arg1: i32) -> (i32, i32) {
    %c0_i32 = arith.constant 0 : i32
    %c0_i32_0 = arith.constant 0 : i32
    %c0_i32_1 = arith.constant 0 : i32
    return %c0_i32, %c0_i32_0 : i32, i32
  }
  func.func @transform_9(%arg0: i32, %arg1: i32) -> (i32, i32) {
    %c0_i32 = arith.constant 0 : i32
    %c0_i32_0 = arith.constant 0 : i32
    %c0_i32_1 = arith.constant 0 : i32
    return %c0_i32, %c0_i32_0 : i32, i32
  }
  func.func @transform_10(%arg0: i32, %arg1: i32) -> (i32, i32) {
    %c0_i32 = arith.constant 0 : i32
    %c0_i32_0 = arith.constant 0 : i32
    %c0_i32_1 = arith.constant 0 : i32
    return %c0_i32, %c0_i32_0 : i32, i32
  }
  func.func @transform_11(%arg0: i32, %arg1: i32) -> (i32, i32) {
    %c0_i32 = arith.constant 0 : i32
    %c0_i32_0 = arith.constant 0 : i32
    %c0_i32_1 = arith.constant 0 : i32
    return %c0_i32, %c0_i32_0 : i32, i32
  }
  func.func @transform_12(%arg0: i32, %arg1: i32) -> (i32, i32) {
    %c0_i32 = arith.constant 0 : i32
    %c0_i32_0 = arith.constant 0 : i32
    %c0_i32_1 = arith.constant 0 : i32
    return %c0_i32, %c0_i32_0 : i32, i32
  }
  func.func @transform_13(%arg0: i32, %arg1: i32) -> (i32, i32, i32) {
    %c0_i32 = arith.constant 0 : i32
    %c0_i32_0 = arith.constant 0 : i32
    %c0_i32_1 = arith.constant 0 : i32
    %c0_i32_2 = arith.constant 0 : i32
    return %c0_i32, %c0_i32_0, %c0_i32_1 : i32, i32, i32
  }
  func.func @transform_14(%arg0: i32, %arg1: i32) -> (i32, i32, i32) {
    %c0_i32 = arith.constant 0 : i32
    %c0_i32_0 = arith.constant 0 : i32
    %c0_i32_1 = arith.constant 0 : i32
    %c0_i32_2 = arith.constant 0 : i32
    return %c0_i32, %c0_i32_0, %c0_i32_1 : i32, i32, i32
  }
  func.func @transform_15(%arg0: i32, %arg1: i32) -> (i32, i32, i32) {
    %c0_i32 = arith.constant 0 : i32
    %c0_i32_0 = arith.constant 0 : i32
    %c0_i32_1 = arith.constant 0 : i32
    %c0_i32_2 = arith.constant 0 : i32
    return %c0_i32, %c0_i32_0, %c0_i32_1 : i32, i32, i32
  }
  func.func @transform_16(%arg0: i32, %arg1: i32) -> (i32, i32, i32) {
    %c0_i32 = arith.constant 0 : i32
    %c0_i32_0 = arith.constant 0 : i32
    %c0_i32_1 = arith.constant 0 : i32
    %c0_i32_2 = arith.constant 0 : i32
    return %c0_i32, %c0_i32_0, %c0_i32_1 : i32, i32, i32
  }
  func.func @transform_17(%arg0: i32, %arg1: i32) -> (i32, i32, i32) {
    %c0_i32 = arith.constant 0 : i32
    %c0_i32_0 = arith.constant 0 : i32
    %c0_i32_1 = arith.constant 0 : i32
    %c0_i32_2 = arith.constant 0 : i32
    return %c0_i32, %c0_i32_0, %c0_i32_1 : i32, i32, i32
  }
  func.func @transform_18(%arg0: i32, %arg1: i32) -> (i32, i32, i32) {
    %c0_i32 = arith.constant 0 : i32
    %c0_i32_0 = arith.constant 0 : i32
    %c0_i32_1 = arith.constant 0 : i32
    %c0_i32_2 = arith.constant 0 : i32
    return %c0_i32, %c0_i32_0, %c0_i32_1 : i32, i32, i32
  }
  func.func @transform_19(%arg0: i32, %arg1: i32) -> (i32, i32) {
    %c0_i32 = arith.constant 0 : i32
    %c0_i32_0 = arith.constant 0 : i32
    %c0_i32_1 = arith.constant 0 : i32
    return %c0_i32, %c0_i32_0 : i32, i32
  }
  func.func @transform_20(%arg0: i32, %arg1: i32) -> (i32, i32) {
    %c0_i32 = arith.constant 0 : i32
    %c0_i32_0 = arith.constant 0 : i32
    %c0_i32_1 = arith.constant 0 : i32
    return %c0_i32, %c0_i32_0 : i32, i32
  }
  func.func @transform_21(%arg0: i32, %arg1: i32) -> (i32, i32) {
    %c0_i32 = arith.constant 0 : i32
    %c0_i32_0 = arith.constant 0 : i32
    %c0_i32_1 = arith.constant 0 : i32
    return %c0_i32, %c0_i32_0 : i32, i32
  }
  func.func @transform_22(%arg0: i32, %arg1: i32) -> (i32, i32) {
    %c0_i32 = arith.constant 0 : i32
    %c0_i32_0 = arith.constant 0 : i32
    %c0_i32_1 = arith.constant 0 : i32
    return %c0_i32, %c0_i32_0 : i32, i32
  }
  func.func @transform_23(%arg0: i32, %arg1: i32) -> (i32, i32) {
    %c0_i32 = arith.constant 0 : i32
    %c0_i32_0 = arith.constant 0 : i32
    %c0_i32_1 = arith.constant 0 : i32
    return %c0_i32, %c0_i32_0 : i32, i32
  }
  func.func @transform_24(%arg0: i32, %arg1: i32) -> (i32, i32) {
    %c0_i32 = arith.constant 0 : i32
    %c0_i32_0 = arith.constant 0 : i32
    %c0_i32_1 = arith.constant 0 : i32
    return %c0_i32, %c0_i32_0 : i32, i32
  }
  func.func @transform_25(%arg0: i32, %arg1: i32) -> (i32, i32) {
    %c0_i32 = arith.constant 0 : i32
    %c0_i32_0 = arith.constant 0 : i32
    %c0_i32_1 = arith.constant 0 : i32
    return %c0_i32, %c0_i32_0 : i32, i32
  }
  func.func @transform_26(%arg0: i32, %arg1: i32) -> (i32, i32) {
    %c0_i32 = arith.constant 0 : i32
    %c0_i32_0 = arith.constant 0 : i32
    %c0_i32_1 = arith.constant 0 : i32
    return %c0_i32, %c0_i32_0 : i32, i32
  }
  func.func @transform_27(%arg0: i32, %arg1: i32) -> (i32, i32) {
    %c0_i32 = arith.constant 0 : i32
    %c0_i32_0 = arith.constant 0 : i32
    %c0_i32_1 = arith.constant 0 : i32
    return %c0_i32, %c0_i32_0 : i32, i32
  }
  func.func @transform_28(%arg0: i32, %arg1: i32) -> (i32, i32) {
    %c0_i32 = arith.constant 0 : i32
    %c0_i32_0 = arith.constant 0 : i32
    %c0_i32_1 = arith.constant 0 : i32
    return %c0_i32, %c0_i32_0 : i32, i32
  }
  func.func @transform_29(%arg0: i32, %arg1: i32) -> (i32, i32) {
    %c0_i32 = arith.constant 0 : i32
    %c0_i32_0 = arith.constant 0 : i32
    %c0_i32_1 = arith.constant 0 : i32
    return %c0_i32, %c0_i32_0 : i32, i32
  }
  func.func @transform_30(%arg0: i32, %arg1: i32) -> (i32, i32) {
    %c0_i32 = arith.constant 0 : i32
    %c0_i32_0 = arith.constant 0 : i32
    %c0_i32_1 = arith.constant 0 : i32
    return %c0_i32, %c0_i32_0 : i32, i32
  }
  func.func @transform_31(%arg0: i32, %arg1: i32) -> (i32, i32) {
    %c0_i32 = arith.constant 0 : i32
    %c0_i32_0 = arith.constant 0 : i32
    %c0_i32_1 = arith.constant 0 : i32
    return %c0_i32, %c0_i32_0 : i32, i32
  }
  func.func @transform_32(%arg0: i32, %arg1: i32) -> (i32, i32) {
    %c0_i32 = arith.constant 0 : i32
    %c0_i32_0 = arith.constant 0 : i32
    %c0_i32_1 = arith.constant 0 : i32
    return %c0_i32, %c0_i32_0 : i32, i32
  }
  func.func @transform_33(%arg0: i32, %arg1: i32) -> (i32, i32, i32, i32) {
    %c0_i32 = arith.constant 0 : i32
    %c0_i32_0 = arith.constant 0 : i32
    %c0_i32_1 = arith.constant 0 : i32
    %c0_i32_2 = arith.constant 0 : i32
    return %c0_i32, %arg0, %c0_i32_0, %c0_i32_1 : i32, i32, i32, i32
  }
}

</mosaic_0001>

<bundles_post_ra>
// kernel: tpu_custom_call.1
= control target key start
LH: loop header
LB: loop body
LE: loop exit
PB: predicated region body
PF: predicated region fallthrough
CT: control target
= control target key end

     0   :  { %s5760_s6 = smov 1   ;;  %s5761_s10 = smov 2   ;;  %s6569_s0 = inlined_call_operand.smem [shape: u32[34], index: -1, kind: input, shape index: {}] }
   0x1   :  { %s5817_s5 = sld [smem:[%s6569_s0]]   ;;  %s5762_s14 = smov 3  }
   0x2   :  { %s5822_s9 = sld [smem:[%s6569_s0 + %s5760_s6]]   ;;  %s5763_s18 = smov 4  }
   0x3   :  { %s5827_s13 = sld [smem:[%s6569_s0 + %s5761_s10]]   ;;  %s5764_s22 = smov 5  }
   0x4   :  { %s5832_s17 = sld [smem:[%s6569_s0 + %s5762_s14]]   ;;  %s5765_s26 = smov 6  }
   0x5   :  { %s5837_s21 = sld [smem:[%s6569_s0 + %s5763_s18]]   ;;  %s5766_s30 = smov 7  }
   0x6   :  { %s5842_s25 = sld [smem:[%s6569_s0 + %s5764_s22]]   ;;  %s5767_s4 = smov 8  }
   0x7   :  { %6597 = sst [smem:[#allocation19_spill]] %s5817_s5  ;;  %s5768_s10 = smov 9  }
   0x8   :  { %s5847_s29 = sld [smem:[%s6569_s0 + %s5765_s26]]   ;;  %s5769_s15 = smov 10  }
   0x9   :  { %s5852_s3 = sld [smem:[%s6569_s0 + %s5766_s30]]   ;;  %s5770_s20 = smov 11  }
   0xa   :  { %s5857_s8 = sld [smem:[%s6569_s0 + %s5767_s4]]   ;;  %s5771_s26 = smov 12  }
   0xb   :  { %s5862_s14 = sld [smem:[%s6569_s0 + %s5768_s10]]   ;;  %s5772_s1 = smov 13  }
   0xc   :  { %s5867_s19 = sld [smem:[%s6569_s0 + %s5769_s15]]   ;;  %s5773_s7 = smov 14  }
   0xd   :  { %s5872_s24 = sld [smem:[%s6569_s0 + %s5770_s20]]   ;;  %s5774_s15 = smov 15  }
   0xe   :  { %s5877_s30 = sld [smem:[%s6569_s0 + %s5771_s26]]   ;;  %s5775_s22 = smov 16  }
   0xf   :  { %6598 = sst [smem:[#allocation20_spill]] %s5852_s3  ;;  %s5776_s28 = smov 17  }
  0x10   :  { %s5882_s6 = sld [smem:[%s6569_s0 + %s5772_s1]]  }
  0x11   :  { %s5887_s12 = sld [smem:[%s6569_s0 + %s5773_s7]]   ;;  %s5777_s7 = smov 18  }
  0x12   :  { %s5892_s20 = sld [smem:[%s6569_s0 + %s5774_s15]]   ;;  %s5778_s15 = smov 19  }
  0x13   :  { %s5897_s27 = sld [smem:[%s6569_s0 + %s5775_s22]]   ;;  %s5779_s22 = smov 20  }
  0x14   :  { %s5902_s4 = sld [smem:[%s6569_s0 + %s5776_s28]]   ;;  %s5780_s28 = smov 21  }
  0x16   :  { %6599 = sst [smem:[#allocation21_spill]] %s5882_s6 }
  0x17   :  { %6600 = sst [smem:[#allocation22_spill]] %s5887_s12 }
  0x18   :  { %6601 = sst [smem:[#allocation23_spill]] %s5892_s20 }
  0x19   :  { %6602 = sst [smem:[#allocation24_spill]] %s5897_s27 }
  0x1a   :  { %6603 = sst [smem:[#allocation25_spill]] %s5902_s4 }
  0x1b   :  { %s5907_s12 = sld [smem:[%s6569_s0 + %s5777_s7]]   ;;  %s5781_s7 = smov 22  }
  0x1c   :  { %s5912_s20 = sld [smem:[%s6569_s0 + %s5778_s15]]   ;;  %s5782_s15 = smov 23  }
  0x1d   :  { %s5917_s27 = sld [smem:[%s6569_s0 + %s5779_s22]]   ;;  %s5783_s22 = smov 24  }
  0x1e   :  { %s5922_s4 = sld [smem:[%s6569_s0 + %s5780_s28]]   ;;  %s5784_s28 = smov 25  }
  0x1f   :  { %s5932_s6 = sld [smem:[%s6569_s0 + %s5782_s15]]   ;;  %s5786_s15 = smov 27  }
  0x21   :  { %6604 = sst [smem:[#allocation26_spill]] %s5907_s12 }
  0x22   :  { %6605 = sst [smem:[#allocation27_spill]] %s5912_s20 }
  0x23   :  { %6606 = sst [smem:[#allocation28_spill]] %s5917_s27 }
  0x24   :  { %6607 = sst [smem:[#allocation29_spill]] %s5922_s4 }
  0x25   :  { %s5927_s12 = sld [smem:[%s6569_s0 + %s5781_s7]]   ;;  %s5785_s7 = smov 26  }
  0x26   :  { %6609 = sst [smem:[#allocation31_spill]] %s5932_s6 }
  0x27   :  { %s5937_s27 = sld [smem:[%s6569_s0 + %s5783_s22]]   ;;  %s5787_s22 = smov 28  }
  0x28   :  { %s5942_s4 = sld [smem:[%s6569_s0 + %s5784_s28]]   ;;  %s5788_s28 = smov 29  }
  0x29   :  { %s5952_s6 = sld [smem:[%s6569_s0 + %s5786_s15]]   ;;  %s5790_s15 = smov 31  }
  0x2a   :  { %s5972_s20 = sld [smem:[%s6569_s0 + %s5790_s15]]  }
  0x2b   :  { %6608 = sst [smem:[#allocation30_spill]] %s5927_s12 }
  0x2c   :  { %s5947_s12 = sld [smem:[%s6569_s0 + %s5785_s7]]   ;;  %s5789_s7 = smov 30  }
  0x2d   :  { %6610 = sst [smem:[#allocation32_spill]] %s5937_s27 }
  0x2e   :  { %6611 = sst [smem:[#allocation33_spill]] %s5942_s4 }
  0x2f   :  { %6613 = sst [smem:[#allocation35_spill]] %s5952_s6 }
  0x30   :  { %s5957_s27 = sld [smem:[%s6569_s0 + %s5787_s22]]   ;;  %s5791_s22 = smov 32  }
  0x31   :  { %s5962_s4 = sld [smem:[%s6569_s0 + %s5788_s28]]   ;;  %s5792_s28 = smov 33  }
  0x32   :  { %6612 = sst [smem:[#allocation34_spill]] %s5947_s12 }
  0x33   :  { %s5967_s12 = sld [smem:[%s6569_s0 + %s5789_s7]]  }
  0x34   :  { %6617 = sst [smem:[#allocation39_spill]] %s5972_s20 }
  0x36   :  { %6614 = sst [smem:[#allocation36_spill]] %s5957_s27 }
  0x37   :  { %6615 = sst [smem:[#allocation37_spill]] %s5962_s4 }
  0x38   :  { %s5977_s27 = sld [smem:[%s6569_s0 + %s5791_s22]]  }
  0x39   :  { %6616 = sst [smem:[#allocation38_spill]] %s5967_s12 }
  0x3a   :  { %s5982_s4 = sld [smem:[%s6569_s0 + %s5792_s28]]  }
  0x3e   :  { %6618 = sst [smem:[#allocation40_spill]] %s5977_s27 }
  0x40   :  { %6619 = sst [smem:[#allocation41_spill]] %s5982_s4 }
  0x41   :  { %72 = vsyncpa [#allocation9], 0 }
  0x42   :  { %74 = vsyncpa [#allocation9 + $0x1], 0 }
  0x43   :  { %75 = vsyncpa [#allocation11], 0 }
  0x44   :  { %76 = vsyncpa [#allocation14], 0  ;;  %s5984_s7 = smov 0   ;;  %s5986_s10 = smov 0  }
  0x45   :  { %s5988_s11 = smov 0   ;;  %s5990_s15 = smov 0  }
  0x46   :  { %s5992_s16 = smov 0   ;;  %s5994_s18 = smov 0  }
  0x47   :  { %s5996_s22 = smov 0   ;;  %s5998_s0 = smov 0  }
  0x48 LB: > { %s6620_s3 = sld [smem:[#allocation20_spill]]  ;;  %6621 = sst [smem:[#allocation42_spill]] %s5750_s18  ;;  %s5730_s7 = sphi %s5984_s7, %s6677_s7   ;;  %s5758_s0 = sphi %s5998_s0, %s82_s0   ;;  %s5754_s22 = sphi %s5996_s22, %s6681_s22   ;;  %s5750_s18 = sphi %s5994_s18, %s6675_s18   ;;  %s5746_s16 = sphi %s5992_s16, %s6680_s16   ;;  %s5742_s15 = sphi %s5990_s15, %s6674_s15   ;;  %s5738_s11 = sphi %s5988_s11, %s6679_s11   ;;  %s5734_s10 = sphi %s5986_s10, %s6678_s10  }
  0x49   : > { %s4692_s23 = sadd.s32 4294967295, %s5758_s0   ;;  %s91_s26 = sadd.s32 1, %s5750_s18 }
  0x4a   : > { %p92_p0 = scmp.ge.s32.totalorder %s91_s26, 5  ;;  %s94_s28 = sadd.s32 1, %s5754_s22 }
  0x4b   : > { %s101_s1 = sadd.s32 1, %s5738_s11  ;;  %p108_p1 = scmp.ne.s32.totalorder %s5738_s11, %s5734_s10 }
  0x4c   : > { %s6683_s26 = smov (%p92_p0, %s91_s26), 0  ;;  %s6685_s28 = smov (!%p92_p0, %s94_s28), %s5754_s22 }
  0x4d   : > { %6622 = sst [smem:[#allocation43_spill]] %s6683_s26  ;;  %p109_p2 = scmp.eq.s32.totalorder %s5758_s0, 0 }
  0x4e   : > { %p192_p3 = scmp.ne.s32.totalorder %s5734_s10, %s5730_s7  ;;  %p96_p4 = scmp.ge.s32.totalorder %s6685_s28, 2 }
  0x4f   : > { %p6033_p5 = scmp.eq.s32.totalorder %s4692_s23, 0  ;;  %p6037_p6 = por %p109_p2, %p108_p1 }
  0x50   : > { %p830_p7 = scmp.eq.s32.totalorder %s4692_s23, 9  ;;  %s6687_s28 = smov (%p96_p4, %s6685_s28), 0 }
  0x51   : > { %s6623_s2 = scalar_select %p6033_p5, 1, 0 }
  0x52   : > { %s6624_s18 = scalar_select %p6037_p6, 1, 0 }
  0x53   : > { %6625 = sst [smem:[#allocation44_spill]] %s6687_s28  ;;  %p6045_p8 = por %p6033_p5, %p192_p3 }
  0x54   : > { %p6049_p9 = por %p830_p7, %p108_p1  ;;  %s98_s4 = ssub.s32 %s5754_s22, %s6687_s28 }
  0x55   : > { %s6626_s26 = scalar_select %p6045_p8, 1, 0 }
  0x56   : > { %s6627_s7 = scalar_select %p6049_p9, 1, 0 }
  0x57   : > { %p4694_p10 = scmp.ge.s32.totalorder %s5758_s0, 1  ;;  %p99_p11 = scmp.eq.s32.totalorder %s98_s4, 0 }
  0x58   : > { %6628 = sst [smem:[#allocation45_spill]] %s6627_s7  ;;  %p843_p12 = scmp.lt.s32.totalorder %s5758_s0, 11 }
  0x59   : > { %s6058_s23 = scalar_select %p99_p11, %s5738_s11, %s101_s1  }
  0x5a   : > { %p6060_p13 = pnand %p4694_p10, %p843_p12  ;;  %s5793_s20 = smov [#allocation10]  }
  0x5b   : > { %6629 = sst [smem:[#allocation46_spill]] %s6058_s23  ;;  %s856_s12 = sshll.u32 %s5793_s20, 4  ;;  %s857_s12 = int_to_ptr.vmem [resolvable:$true] %s856_s12 }
  0x5c   : > { %s6630_s27 = scalar_select %p6060_p13, 1, 0 }
  0x5d   : > { %p5402_p0 = pneg %p6060_p13  ;;  %s5794_s6 = smov [#allocation12]  }
  0x5e   : > { %s876_s7 = sshll.u32 %s5794_s6, 4  ;;  %s5795_s1 = smov [#allocation13]   ;;  %s6072_s7 = int_to_ptr.vmem [resolvable:$true] %s876_s7 }
  0x5f   : > { %p6068_p1 = pnand %p5402_p0, %p6033_p5  ;;  %s890_s28 = sshll.u32 %s5795_s1, 4  ;;  %s6074_s28 = int_to_ptr.vmem [resolvable:$true] %s890_s28 }
  0x60   : > { %s5572_s23 = scalar_lea.hbm %s5842_s25, 64 }
  0x61   : > { %p5573_p2 = scmp.ne.s32.totalorder %s5842_s25, %s5572_s23  ;;  %p6080_p3 = pneg %p6068_p1 }
  0x62   : > { %p5579_p10 = scmp.lt.u32.totalorder %s5572_s23, %s5842_s25 }
  0x63   : > { %p5575_p4 = pnand %p6080_p3, %p5573_p2 }
  0x65   : > { %p5576_p7 = pneg %p5575_p4 }
  0x67   : > { %p5581_p11 = pnand %p5579_p10, %p5576_p7 }
  0x69   : > { %5584 = shalt.err (!%p5581_p11)
}
  0x6a   : > { %s5585_s6 = scalar_lea.vmem %s857_s12, 64  ;;  %p5593_p5 = scmp.lt.s32.totalorder %s857_s12, %s857_s12 }
  0x6b   : > { %p5586_p12 = scmp.ne.s32.totalorder %s857_s12, %s5585_s6  ;;  %p5594_p8 = scmp.lt.s32.totalorder %s5585_s6, %s5585_s6 }
  0x6d   : > { %p5588_p0 = pnand %p5586_p12, %p6080_p3  ;;  %p5595_p13 = por %p5594_p8, %p5593_p5 }
  0x6f   : > { %p5589_p9 = pneg %p5588_p0 }
  0x71   : > { %p5596_p6 = pnand %p5595_p13, %p5589_p9 }
  0x73   : > { %5599 = shalt.err (!%p5596_p6)
}
  0x74   : > { %5405 = dma.hbm_to_vmem [thread:$0]  (!%p6068_p1), %s5842_s25, 64, %s857_s12, [#allocation11]  }
  0x75   : > { %s5600_s23 = scalar_lea.hbm %s5862_s14, 16 }
  0x76   : > { %p5601_p2 = scmp.ne.s32.totalorder %s5862_s14, %s5600_s23  ;;  %p5607_p10 = scmp.lt.u32.totalorder %s5600_s23, %s5862_s14 }
  0x78   : > { %p5603_p4 = pnand %p5601_p2, %p6080_p3 }
  0x7a   : > { %p5604_p7 = pneg %p5603_p4 }
  0x7c   : > { %p5609_p11 = pnand %p5607_p10, %p5604_p7 }
  0x7e   : > { %5612 = shalt.err (!%p5609_p11)
}
  0x7f   : > { %s5613_s1 = scalar_lea.vmem %s6072_s7, 16  ;;  %s5620_s6 = scalar_lea.vmem %s6072_s7, 32 }
  0x80   : > { %p5614_p5 = scmp.ne.s32.totalorder %s6072_s7, %s5613_s1  ;;  %p5621_p9 = scmp.lt.s32.totalorder %s6072_s7, %s6072_s7 }
  0x81   : > { %p5622_p13 = scmp.lt.s32.totalorder %s5620_s6, %s5613_s1 }
  0x82   : > { %p5616_p6 = pnand %p5614_p5, %p6080_p3 }
  0x83   : > { %p5623_p12 = por %p5622_p13, %p5621_p9 }
  0x84   : > { %p5617_p8 = pneg %p5616_p6 }
  0x86   : > { %p5624_p0 = pnand %p5623_p12, %p5617_p8 }
  0x88   : > { %5627 = shalt.err (!%p5624_p0)
}
  0x89   : > { %5408 = dma.hbm_to_vmem [thread:$0]  (!%p6068_p1), %s5862_s14, 16, %s6072_s7, [#allocation11]  }
  0x8a   : > { %s5628_s12 = scalar_lea.hbm %s5872_s24, 16 }
  0x8b   : > { %p5629_p2 = scmp.ne.s32.totalorder %s5872_s24, %s5628_s12  ;;  %p5635_p10 = scmp.lt.u32.totalorder %s5628_s12, %s5872_s24 }
  0x8d   : > { %p5631_p4 = pnand %p5629_p2, %p6080_p3 }
  0x8f   : > { %p5632_p7 = pneg %p5631_p4 }
  0x91   : > { %p5637_p11 = pnand %p5635_p10, %p5632_p7 }
  0x93   : > { %5640 = shalt.err (!%p5637_p11)
}
  0x94   : > { %s5641_s23 = scalar_lea.vmem %s6074_s28, 16  ;;  %s5648_s1 = scalar_lea.vmem %s6074_s28, 32 }
  0x95   : > { %p5642_p5 = scmp.ne.s32.totalorder %s6074_s28, %s5641_s23  ;;  %p5649_p9 = scmp.lt.s32.totalorder %s6074_s28, %s6074_s28 }
  0x96   : > { %p5650_p13 = scmp.lt.s32.totalorder %s5648_s1, %s5641_s23 }
  0x97   : > { %p5644_p6 = pnand %p5642_p5, %p6080_p3 }
  0x98   : > { %p5651_p12 = por %p5650_p13, %p5649_p9 }
  0x99   : > { %p5645_p8 = pneg %p5644_p6 }
  0x9b   : > { %p5652_p0 = pnand %p5651_p12, %p5645_p8 }
  0x9d   : > { %5655 = shalt.err (!%p5652_p0)
}
  0x9e   : > { %5411 = dma.hbm_to_vmem [thread:$0]  (!%p6068_p1), %s5872_s24, 16, %s6074_s28, [#allocation14]  }
  0x9f   : > { %p4698_p2 = scmp.ge.s32.totalorder %s5758_s0, 10 }
  0xa0   : > { %p6633_p4 = scmp.ne.s32.totalorder (!%p4698_p2), %s6624_s18, 0 }
  0xa1   : > { %960 = sbr.rel (%p4698_p2) target bundleno = 205 (0xcd), region = 128 }
  0xa8   : > { %963 = sbr.rel (!%p6633_p4) target bundleno = 179 (0xb3), region = 132  ;;  %s6634_s5 = sld [smem:[#allocation19_spill]] (%p6633_p4) }
  0xa9   : > { %s965_s7 = sand.u32 (%p6633_p4), 1, %s5738_s11   ;;  %s4699_s20 = sshll.u32 (%p6633_p4), %s5754_s22, 2 }
  0xaa   : > { %s5386_s6 = smul.u32 (%p6633_p4), 20, %s965_s7 }
  0xac   : > { %s967_s4 = scalar_lea.vmem (%p6633_p4), [#allocation7], %s5386_s6 }
  0xae   : > { %s969_s12 = scalar_lea.vmem (%p6633_p4), %s6634_s5, %s4699_s20 }
  0xaf   : > { %v985_v0 = vld [vmem:[%s969_s12] sm:$0xf]  ;;  %v987_v1 = vld [vmem:[%s969_s12 + $0x8] sm:$0xf]  ;;  %v989_v2 = vld [vmem:[%s969_s12 + $0x10] sm:$0xf] }
  0xb0   : > { %v991_v3 = vld [vmem:[%s969_s12 + $0x18] sm:$0xf]  ;;  %v993_v4 = vld [vmem:[%s969_s12 + $0x20] sm:$0xf]  ;;  %986 = vst [vmem:[%s967_s4] sm:$0xf] %v985_v0 }
  0xb1   : > { %988 = vst [vmem:[%s967_s4 + $0x4] sm:$0xf] %v987_v1  ;;  %990 = vst [vmem:[%s967_s4 + $0x8] sm:$0xf] %v989_v2 }
  0xb2   : > { %992 = vst [vmem:[%s967_s4 + $0xc] sm:$0xf] %v991_v3  ;;  %994 = vst [vmem:[%s967_s4 + $0x10] sm:$0xf] %v993_v4 }
  0xb3 PF: > { %s1044_s28 = sand.u32 1, %s5738_s11   ;;  %s4701_s23 = sshll.u32 %s5754_s22, 6 }
  0xb4   : > { %s4700_s1 = sshll.u32 %s1044_s28, 2  ;;  %s6133_s7 = scalar_lea.hbm %s5832_s17, %s4701_s23 }
  0xb5   : > { %s1048_s20 = scalar_lea.vmem [#allocation8], %s4700_s1  ;;  %s1045_s12 = scalar_lea.sflag [#allocation9], %s1044_s28 }
  0xb6   : > { %s1055_s6 = sshll.u32 %s1048_s20, 4  ;;  %s5656_s4 = scalar_lea.hbm %s6133_s7, 64  ;;  %s1056_s6 = int_to_ptr.vmem [resolvable:$true] %s1055_s6 }
  0xb7   : > { %p5657_p1 = scmp.ne.s32.totalorder %s6133_s7, %s5656_s4  ;;  %p6635_p3 = scmp.ne.s32.totalorder %s6624_s18, 0 }
  0xb8   : > { %s5660_s5 = scalar_lea.hbm %s5832_s17, 128  ;;  %p5661_p11 = scmp.lt.u32.totalorder %s6133_s7, %s5832_s17 }
  0xb9   : > { %p5658_p7 = pnand %p5657_p1, %p6635_p3  ;;  %p5662_p5 = scmp.lt.u32.totalorder %s5660_s5, %s5656_s4 }
  0xba   : > { %p5664_p8 = scmp.lt.u32.totalorder %s5656_s4, %s6133_s7 }
  0xbb   : > { %p5659_p10 = pneg %p5658_p7  ;;  %p5663_p6 = por %p5662_p5, %p5661_p11 }
  0xbd   : > { %p5665_p9 = por %p5664_p8, %p5663_p6 }
  0xbf   : > { %p5666_p13 = pnand %p5665_p9, %p5659_p10 }
  0xc1   : > { %5669 = shalt.err (!%p5666_p13)
}
  0xc2   : > { %s5670_s23 = scalar_lea.vmem %s1056_s6, 64  ;;  %s5796_s28 = smov [#allocation8]  }
  0xc3   : > { %p5671_p12 = scmp.ne.s32.totalorder %s1056_s6, %s5670_s23  ;;  %s5674_s1 = sshll.u32 %s5796_s28, 4  ;;  %s5675_s1 = int_to_ptr.vmem [resolvable:$false] %s5674_s1 }
  0xc4   : > { %s5676_s20 = scalar_lea.vmem %s5675_s1, 128  ;;  %p5677_p4 = scmp.lt.s32.totalorder %s1056_s6, %s5675_s1 }
  0xc5   : > { %p5672_p0 = pnand %p5671_p12, %p6635_p3  ;;  %p5678_p1 = scmp.lt.s32.totalorder %s5676_s20, %s5670_s23 }
  0xc7   : > { %p5673_p2 = pneg %p5672_p0  ;;  %p5679_p7 = por %p5678_p1, %p5677_p4 }
  0xc9   : > { %p5680_p5 = pnand %p5679_p7, %p5673_p2 }
  0xcb   : > { %5683 = shalt.err (!%p5680_p5)
}
  0xcc   : > { %5394 = dma.hbm_to_vmem [thread:$0]  (%p6635_p3), %s6133_s7, 64, %s1056_s6, %s1045_s12  }
  0xcd PF: > { %p6636_p10 = scmp.ne.s32.totalorder %s6630_s27, 0 }
  0xce   : > { %s6151_s5 = sand.u32 (!%p6636_p10), 1, %s5734_s10   ;;  %p6637_p3 = scmp.ne.s32.totalorder (!%p6636_p10), %s6626_s26, 0 }
  0xcf   : > { %1072 = sbr.rel (%p6636_p10) target bundleno = 4661 (0x1235), region = 189  ;;  %s4703_s23 = sshll.u32 (!%p6636_p10), %s6151_s5, 2 }
  0xd0   : > { %s5387_s4 = smul.u32 (!%p6636_p10), 20, %s6151_s5  ;;  %s1082_s1 = scalar_lea.sflag (!%p6636_p10), [#allocation9], %s6151_s5 }
  0xd1   : > { %s6158_s18 = scalar_lea.vmem (!%p6636_p10), [#allocation8], %s4703_s23 }
  0xd2   : > { %s1077_s28 = scalar_lea.vmem (!%p6636_p10), [#allocation7], %s5387_s4 }
  0xd6   : > { %5717 = dma.done.wait (%p6637_p3), %s1082_s1, 64  }
  0xd7   : > { %5719 = vsyncadd (%p6637_p3), %s1082_s1, 4294967232  ;;  %p6638_p11 = scmp.ne.s32.totalorder %s6623_s2, 0 }
  0xd9   : > { %5721 = dma.done.wait (%p6638_p11), [#allocation11], 80  }
  0xda   : > { %5723 = vsyncadd (%p6638_p11), [#allocation11], 4294967216 }
  0xdb   : > { %5725 = dma.done.wait (%p6638_p11), [#allocation14], 16  }
  0xdc   : > { %5727 = vsyncadd (%p6638_p11), [#allocation14], 4294967280  ;;  %v5797_v5 = vmov 0.0   ;;  %vm5798_vm0 = vmmov 0   ;;  %s6173_s27 = sshll.u32 %s5742_s15, 2  ;;  %vm1228_vm1 = vcmask 1043456  }
  0xdd   : > { %4978 = vmatprep.subr.mxu1 %v5797_v5  ;;  %4980 = vmatprep.mubr.msk.f32.mxu1 %vm5798_vm0, %v5797_v5  ;;  %s1214_s26 = scalar_lea.vmem %s1077_s28, %s6173_s27 [#allocation7]  ;;  %vm1224_vm2 = vcmask 31744   ;;  %v1216_v6 = vld [vmem:[#allocation10] sm:$0xf]  ;;  %p1198_p6 = scmp.lt.s32.totalorder %s5746_s16, 1  ;;  %v4714_v10 = vld [vmem:[%s5847_s29] ss:$0 sm:$0xff] }
  0xde   : > { %v6176_v7 = vld [vmem:[%s1214_s26] sm:$0xf]  ;;  %4979 = vmatpush3.msk.msra.mxu1 %vm1228_vm1, %v1216_v6  ;;  %v1475_v12 = vld [vmem:[%s5857_s8 + $0x8] sm:$0xff]  ;;  %v1476_v19 = vld [vmem:[%s5857_s8 + $0x10] sm:$0xf]  ;;  %vm1477_vm3 = vcmask 162816  }
  0xdf   : > { %4981 = vmatmul.mubr.msk.f32.vlgmr.msra.gmra.mrb[0].mxu1 %vm1224_vm2, %v6176_v7  ;;  %s1199_s2 = scalar_select %p1198_p6, %s5746_s16, 1  ;;  %v1474_v11 = vld [vmem:[%s5857_s8] sm:$0xff]  ;;  %v1472_v21 = vld [vmem:[%s6620_s3 + $0x8] sm:$0xff]  ;;  %v1473_v27 = vld [vmem:[%s6620_s3 + $0x10] sm:$0xf]  ;;  %vm1668_vm4 = vcmask 261120  }
  0xe0   : > { %v5257_v18 = vpack.c.bf16 %v1475_v12, %v1474_v11  ;;  %v1471_v20 = vld [vmem:[%s6620_s3] sm:$0xff]  ;;  %v1658_v29 = vld [vmem:[%s5867_s19 + $0x8] sm:$0xff]  ;;  %v1659_v30 = vld [vmem:[%s5867_s19 + $0x10] sm:$0xff]  ;;  %s6232_s23 = scalar_lea.vmem [#allocation15], %s5387_s4  ;;  %p4735_p8 = scmp.ne.s32.totalorder %s5742_s15, 0 }
  0xe1   : > { %s6183_s7 = sshll.u32 %s1199_s2, 4  ;;  %v5261_v22 = vpack.c.bf16 %v1472_v21, %v1471_v20  ;;  %v1657_v28 = vld [vmem:[%s5867_s19] sm:$0xff]  ;;  %v1660_v32 = vld [vmem:[%s5867_s19 + $0x18] sm:$0xff]  ;;  %v4729_v34 = vld [vmem:[#allocation12] ss:$0 sm:$0xff]  ;;  %v5799_v61 = vmov (!%p4735_p8), 0.0|0.0  }
  0xe2   : > { %s1207_s6 = scalar_lea.vmem %s5827_s13, %s6183_s7  ;;  %s1202_s12 = scalar_lea.vmem %s5822_s9, %s6183_s7  ;;  %v5265_v31 = vpack.c.bf16 %v1658_v29, %v1657_v28  ;;  %v5269_v33 = vpack.c.bf16 %v1660_v32, %v1659_v30  ;;  %v1756_v41 = vld [vmem:[%s5877_s30] sm:$0xff]  ;;  %v1757_v42 = vld [vmem:[%s5877_s30 + $0x8] sm:$0xff]  ;;  %v1758_v43 = vld [vmem:[%s5877_s30 + $0x10] sm:$0xff]  ;;  %vm5800_vm5 = vmmov (!%p4735_p8), 1   ;;  %vm5801_vm7 = vmmov (!%p4735_p8), 0  }
  0xe3   : > { %v1388_v8 = vld [vmem:[%s1207_s6] sm:$0xff]  ;;  %v1389_v16 = vld [vmem:[%s1207_s6 + $0x8] sm:$0xf]  ;;  %v5273_v44 = vpack.c.bf16 %v1757_v42, %v1756_v41  ;;  %v1759_v45 = vld [vmem:[%s5877_s30 + $0x18] sm:$0xff]  ;;  %s1212_s20 = scalar_lea.vmem %s5837_s21, %s6183_s7  ;;  %s6639_s28 = sld [smem:[#allocation35_spill]] (!%p4735_p8)  ;;  %v5802_v62 = vmov (!%p4735_p8), 0.0  }
  0xe4   : > { %4990 = vmatprep.mubr.msk.f32.mxu0 %vm1224_vm2, %v1388_v8  ;;  %v1302_v9 = vld [vmem:[%s1202_s12] sm:$0xff]  ;;  %v1303_v17 = vld [vmem:[%s1202_s12 + $0x8] sm:$0xf]  ;;  %v5277_v46 = vpack.c.bf16 %v1759_v45, %v1758_v43  ;;  %v4730_v47 = vld [vmem:[#allocation13] ss:$0 sm:$0xff]  ;;  %s6640_s1 = sld [smem:[#allocation37_spill]] (!%p4735_p8) }
  0xe5   : > { %4985 = vmatprep.mubr.msk.f32.mxu1 %vm1224_vm2, %v1302_v9  ;;  %v1753_v52 = vld [vmem:[%s1212_s20 + $0x8] sm:$0xf]  ;;  %v1752_v53 = vld [vmem:[%s1212_s20] sm:$0xff]  ;;  %vm5283_vm6 = vmpackc.low (!%p4735_p8), %vm1228_vm1, %vm5800_vm5  ;;  %vm1846_vm8 = vcmask (!%p4735_p8), 97280   ;;  %vm1930_vm9 = vcmask (!%p4735_p8), 125952   ;;  %s6641_s5 = sld [smem:[#allocation27_spill]] (!%p4735_p8) }
  0xe6   : > { %v1845_v63 = vld [vmem:[%s6158_s18] sm:$0xf] (!%p4735_p8)  ;;  %vm1934_vm10 = vcmask (!%p4735_p8), 60416   ;;  %s5803_s4 = smov (!%p4735_p8), 4   ;;  %vm1932_vm11 = vcmask (!%p4735_p8), 158720   ;;  %s6642_s26 = sld [smem:[#allocation29_spill]] (!%p4735_p8) }
  0xe7   : > { %1935 = vst.msk [vmem:[#allocation4] sm:$0xf] (!%p4735_p8), %vm1934_vm10, %v5802_v62  ;;  %1936 = vst.msk [vmem:[#allocation4 + $0x4] sm:$0xf] (!%p4735_p8), %vm1934_vm10, %v5802_v62  ;;  %s6643_s2 = sld [smem:[#allocation36_spill]] (!%p4735_p8)  ;;  %s6644_s7 = sld [smem:[#allocation38_spill]] (!%p4735_p8) }
  0xe8   : > { %1937 = vst.msk [vmem:[#allocation4 + $0x8] sm:$0xf] (!%p4735_p8), %vm1934_vm10, %v5802_v62  ;;  %1938 = vst.msk [vmem:[#allocation4 + $0xc] sm:$0xf] (!%p4735_p8), %vm1934_vm10, %v5802_v62  ;;  %s6645_s6 = sld [smem:[#allocation28_spill]] (!%p4735_p8)  ;;  %vm1928_vm12 = vcmask (!%p4735_p8), 130048  }
  0xe9   : > { %v1945_v0 = vld [vmem:[%s6639_s28] sm:$0xff] (!%p4735_p8)  ;;  %v1946_v1 = vld [vmem:[%s6639_s28 + $0x8] sm:$0xff] (!%p4735_p8)  ;;  %v1947_v6 = vld [vmem:[%s6639_s28 + $0x10] sm:$0xf] (!%p4735_p8)  ;;  %1939 = vst.msk [vmem:[#allocation4 + $0x10] sm:$0xf] (!%p4735_p8), %vm1934_vm10, %v5802_v62 }
  0xea   : > { %v2032_v2 = vld [vmem:[%s6640_s1] sm:$0xff] (!%p4735_p8)  ;;  %v5286_v3 = vpack.c.bf16 (!%p4735_p8), %v1946_v1, %v1945_v0  ;;  %v2033_v4 = vld [vmem:[%s6640_s1 + $0x8] sm:$0xff] (!%p4735_p8)  ;;  %v2034_v8 = vld [vmem:[%s6640_s1 + $0x10] sm:$0xf] (!%p4735_p8)  ;;  %1941 = vst.msk [vmem:[#allocation5 + $0x4] sm:$0xf] (!%p4735_p8), %vm1934_vm10, %v5802_v62  ;;  %s2368_s1 = scalar_lea.vmem (!%p4735_p8), %s6232_s23, %s6173_s27 [#allocation15] }
  0xeb   : > { %v5289_v5 = vpack.c.bf16 (!%p4735_p8), %v2033_v4, %v2032_v2  ;;  %1942 = vst.msk [vmem:[#allocation5 + $0x8] sm:$0xf] (!%p4735_p8), %vm1934_vm10, %v5802_v62  ;;  %1943 = vst.msk [vmem:[#allocation5 + $0xc] sm:$0xf] (!%p4735_p8), %vm1934_vm10, %v5802_v62  ;;  %v2118_v11 = vld [vmem:[%s6641_s5] sm:$0xff] (!%p4735_p8)  ;;  %v2119_v12 = vld [vmem:[%s6641_s5 + $0x8] sm:$0xff] (!%p4735_p8) }
  0xec   : > { %1944 = vst.msk [vmem:[#allocation5 + $0x10] sm:$0xf] (!%p4735_p8), %vm1934_vm10, %v5802_v62  ;;  %1940 = vst.msk [vmem:[#allocation5] sm:$0xf] (!%p4735_p8), %vm1934_vm10, %v5802_v62  ;;  %s6646_s12 = sld [smem:[#allocation31_spill]] (!%p4735_p8)  ;;  %s6647_s20 = sld [smem:[#allocation30_spill]] (!%p4735_p8) }
  0xed   : > { %v4738_v20 = vld [vmem:[%s6643_s2] ss:$0 sm:$0xff] (!%p4735_p8)  ;;  %s6648_s28 = sld [smem:[#allocation32_spill]] (!%p4735_p8)  ;;  %vm2369_vm13 = vcmask (!%p4735_p8), 27648  }
  0xee   : > { %v4741_v21 = vld [vmem:[%s6644_s7] ss:$0 sm:$0xff] (!%p4735_p8) }
  0xef   : > { %v4744_v30 = vld [vmem:[%s6645_s6] ss:$0 sm:$0xff] (!%p4735_p8) }
  0xf3   : > { %v4749_v43 = vld [vmem:[%s6648_s28] ss:$0 sm:$0xff] (!%p4735_p8) }
 0x1b2   : > { %v1298_v13 = vpop.f32.mrb[0].mxu1 }
 0x1b3   : > { %v1299_v14 = vadd.f32 %v4714_v10, %v1298_v13  ;;  %v4982_v15 = vpop.f32.mrb[1].mxu1  ;;  %v5292_v13 = vpack.c.bf16 (!%p4735_p8), %v2119_v12, %v2118_v11 }
 0x1b5   : > { %4983 = vmatprep.subr.msk.mxu1 %vm1228_vm1, %v1299_v14  ;;  %4988 = vmatprep.subr.msk.mxu0 %vm1228_vm1, %v1299_v14 }
 0x1b6   : > { %4984 = vmatpush3.msk.msra.mxu1 %vm1228_vm1, %v1299_v14  ;;  %4989 = vmatpush3.msk.msra.mxu0 %vm1228_vm1, %v1299_v14 }
 0x1b7   : > { %4991 = vmatmul.mubr.msk.f32.vlgmr.msra.gmra.mrb[0].mxu0 %vm1224_vm2, %v1389_v16  ;;  %4986 = vmatmul.mubr.msk.f32.vlgmr.msra.gmra.mrb[2].mxu1 %vm1224_vm2, %v1303_v17  ;;  %v2120_v16 = vld [vmem:[%s6641_s5 + $0x10] sm:$0xf] (!%p4735_p8)  ;;  %v2202_v17 = vld [vmem:[%s6642_s26] sm:$0xff] (!%p4735_p8) }
 0x1b8   : > { %5258 = vmatprep.subr.bf16.mxu1 %v5257_v18  ;;  %5266 = vmatprep.subr.bf16.mxu0 %v5265_v31 }
 0x1b9   : > { %5260 = vmatpush3.bf16.msra.mxu1 %v5257_v18  ;;  %5268 = vmatpush3.bf16.msra.mxu0 %v5265_v31  ;;  %v2203_v18 = vld [vmem:[%s6642_s26 + $0x8] sm:$0xff] (!%p4735_p8) }
 0x1ba   : > { %4997 = vmatprep.subr.msk.mxu1 %vm1228_vm1, %v1476_v19  ;;  %5270 = vmatprep.subr.bf16.mxu0 %v5269_v33 }
 0x1bd   : > { %4998 = vmatpush3.msk.msra.mxu1 %vm1228_vm1, %v1476_v19  ;;  %5272 = vmatpush3.bf16.msra.mxu0 %v5269_v33  ;;  %v5295_v19 = vpack.c.bf16 (!%p4735_p8), %v2203_v18, %v2202_v17 }
 0x1be   : > { %5262 = vmatprep.subr.bf16.mxu1 %v5261_v22  ;;  %5274 = vmatprep.subr.bf16.mxu0 %v5273_v44 }
 0x28a   : > { %v4992_v23 = vpop.f32.mrb[0].mxu0  ;;  %v4987_v24 = vpop.f32.mrb[2].mxu1 }
 0x28b   : > { %v1462_v25 = vpop.f32.mrb[1].mxu0  ;;  %v1379_v26 = vpop.f32.mrb[3].mxu1 }
 0x28c   : > { %4999 = vmatprep.mubr.msk.f32.mxu1 %vm1477_vm3, %v1462_v25 }
 0x28d   : > { %5000 = vmatmul.mubr.msk.f32.vlgmr.msra.gmra.mrb[4].mxu1 %vm1477_vm3, %v4992_v23 }
 0x28e   : > { %5264 = vmatpush3.bf16.msra.mxu1 %v5261_v22  ;;  %5008 = vmatprep.mubr.msk.f32.mxu1 %vm1477_vm3, %v1379_v26 }
 0x28f   : > { %5006 = vmatprep.subr.msk.mxu1 %vm1228_vm1, %v1473_v27 }
 0x292   : > { %5007 = vmatpush3.msk.msra.mxu1 %vm1228_vm1, %v1473_v27 }
 0x293   : > { %5285 = vmatprep.subr.bf16.mxu1 (!%p4735_p8), %v5799_v61 }
 0x295   : > { %5009 = vmatmul.mubr.msk.f32.vlgmr.msra.gmra.mrb[4].mxu1 %vm1477_vm3, %v4987_v24 }
 0x296   : > { %5046 = vmatprep.mubr.msk.f32.mxu1 (!%p4735_p8), %vm5801_vm7, %v5802_v62  ;;  %5287 = vmatpush3.bf16.msra.mxu1 (!%p4735_p8), %v5286_v3 }
 0x297   : > { %5044 = vmatprep.subr.mxu1 (!%p4735_p8), %v5802_v62 }
 0x29a   : > { %5045 = vmatpush3.msk.msra.mxu1 (!%p4735_p8), %vm1228_vm1, %v1947_v6 }
 0x29b   : > { %5291 = vmatprep.subr.bf16.mxu1 (!%p4735_p8), %v5799_v61 }
 0x368   : > { %v5010_v35 = vpop.f32.mrb[4].mxu1 }
 0x369   : > { %v1654_v36 = vadd.f32 %v5010_v35, %v4729_v34  ;;  %v1637_v37 = vpop.f32.mrb[5].mxu1  ;;  %v2285_v35 = vld [vmem:[%s6646_s12] sm:$0xff] (!%p4735_p8) }
 0x36a   : > { %v1653_v38 = vadd.f32 %v4729_v34, %v1637_v37 }
 0x36c   : > { %5530 = vtanh.f32 %v1653_v38  ;;  %v4747_v38 = vld [vmem:[%s6647_s20] ss:$0 sm:$0xff] (!%p4735_p8) }
 0x36d   : > { %5532 = vtanh.f32 %v1654_v36  ;;  %v2286_v36 = vld [vmem:[%s6646_s12 + $0x8] sm:$0xff] (!%p4735_p8) }
 0x36e   : > { %v5298_v37 = vpack.c.bf16 (!%p4735_p8), %v2286_v36, %v2285_v35 }
 0x376   : > { %v5531_v39 = vpop.eup %5530 }
 0x377   : > { %v5533_v40 = vpop.eup %5532  ;;  %5019 = vmatprep.mubr.msk.f32.mxu0 %vm1668_vm4, %v5531_v39 }
 0x378   : > { %5020 = vmatmul.mubr.msk.f32.vlgmr.msra.gmra.mrb[2].mxu0 %vm1668_vm4, %v5533_v40 }
 0x379   : > { %5276 = vmatpush3.bf16.msra.mxu0 %v5273_v44 }
 0x37a   : > { %5278 = vmatprep.subr.bf16.mxu0 %v5277_v46 }
 0x37d   : > { %5280 = vmatpush3.bf16.msra.mxu0 %v5277_v46 }
 0x37e   : > { %5281 = vmatprep.subr.bf16.mxu0 (!%p4735_p8), %v5799_v61 }
 0x44b   : > { %v5021_v48 = vpop.f32.mrb[2].mxu0 }
 0x44c   : > { %v1747_v49 = vadd.f32 %v5021_v48, %v4730_v47  ;;  %v1741_v50 = vpop.f32.mrb[3].mxu0 }
 0x44d   : > { %v1742_v51 = vadd.f32 %v4730_v47, %v1741_v50 }
 0x44e   : > { %5534 = vtanh.f32 %v1747_v49 }
 0x44f   : > { %5536 = vtanh.f32 %v1742_v51 }
 0x458   : > { %v5535_v54 = vpop.eup %5534 }
 0x459   : > { %v5537_v55 = vpop.eup %5536  ;;  %v1755_v56 = vmul.f32 %v5535_v54, %v1753_v52 }
 0x45a   : > { %v1754_v57 = vmul.f32 %v5537_v55, %v1752_v53 }
 0x45c   : > { %5030 = vmatprep.mubr.msk.f32.mxu0 %vm1668_vm4, %v1754_v57 }
 0x45d   : > { %5031 = vmatmul.mubr.msk.f32.vlgmr.msra.gmra.mrb[4].mxu0 %vm1668_vm4, %v1755_v56 }
 0x45e   : > { %5037 = vmatprep.mubr.msk.f32.mxu0 (!%p4735_p8), %vm5801_vm7, %v5802_v62 }
 0x52b   : > { %1844 = sbr.rel (%p4735_p8) target bundleno = 2318 (0x90e), region = 213 }
 0x530   : > { %v6226_v58 = vpop.f32.mrb[4].mxu0 }
 0x531   : > { %v6228_v59 = vpop.f32.mrb[5].mxu0  ;;  %1931 = vst.msk [vmem:[#allocation3 + $0x8] sm:$0xf] (!%p4735_p8), %vm1930_vm9, %v6226_v58 }
 0x532   : > { %v5282_v60 = vpack.c.bf16 %v6226_v58, %v6228_v59  ;;  %1929 = vst.msk [vmem:[#allocation3] sm:$0xff] %vm1928_vm12, %v6228_v59 }
 0x534   : > { %5284 = vmatpush3.bf16.msk.msra.mxu0 %vm5283_vm6, %v5282_v60 }
 0x535   : > { %5288 = vmatprep.subr.bf16.mxu0 %v5799_v61 }
 0x537   : > { %5038 = vmatmul.mubr.msk.f32.vlgmr.msra.gmra.mrb[0].mxu0 %vm1846_vm8, %v1845_v63 }
 0x538   : > { %5055 = vmatprep.mubr.msk.f32.mxu0 %vm5801_vm7, %v5802_v62  ;;  %5290 = vmatpush3.bf16.msra.mxu0 %v5289_v5 }
 0x539   : > { %5053 = vmatprep.subr.mxu0 %v5802_v62 }
 0x53c   : > { %5054 = vmatpush3.msk.msra.mxu0 %vm1228_vm1, %v2034_v8 }
 0x53d   : > { %5294 = vmatprep.subr.bf16.mxu0 %v5799_v61 }
 0x60a   : > { %v1919_v9 = vpop.f32.mrb[0].mxu0 }
 0x60b   : > { %v5039_v10 = vpop.f32.mrb[1].mxu0  ;;  %1924 = vrot.lane.b32.xlu0 %v1919_v9, %s5803_s4 }
 0x67d   : > { %v1925_v14 = vpop.permute.xlu0 %1924 }
 0x67e   : > { %v1927_v15 = vsel %vm1224_vm2, %v6176_v7, %v1925_v14 }
 0x67f   : > { %1933 = vst.msk [vmem:[#allocation2] sm:$0xf] %vm1932_vm11, %v1927_v15  ;;  %5047 = vmatmul.mubr.msk.f32.vlgmr.msra.gmra.mrb[0].mxu1 %vm1477_vm3, %v1927_v15  ;;  %5056 = vmatmul.mubr.msk.f32.vlgmr.msra.gmra.mrb[2].mxu0 %vm1477_vm3, %v1927_v15 }
 0x680   : > { %5293 = vmatpush3.bf16.msra.mxu1 %v5292_v13  ;;  %5064 = vmatprep.mubr.msk.f32.mxu1 %vm5801_vm7, %v5802_v62 }
 0x681   : > { %5062 = vmatprep.subr.mxu1 %v5802_v62  ;;  %5071 = vmatprep.mubr.msk.f32.mxu0 %vm5801_vm7, %v5802_v62 }
 0x682   : > { %5296 = vmatpush3.bf16.msra.mxu0 %v5295_v19 }
 0x684   : > { %5063 = vmatpush3.msk.msra.mxu1 %vm1228_vm1, %v2120_v16 }
 0x685   : > { %5065 = vmatmul.mubr.msk.f32.vlgmr.msra.gmra.mrb[2].mxu1 %vm1477_vm3, %v1927_v15  ;;  %5297 = vmatprep.subr.bf16.mxu1 %v5799_v61 }
 0x686   : > { %5078 = vmatprep.mubr.msk.f32.mxu1 %vm5801_vm7, %v5802_v62  ;;  %5299 = vmatpush3.bf16.msra.mxu1 %v5298_v37 }
 0x752   : > { %v2027_v22 = vpop.f32.mrb[0].mxu1  ;;  %v2111_v23 = vpop.f32.mrb[2].mxu0 }
 0x753   : > { %v2028_v24 = vadd.f32 %v4738_v20, %v2027_v22  ;;  %v2112_v25 = vadd.f32 %v4741_v21, %v2111_v23  ;;  %v5048_v26 = vpop.f32.mrb[1].mxu1  ;;  %v5057_v27 = vpop.f32.mrb[3].mxu0 }
 0x755   : > { %v2031_v28 = vmax.f32 %v2028_v24, 0.0  ;;  %v2115_v29 = vmax.f32 %v2112_v25, 0.0 }
 0x757   : > { %2116 = vst.msk [vmem:[#allocation4] sm:$0xf] %vm1934_vm10, %v2031_v28  ;;  %2117 = vst.msk [vmem:[#allocation5] sm:$0xf] %vm1934_vm10, %v2115_v29 }
 0x758   : > { %v2197_v31 = vpop.f32.mrb[2].mxu1 }
 0x759   : > { %v2198_v32 = vadd.f32 %v4744_v30, %v2197_v31  ;;  %v5066_v33 = vpop.f32.mrb[3].mxu1 }
 0x75b   : > { %v2201_v34 = vmax.f32 %v2198_v32, 0.0 }
 0x75d   : > { %5072 = vmatmul.mubr.msk.f32.vlgmr.msra.gmra.mrb[4].mxu0 %vm1928_vm12, %v2201_v34 }
 0x830   : > { %v2280_v39 = vpop.f32.mrb[4].mxu0 }
 0x831   : > { %v2281_v40 = vadd.f32 %v4747_v38, %v2280_v39  ;;  %v5073_v41 = vpop.f32.mrb[5].mxu0 }
 0x833   : > { %v2284_v42 = vmax.f32 %v2281_v40, 0.0 }
 0x835   : > { %5079 = vmatmul.mubr.msk.f32.vlgmr.msra.gmra.mrb[4].mxu1 %vm1928_vm12, %v2284_v42 }
 0x908   : > { %v2363_v44 = vpop.f32.mrb[4].mxu1 }
 0x909   : > { %v2364_v45 = vadd.f32 %v4749_v43, %v2363_v44  ;;  %v5080_v46 = vpop.f32.mrb[5].mxu1 }
 0x90b   : > { %v2367_v47 = vadd.f32 %v2364_v45, %v6176_v7 }
 0x90d   : > { %2370 = vst.msk [vmem:[%s2368_s1] sm:$0xf] %vm2369_vm13, %v2367_v47 }
 0x90e PF: > { %p4751_p9 = scmp.le.s32.totalorder %s5742_s15, 0 }
 0x90f   : > { %s6649_s5 = sld [smem:[#allocation21_spill]] (!%p4751_p9)  ;;  %s6650_s4 = sld [smem:[#allocation23_spill]] (!%p4751_p9)  ;;  %vm2386_vm14 = vcmask (!%p4751_p9), 130048   ;;  %v5804_v6 = vmov (!%p4751_p9), 0.0|0.0   ;;  %vm5805_vm15 = vmmov (!%p4751_p9), 0   ;;  %v5806_v8 = vmov (!%p4751_p9), 0.0  }
 0x910   : > { %2374 = sbr.rel (%p4751_p9) target bundleno = 4644 (0x1224), region = 217  ;;  %5085 = vmatprep.mubr.msk.f32.mxu0 (!%p4751_p9), %vm2386_vm14, %v6228_v59  ;;  %5099 = vmatprep.mubr.msk.f32.mxu1 (!%p4751_p9), %vm2386_vm14, %v6228_v59  ;;  %s6651_s26 = sld [smem:[#allocation22_spill]] (!%p4751_p9)  ;;  %vm3516_vm0 = vcmask (!%p4751_p9), 125952   ;;  %vm5807_vm4 = vmmov (!%p4751_p9), 1   ;;  %vm2922_vm6 = vcmask (!%p4751_p9), 97280   ;;  %vm3776_vm7 = vcmask (!%p4751_p9), 60416  }
 0x911   : > { %s6652_s2 = sld [smem:[#allocation24_spill]] (!%p4751_p9)  ;;  %vm5326_vm5 = vmpackc.low (!%p4751_p9), %vm1228_vm1, %vm5807_vm4  ;;  %s6653_s7 = sld [smem:[#allocation26_spill]] (!%p4751_p9)  ;;  %vm3841_vm8 = vcmask (!%p4751_p9), 1041409   ;;  %vm3843_vm9 = vcmask (!%p4751_p9), 1042434   ;;  %vm3845_vm10 = vcmask (!%p4751_p9), 1043459   ;;  %vm3847_vm11 = vcmask (!%p4751_p9), 1044484  }
 0x912   : > { %s6655_s12 = sld [smem:[#allocation33_spill]] (!%p4751_p9)  ;;  %s6656_s20 = sld [smem:[#allocation35_spill]] (!%p4751_p9)  ;;  %vm3851_vm13 = vcmask (!%p4751_p9), 28672  }
 0x913   : > { %s6657_s28 = sld [smem:[#allocation25_spill]] (!%p4751_p9)  ;;  %s6658_s1 = sld [smem:[#allocation37_spill]] (!%p4751_p9) }
 0x914   : > { %v6324_v5 = vld [vmem:[#allocation3 + $0x8] sm:$0xf] (!%p4751_p9)  ;;  %s3775_s3 = scalar_lea.vmem (!%p4751_p9), [#allocation4], %s6173_s27 }
 0x915   : > { %v2377_v48 = vld [vmem:[%s6649_s5] sm:$0xff] (!%p4751_p9)  ;;  %v2378_v49 = vld [vmem:[%s6649_s5 + $0x8] sm:$0xff] (!%p4751_p9)  ;;  %v4759_v53 = vld [vmem:[%s6649_s5 + $0x10] sm:$0xff] (!%p4751_p9) }
 0x916   : > { %v2468_v50 = vld [vmem:[%s6650_s4] sm:$0xff] (!%p4751_p9)  ;;  %v5300_v51 = vpack.c.bf16 (!%p4751_p9), %v2378_v49, %v2377_v48  ;;  %v2469_v52 = vld [vmem:[%s6650_s4 + $0x8] sm:$0xff] (!%p4751_p9)  ;;  %v4760_v54 = vld [vmem:[%s6649_s5 + $0x18] sm:$0xff] (!%p4751_p9) }
 0x917   : > { %v5304_v55 = vpack.c.bf16 %v2469_v52, %v2468_v50  ;;  %v5308_v56 = vpack.c.bf16 %v4760_v54, %v4759_v53  ;;  %v4765_v57 = vld [vmem:[%s6650_s4 + $0x10] sm:$0xff]  ;;  %v4766_v60 = vld [vmem:[%s6650_s4 + $0x18] sm:$0xff]  ;;  %v4771_v61 = vld [vmem:[%s6649_s5 + $0x20] sm:$0xff]  ;;  %s6654_s6 = smov %s6653_s7 }
 0x918   : > { %5301 = vmatprep.subr.bf16.mxu0 %v5300_v51  ;;  %v4772_v62 = vld [vmem:[%s6649_s5 + $0x28] sm:$0xff]  ;;  %v5312_v63 = vpack.c.bf16 %v4766_v60, %v4765_v57  ;;  %v4777_v0 = vld [vmem:[%s6650_s4 + $0x20] sm:$0xff]  ;;  %v4789_v60 = vld [vmem:[%s6652_s2 + $0x18] sm:$0xff] }
 0x919   : > { %5303 = vmatpush3.bf16.msra.mxu0 %v5300_v51  ;;  %5309 = vmatprep.subr.bf16.mxu1 %v5308_v56  ;;  %v4778_v1 = vld [vmem:[%s6650_s4 + $0x28] sm:$0xff]  ;;  %v5316_v3 = vpack.c.bf16 %v4772_v62, %v4771_v61  ;;  %v4762_v11 = vld [vmem:[%s6651_s26 + $0x1] ss:$0 sm:$0xff]  ;;  %v4774_v31 = vld [vmem:[%s6651_s26 + $0x2] ss:$0 sm:$0xff] }
 0x91a   : > { %5305 = vmatprep.subr.bf16.mxu0 %v5304_v55  ;;  %5311 = vmatpush3.bf16.msra.mxu1 %v5308_v56  ;;  %v6314_v2 = vld [vmem:[#allocation3] sm:$0xff]  ;;  %v5320_v4 = vpack.c.bf16 %v4778_v1, %v4777_v0  ;;  %v3007_v0 = vld [vmem:[%s6652_s2 + $0x10] sm:$0xf] }
 0x91b   : > { %5313 = vmatprep.subr.bf16.mxu1 %v5312_v63  ;;  %v3005_v56 = vld [vmem:[%s6652_s2] sm:$0xff]  ;;  %v3006_v57 = vld [vmem:[%s6652_s2 + $0x8] sm:$0xff] }
 0x91c   : > { %5086 = vmatmul.mubr.msk.f32.vlgmr.msra.gmra.mrb[0].mxu0 %vm2386_vm14, %v6226_v58  ;;  %v5329_v61 = vpack.c.bf16 %v3006_v57, %v3005_v56  ;;  %v4790_v62 = vld [vmem:[%s6652_s2 + $0x20] sm:$0xff]  ;;  %v4791_v1 = vld [vmem:[%s6652_s2 + $0x28] sm:$0xf] }
 0x91d   : > { %5307 = vmatpush3.bf16.msra.mxu0 %v5304_v55  ;;  %5100 = vmatmul.mubr.msk.f32.vlgmr.msra.gmra.mrb[0].mxu1 %vm2386_vm14, %v6226_v58  ;;  %v2921_v55 = vld [vmem:[%s6158_s18] sm:$0xf]  ;;  %s5808_s18 = smov 4  }
 0x91e   : > { %5092 = vmatprep.mubr.msk.f32.mxu0 %vm2386_vm14, %v6314_v2  ;;  %5315 = vmatpush3.bf16.msra.mxu1 %v5312_v63  ;;  %v5335_v63 = vpack.c.bf16 %v4790_v62, %v4789_v60  ;;  %v3691_v57 = vld [vmem:[%s6658_s1] sm:$0xff]  ;;  %v3692_v60 = vld [vmem:[%s6658_s1 + $0x8] sm:$0xff] }
 0x91f   : > { %5106 = vmatprep.mubr.msk.f32.mxu1 %vm2386_vm14, %v6314_v2  ;;  %5317 = vmatprep.subr.bf16.mxu0 %v5316_v3 }
 0x920   : > { %5321 = vmatprep.subr.bf16.mxu1 %v5320_v4 }
 0x924   : > { %5093 = vmatmul.mubr.msk.f32.vlgmr.msra.gmra.mrb[0].mxu0 %vm2386_vm14, %v6324_v5 }
 0x925   : > { %5107 = vmatmul.mubr.msk.f32.vlgmr.msra.gmra.mrb[0].mxu1 %vm2386_vm14, %v6324_v5  ;;  %5319 = vmatpush3.bf16.msra.mxu0 %v5316_v3 }
 0x926   : > { %5323 = vmatpush3.bf16.msra.mxu1 %v5320_v4  ;;  %5113 = vmatprep.mubr.msk.f32.mxu0 %vm2386_vm14, %v6228_v59  ;;  %v4752_v59 = vld [vmem:[%s6651_s26] ss:$0 sm:$0xff] }
 0x927   : > { %5120 = vmatprep.mubr.msk.f32.mxu1 %vm2386_vm14, %v6314_v2  ;;  %5324 = vmatprep.subr.bf16.mxu0 %v5804_v6  ;;  %v3091_v4 = vld [vmem:[%s6653_s7] sm:$0xff]  ;;  %s6659_s7 = sld [smem:[#allocation36_spill]] }
 0x928   : > { %5114 = vmatmul.mubr.msk.f32.vlgmr.msra.gmra.mrb[2].mxu0 %vm2386_vm14, %v6226_v58  ;;  %5328 = vmatprep.subr.bf16.mxu1 %v5804_v6 }
 0x929   : > { %5121 = vmatmul.mubr.msk.f32.vlgmr.msra.gmra.mrb[2].mxu1 %vm2386_vm14, %v6324_v5  ;;  %5127 = vmatprep.mubr.msk.f32.mxu0 %vm5805_vm15, %v5806_v8 }
 0x92a   : > { %5136 = vmatprep.mubr.msk.f32.mxu1 %vm5805_vm15, %v5806_v8  ;;  %5330 = vmatpush3.bf16.msra.mxu1 %v5329_v61 }
 0x92b   : > { %5134 = vmatprep.subr.mxu1 %v5806_v8 }
 0x92e   : > { %5135 = vmatpush3.msk.msra.mxu1 %vm1228_vm1, %v3007_v0  ;;  %v6434_v0 = vpack.c.bf16 %v3692_v60, %v3691_v57 }
 0x92f   : > { %5331 = vmatprep.subr.bf16.mxu1 %v5804_v6 }
 0x9f7   : > { %v5094_v9 = vpop.f32.mrb[0].mxu0 }
 0x9f8   : > { %v5372_v10 = vadd.f32 %v5094_v9, %v4752_v59  ;;  %v2542_v58 = vpop.f32.mrb[1].mxu0  ;;  %v5108_v12 = vpop.f32.mrb[0].mxu1  ;;  %v4797_v9 = vld [vmem:[%s6654_s6 + $0x20] sm:$0xff] }
 0x9f9   : > { %v5373_v13 = vadd.f32 %v4752_v59, %v2542_v58  ;;  %v2720_v14 = vpop.f32.mrb[1].mxu1  ;;  %v5374_v17 = vadd.f32 %v5108_v12, %v4762_v11  ;;  %v4796_v59 = vld [vmem:[%s6654_s6 + $0x18] sm:$0xff] }
 0x9fa   : > { %v4758_v15 = vmul.f32 -1.442695, %v5372_v10  ;;  %v5375_v19 = vadd.f32 %v4762_v11, %v2720_v14  ;;  %v5338_v58 = vpack.c.bf16 %v4797_v9, %v4796_v59  ;;  %v4798_v14 = vld [vmem:[%s6654_s6 + $0x28] sm:$0xf] }
 0x9fb   : > { %v4757_v16 = vmul.f32 -1.442695, %v5373_v13  ;;  %v5115_v18 = vpop.f32.mrb[2].mxu0  ;;  %v4770_v23 = vmul.f32 -1.442695, %v5374_v17  ;;  %v4809_v17 = vld [vmem:[%s6654_s6 + $0x30] sm:$0xff] }
 0x9fc   : > { %5538 = vpow2.f32 %v4758_v15  ;;  %v5122_v20 = vpop.f32.mrb[2].mxu1  ;;  %v2820_v21 = vpop.f32.mrb[3].mxu0  ;;  %v4769_v24 = vmul.f32 -1.442695, %v5375_v19  ;;  %v2826_v34 = vadd.f32 %v5115_v18, %v4774_v31  ;;  %v3093_v13 = vld [vmem:[%s6654_s6 + $0x10] sm:$0xf] }
 0x9fd   : > { %5540 = vpow2.f32 %v4757_v16  ;;  %v2898_v22 = vpop.f32.mrb[3].mxu1  ;;  %v2821_v36 = vadd.f32 %v4774_v31, %v2820_v21  ;;  %v4802_v15 = vld [vmem:[%s6652_s2 + $0x30] sm:$0xff]  ;;  %v4803_v16 = vld [vmem:[%s6652_s2 + $0x38] sm:$0xff]  ;;  %v6389_v19 = vld [vmem:[#allocation2] sm:$0xf] }
 0x9fe   : > { %5542 = vpow2.f32 %v4770_v23  ;;  %v4810_v18 = vld [vmem:[%s6654_s6 + $0x38] sm:$0xff]  ;;  %v4811_v23 = vld [vmem:[%s6654_s6 + $0x40] sm:$0xf]  ;;  %v3609_v31 = vld [vmem:[%s6656_s20 + $0x10] sm:$0xf] }
 0x9ff   : > { %5544 = vpow2.f32 %v4769_v24  ;;  %v5344_v21 = vpack.c.bf16 %v4810_v18, %v4809_v17  ;;  %v3520_v24 = vld [vmem:[%s6655_s12] sm:$0xff] }
 0xa06   : > { %v5539_v25 = vpop.eup %5538 }
 0xa07   : > { %v5541_v26 = vpop.eup %5540  ;;  %v2560_v27 = vadd.f32 1.0, %v5539_v25  ;;  %v3521_v25 = vld [vmem:[%s6655_s12 + $0x8] sm:$0xff] }
 0xa08   : > { %v2559_v28 = vadd.f32 1.0, %v5541_v26  ;;  %v5543_v29 = vpop.eup %5542  ;;  %v3607_v26 = vld [vmem:[%s6656_s20] sm:$0xff] }
 0xa09   : > { %5546 = vrcp.f32 %v2560_v27  ;;  %v5545_v30 = vpop.eup %5544  ;;  %v2738_v32 = vadd.f32 1.0, %v5543_v29  ;;  %v5347_v27 = vpack.c.bf16 %v3521_v25, %v3520_v24 }
 0xa0a   : > { %5548 = vrcp.f32 %v2559_v28  ;;  %v2737_v33 = vadd.f32 1.0, %v5545_v30  ;;  %v3608_v28 = vld [vmem:[%s6656_s20 + $0x8] sm:$0xff]  ;;  %v3522_v30 = vld [vmem:[%s6655_s12 + $0x10] sm:$0xf] }
 0xa0b   : > { %5550 = vrcp.f32 %v2738_v32  ;;  %v5350_v29 = vpack.c.bf16 %v3608_v28, %v3607_v26  ;;  %v4783_v32 = vld [vmem:[%s6657_s28] ss:$0 sm:$0xff] }
 0xa0c   : > { %5552 = vrcp.f32 %v2737_v33 }
 0xa13   : > { %v5547_v35 = vpop.eup %5546 }
 0xa14   : > { %v5549_v37 = vpop.eup %5548  ;;  %v2908_v38 = vmul.f32 %v5547_v35, %v5122_v20  ;;  %v5341_v20 = vpack.c.bf16 %v4803_v16, %v4802_v15 }
 0xa15   : > { %v2907_v39 = vmul.f32 %v5549_v37, %v2898_v22  ;;  %v5551_v42 = vpop.eup %5550  ;;  %v4804_v22 = vld [vmem:[%s6652_s2 + $0x40] sm:$0xf]  ;;  %s6661_s2 = sld [smem:[#allocation38_spill]] }
 0xa16   : > { %v2910_v40 = vadd.f32 %v2908_v38, %v2826_v34  ;;  %v5553_v43 = vpop.eup %5552  ;;  %v2914_v44 = vsub.f32 1.0, %v5551_v42  ;;  %v2918_v48 = vmul.f32 %v5551_v42, %v6324_v5  ;;  %v3092_v5 = vld [vmem:[%s6654_s6 + $0x8] sm:$0xff] }
 0xa17   : > { %v2909_v41 = vadd.f32 %v2907_v39, %v2821_v36  ;;  %v2913_v46 = vsub.f32 1.0, %v5553_v43  ;;  %v2917_v50 = vmul.f32 %v5553_v43, %v6314_v2  ;;  %v5332_v10 = vpack.c.bf16 %v3092_v5, %v3091_v4  ;;  %v4793_v36 = vld [vmem:[%s6657_s28 + $0x1] ss:$0 sm:$0xff] }
 0xa18   : > { %5554 = vtanh.f32 %v2910_v40 }
 0xa19   : > { %5556 = vtanh.f32 %v2909_v41 }
 0xa22   : > { %v5555_v45 = vpop.eup %5554 }
 0xa23   : > { %v5557_v47 = vpop.eup %5556  ;;  %v2916_v49 = vmul.f32 %v5555_v45, %v2914_v44 }
 0xa24   : > { %v2915_v51 = vmul.f32 %v5557_v47, %v2913_v46 }
 0xa25   : > { %v2920_v52 = vadd.f32 %v2918_v48, %v2916_v49 }
 0xa26   : > { %v2919_v53 = vadd.f32 %v2917_v50, %v2915_v51  ;;  %v4806_v50 = vld [vmem:[%s6657_s28 + $0x2] ss:$0 sm:$0xff] }
 0xa27   : > { %3517 = vst.msk [vmem:[#allocation3 + $0x8] sm:$0xf] %vm3516_vm0, %v2920_v52  ;;  %vm3928_vm0 = vcmask 64512  }
 0xa28   : > { %v5325_v54 = vpack.c.bf16 %v2920_v52, %v2919_v53  ;;  %3515 = vst.msk [vmem:[#allocation3] sm:$0xff] %vm2386_vm14, %v2919_v53 }
 0xa2a   : > { %5327 = vmatpush3.bf16.msk.msra.mxu0 %vm5326_vm5, %v5325_v54 }
 0xa2b   : > { %5334 = vmatprep.subr.bf16.mxu0 %v5804_v6 }
 0xa2d   : > { %5128 = vmatmul.mubr.msk.f32.vlgmr.msra.gmra.mrb[4].mxu0 %vm2922_vm6, %v2921_v55 }
 0xa2e   : > { %5154 = vmatprep.mubr.msk.f32.mxu0 %vm5805_vm15, %v5806_v8  ;;  %5336 = vmatpush3.bf16.msra.mxu0 %v5335_v63 }
 0xa2f   : > { %5152 = vmatprep.subr.mxu0 %v5806_v8 }
 0xa32   : > { %5153 = vmatpush3.msk.msra.mxu0 %vm1228_vm1, %v4791_v1 }
 0xa33   : > { %5337 = vmatprep.subr.bf16.mxu0 %v5804_v6 }
 0xb00   : > { %v2995_v2 = vpop.f32.mrb[4].mxu0 }
 0xb01   : > { %3000 = vrot.lane.b32.xlu0 %v2995_v2, %s5808_s18  ;;  %v5129_v3 = vpop.f32.mrb[5].mxu0  ;;  %v3693_v2 = vld [vmem:[%s6658_s1 + $0x10] sm:$0xf]  ;;  %s6660_s18 = sld [smem:[#allocation34_spill]] }
 0xb02   : > { %v6452_v3 = vld [vmem:[%s6659_s7] ss:$0 sm:$0xff]  ;;  %s3778_s7 = scalar_lea.vmem [#allocation5], %s6173_s27 }
 0xb73   : > { %v3001_v11 = vpop.permute.xlu0 %3000 }
 0xb74   : > { %v3003_v12 = vsel %vm1224_vm2, %v6176_v7, %v3001_v11  ;;  %vm3518_vm2 = vcmask 158720   ;;  %v4814_v11 = vld [vmem:[%s6660_s18] ss:$0 sm:$0xff]  ;;  %s6664_s18 = sld [smem:[#allocation27_spill]] }
 0xb75   : > { %5137 = vmatmul.mubr.msk.f32.vlgmr.msra.gmra.mrb[4].mxu1 %vm1477_vm3, %v3003_v12  ;;  %5155 = vmatmul.mubr.msk.f32.vlgmr.msra.gmra.mrb[6].mxu0 %vm1477_vm3, %v3003_v12 }
 0xb76   : > { %5333 = vmatpush3.bf16.msra.mxu1 %v5332_v10  ;;  %5339 = vmatpush3.bf16.msra.mxu0 %v5338_v58 }
 0xb77   : > { %5143 = vmatprep.subr.mxu1 %v5806_v8  ;;  %5161 = vmatprep.subr.mxu0 %v5806_v8 }
 0xb78   : > { %5145 = vmatprep.mubr.msk.f32.mxu1 %vm5805_vm15, %v5806_v8  ;;  %5163 = vmatprep.mubr.msk.f32.mxu0 %vm5805_vm15, %v5806_v8 }
 0xb7a   : > { %5144 = vmatpush3.msk.msra.mxu1 %vm1228_vm1, %v3093_v13  ;;  %5162 = vmatpush3.msk.msra.mxu0 %vm1228_vm1, %v4798_v14 }
 0xb7b   : > { %5340 = vmatprep.subr.bf16.mxu1 %v5804_v6  ;;  %5343 = vmatprep.subr.bf16.mxu0 %v5804_v6 }
 0xb7d   : > { %5146 = vmatmul.mubr.msk.f32.vlgmr.msra.gmra.mrb[4].mxu1 %vm1477_vm3, %v6389_v19  ;;  %5164 = vmatmul.mubr.msk.f32.vlgmr.msra.gmra.mrb[6].mxu0 %vm1477_vm3, %v6389_v19 }
 0xb7e   : > { %5342 = vmatpush3.bf16.msra.mxu1 %v5341_v20  ;;  %5172 = vmatprep.mubr.msk.f32.mxu1 %vm5805_vm15, %v5806_v8 }
 0xb7f   : > { %5170 = vmatprep.subr.mxu1 %v5806_v8  ;;  %5345 = vmatpush3.bf16.msra.mxu0 %v5344_v21 }
 0xb80   : > { %5179 = vmatprep.subr.mxu0 %v5806_v8  ;;  %5181 = vmatprep.mubr.msk.f32.mxu0 %vm5805_vm15, %v5806_v8 }
 0xb82   : > { %5171 = vmatpush3.msk.msra.mxu1 %vm1228_vm1, %v4804_v22 }
 0xb83   : > { %5173 = vmatmul.mubr.msk.f32.vlgmr.msra.gmra.mrb[6].mxu1 %vm1477_vm3, %v3003_v12  ;;  %5180 = vmatpush3.msk.msra.mxu0 %vm1228_vm1, %v4811_v23  ;;  %v6457_v12 = vld [vmem:[%s6661_s2] ss:$0 sm:$0xff]  ;;  %s6663_s2 = sld [smem:[#allocation40_spill]] }
 0xb84   : > { %5182 = vmatmul.mubr.msk.f32.vlgmr.msra.gmra.mrb[8].mxu0 %vm1477_vm3, %v6389_v19  ;;  %5346 = vmatprep.subr.bf16.mxu1 %v5804_v6 }
 0xb85   : > { %5349 = vmatprep.subr.bf16.mxu0 %v5804_v6  ;;  %5190 = vmatprep.mubr.msk.f32.mxu1 %vm5805_vm15, %v5806_v8 }
 0xb86   : > { %5199 = vmatprep.mubr.msk.f32.mxu0 %vm5805_vm15, %v5806_v8  ;;  %5348 = vmatpush3.bf16.msra.mxu1 %v5347_v27 }
 0xb87   : > { %5351 = vmatpush3.bf16.msra.mxu0 %v5350_v29  ;;  %5188 = vmatprep.subr.mxu1 %v5806_v8 }
 0xb88   : > { %5197 = vmatprep.subr.mxu0 %v5806_v8 }
 0xb8a   : > { %5189 = vmatpush3.msk.msra.mxu1 %vm1228_vm1, %v3522_v30 }
 0xb8b   : > { %5198 = vmatpush3.msk.msra.mxu0 %vm1228_vm1, %v3609_v31  ;;  %5352 = vmatprep.subr.bf16.mxu1 %v5804_v6 }
 0xb8c   : > { %5211 = vmatprep.subr.mxu0 %v5806_v8 }
 0xc50   : > { %v3166_v33 = vpop.f32.mrb[4].mxu1  ;;  %v3335_v34 = vpop.f32.mrb[6].mxu0 }
 0xc51   : > { %v5376_v35 = vadd.f32 %v4783_v32, %v3166_v33  ;;  %v5147_v37 = vpop.f32.mrb[5].mxu1  ;;  %v5165_v38 = vpop.f32.mrb[7].mxu0  ;;  %v5377_v40 = vadd.f32 %v4793_v36, %v3335_v34  ;;  %v3810_v34 = vlaneseq }
 0xc53   : > { %v4788_v39 = vmul.f32 -1.442695, %v5376_v35  ;;  %v4801_v44 = vmul.f32 -1.442695, %v5377_v40  ;;  %v6473_v35 = vshrl.u32 %v3810_v34, 7  ;;  %v3820_v36 = vand.u32 127, %v3810_v34 }
 0xc55   : > { %5558 = vpow2.f32 %v4788_v39  ;;  %v3823_v38 = vsub.s32 %v3820_v36, %v6473_v35 }
 0xc56   : > { %v3427_v41 = vpop.f32.mrb[6].mxu1  ;;  %5560 = vpow2.f32 %v4801_v44 }
 0xc57   : > { %v5174_v42 = vpop.f32.mrb[7].mxu1  ;;  %v3504_v43 = vpop.f32.mrb[8].mxu0  ;;  %v3428_v52 = vadd.f32 %v4806_v50, %v3427_v41 }
 0xc58   : > { %v5183_v45 = vpop.f32.mrb[9].mxu0 }
 0xc5f   : > { %v5559_v46 = vpop.eup %5558 }
 0xc60   : > { %v3174_v47 = vadd.f32 1.0, %v5559_v46  ;;  %v5561_v48 = vpop.eup %5560  ;;  %v3812_v46 = vstv %s5742_s15  ;;  %s6662_s15 = sld [smem:[#allocation39_spill]] }
 0xc61   : > { %v3343_v49 = vadd.f32 1.0, %v5561_v48  ;;  %vm3813_vm12 = vcmp.le.s32.totalorder %v6473_v35, %v3812_v46 }
 0xc62   : > { %5562 = vrcp.f32 %v3174_v47 }
 0xc63   : > { %5564 = vrcp.f32 %v3343_v49 }
 0xc6c   : > { %v5563_v51 = vpop.eup %5562 }
 0xc6d   : > { %v3508_v53 = vmul.f32 %v5563_v51, %v3504_v43  ;;  %v5565_v55 = vpop.eup %5564 }
 0xc6e   : > { %v3511_v56 = vsub.f32 1.0, %v5565_v55  ;;  %v3513_v63 = vmul.f32 %v5565_v55, %v6389_v19 }
 0xc6f   : > { %v3509_v54 = vadd.f32 %v3508_v53, %v3428_v52 }
 0xc71   : > { %5566 = vtanh.f32 %v3509_v54 }
 0xc7b   : > { %v5567_v61 = vpop.eup %5566 }
 0xc7c   : > { %v3512_v62 = vmul.f32 %v5567_v61, %v3511_v56 }
 0xc7e   : > { %v3514_v1 = vadd.f32 %v3513_v63, %v3512_v62 }
 0xc80   : > { %3519 = vst.msk [vmem:[#allocation2] sm:$0xf] %vm3518_vm2, %v3514_v1  ;;  %5191 = vmatmul.mubr.msk.f32.vlgmr.msra.gmra.mrb[8].mxu1 %vm1477_vm3, %v3514_v1  ;;  %5200 = vmatmul.mubr.msk.f32.vlgmr.msra.gmra.mrb[10].mxu0 %vm1477_vm3, %v3514_v1 }
 0xc81   : > { %5354 = vmatpush3.bf16.msra.mxu1 %v6434_v0  ;;  %5208 = vmatprep.mubr.msk.f32.mxu1 %vm5805_vm15, %v5806_v8 }
 0xc82   : > { %5206 = vmatprep.subr.mxu1 %v5806_v8  ;;  %5213 = vmatprep.mubr.msk.f32.mxu0 %vm5805_vm15, %v5806_v8 }
 0xc85   : > { %5207 = vmatpush3.msk.msra.mxu1 %vm1228_vm1, %v3693_v2 }
 0xc86   : > { %5209 = vmatmul.mubr.msk.f32.vlgmr.msra.gmra.mrb[10].mxu1 %vm1477_vm3, %v3514_v1  ;;  %5355 = vmatprep.subr.bf16.mxu1 %v5804_v6 }
 0xc87   : > { %5357 = vmatpush3.bf16.msra.mxu1 %v5350_v29  ;;  %5222 = vmatprep.mubr.msk.f32.mxu1 %vm5805_vm15, %v5806_v8 }
 0xc88   : > { %5220 = vmatprep.subr.mxu1 %v5806_v8 }
 0xd53   : > { %v3602_v4 = vpop.f32.mrb[8].mxu1  ;;  %v3686_v5 = vpop.f32.mrb[10].mxu0 }
 0xd54   : > { %v3687_v59 = vadd.f32 %v6452_v3, %v3686_v5  ;;  %v5192_v9 = vpop.f32.mrb[9].mxu1  ;;  %v5201_v10 = vpop.f32.mrb[11].mxu0  ;;  %v3603_v14 = vadd.f32 %v4814_v11, %v3602_v4 }
 0xd56   : > { %v3690_v58 = vmax.f32 %v3687_v59, 0.0  ;;  %v3606_v18 = vmax.f32 %v3603_v14, 0.0  ;;  %v3873_v14 = vsub.s32 0, %v6473_v35 }
 0xd58   : > { %3777 = vst.msk [vmem:[%s3775_s3] sm:$0xf] %vm3776_vm7, %v3690_v58 }
 0xd59   : > { %v3770_v13 = vpop.f32.mrb[10].mxu1 }
 0xd5a   : > { %v3771_v15 = vadd.f32 %v6457_v12, %v3770_v13  ;;  %v5210_v16 = vpop.f32.mrb[11].mxu1  ;;  %v3887_v13 = vsub.s32 2, %v6473_v35 }
 0xd5c   : > { %v3774_v17 = vmax.f32 %v3771_v15, 0.0 }
 0xd5e   : > { %3779 = vst.msk [vmem:[%s3778_s7] sm:$0xf] %vm3776_vm7, %v3774_v17 }
 0xd5f   : > { %v3781_v19 = vld [vmem:[#allocation4 + $0x4] sm:$0xf]  ;;  %v3780_v20 = vld [vmem:[#allocation4] sm:$0xf]  ;;  %v3782_v21 = vld [vmem:[#allocation4 + $0x8] sm:$0xf] }
 0xd60   : > { %v3791_v22 = vmul.f32 %v3781_v19, %v3606_v18  ;;  %v3790_v23 = vmul.f32 %v3780_v20, %v3606_v18  ;;  %v3792_v26 = vmul.f32 %v3782_v21, %v3606_v18  ;;  %v3783_v27 = vld [vmem:[#allocation4 + $0xc] sm:$0xf]  ;;  %v3784_v30 = vld [vmem:[#allocation4 + $0x10] sm:$0xf]  ;;  %v3880_v19 = vsub.s32 1, %v6473_v35 }
 0xd61   : > { %v3793_v29 = vmul.f32 %v3783_v27, %v3606_v18  ;;  %v3794_v32 = vmul.f32 %v3784_v30, %v3606_v18  ;;  %v3894_v21 = vsub.s32 3, %v6473_v35 }
 0xd62   : > { %v3798_v24 = vsel %vm3776_vm7, %v3791_v22, 0.0  ;;  %v3795_v25 = vsel %vm3776_vm7, %v3790_v23, 0.0  ;;  %v3801_v28 = vsel %vm3776_vm7, %v3792_v26, 0.0  ;;  %v3920_v22 = vld [vmem:[%s6662_s15] sm:$0xff]  ;;  %s6665_s15 = sld [smem:[#allocation29_spill]] }
 0xd63   : > { %3799 = vadd.xlane.f32.xlu1 %v3798_v24  ;;  %3796 = vadd.xlane.f32.xlu0 %v3795_v25  ;;  %v3804_v31 = vsel %vm3776_vm7, %v3793_v29, 0.0  ;;  %v3807_v33 = vsel %vm3776_vm7, %v3794_v32, 0.0  ;;  %v3901_v24 = vsub.s32 4, %v6473_v35 }
 0xd64   : > { %5212 = vmatpush3.msra.mxu0 %v3920_v22 }
 0xd65   : > { %5358 = vmatprep.subr.bf16.mxu0 %v5804_v6  ;;  %v3787_v30 = vld [vmem:[#allocation5 + $0x8] sm:$0xf] }
 0xd67   : > { %3802 = vadd.xlane.f32.xlu1 %v3801_v28  ;;  %v3785_v28 = vld [vmem:[#allocation5] sm:$0xf] }
 0xd6b   : > { %3805 = vadd.xlane.f32.xlu1 %v3804_v31  ;;  %v3786_v31 = vld [vmem:[#allocation5 + $0x4] sm:$0xf] }
 0xd6f   : > { %3808 = vadd.xlane.f32.xlu1 %v3807_v33 }
 0xdf0   : > { %v3800_v37 = vpop.xlane.xlu1 %3799  ;;  %v3797_v40 = vpop.xlane.xlu0 %3796 }
 0xdf1   : > { %v3828_v41 = vrot.slane %v3800_v37, %v3823_v38  ;;  %v3824_v42 = vrot.slane %v3797_v40, %v3823_v38 }
 0xdf3   : > { %v3842_v47 = vsel %vm3841_vm8, %v3828_v41, %v3824_v42 }
 0xdf4   : > { %v3803_v39 = vpop.xlane.xlu1 %3802 }
 0xdf5   : > { %v3832_v44 = vrot.slane %v3803_v39, %v3823_v38  ;;  %v3788_v39 = vld [vmem:[#allocation5 + $0xc] sm:$0xf] }
 0xdf7   : > { %v3844_v49 = vsel %vm3843_vm9, %v3832_v44, %v3842_v47  ;;  %v3789_v44 = vld [vmem:[#allocation5 + $0x10] sm:$0xf] }
 0xdf8   : > { %v3806_v43 = vpop.xlane.xlu1 %3805 }
 0xdf9   : > { %v3836_v45 = vrot.slane %v3806_v43, %v3823_v38 }
 0xdfb   : > { %v3846_v51 = vsel %vm3845_vm10, %v3836_v45, %v3844_v49 }
 0xdfc   : > { %v3809_v48 = vpop.xlane.xlu1 %3808 }
 0xdfd   : > { %v3840_v50 = vrot.slane %v3809_v48, %v3823_v38 }
 0xdff   : > { %v3848_v52 = vsel %vm3847_vm11, %v3840_v50, %v3846_v51  ;;  %v4005_v50 = vld [vmem:[%s6656_s20 + $0x10] sm:$0xf]  ;;  %s6666_s20 = sld [smem:[#allocation28_spill]] }
 0xe00   : > { %v3850_v53 = vsel %vm3813_vm12, %v3848_v52, -1e+30  ;;  %v4092_v51 = vld [vmem:[%s6658_s1 + $0x10] sm:$0xf]  ;;  %5221 = vmatpush3.msk.msra.mxu1 %vm1228_vm1, %v4005_v50  ;;  %v4823_v52 = vld [vmem:[%s6663_s2] ss:$0 sm:$0xff] }
 0xe01   : > { %v3852_v54 = vsel %vm3851_vm13, %v3850_v53, -inf  ;;  %5361 = vmatprep.subr.bf16.mxu1 %v5804_v6  ;;  %s6667_s1 = sld [smem:[#allocation31_spill]]  ;;  %s6668_s2 = sld [smem:[#allocation30_spill]] }
 0xe02   : > { %v3853_v55 = vrot.slane %v3852_v54, 4 }
 0xe04   : > { %v3854_v56 = vmax.f32 %v3852_v54, %v3853_v55 }
 0xe06   : > { %v3855_v57 = vrot.slane %v3854_v56, 2 }
 0xe08   : > { %v3856_v60 = vmax.f32 %v3854_v56, %v3855_v57 }
 0xe0a   : > { %v3857_v61 = vrot.slane %v3856_v60, 1 }
 0xe0c   : > { %v3858_v62 = vmax.f32 %v3856_v60, %v3857_v61  ;;  %v4178_v61 = vld [vmem:[%s6664_s18 + $0x10] sm:$0xf] }
 0xe0e   : > { %v3859_v63 = vsub.f32 %v3850_v53, %v3858_v62  ;;  %v4176_v53 = vld [vmem:[%s6664_s18] sm:$0xff] }
 0xe0f   : > { %v4260_v62 = vld [vmem:[%s6665_s15] sm:$0xff] }
 0xe10   : > { %v3860_v1 = vmul.f32 1.442695, %v3859_v63  ;;  %v4261_v63 = vld [vmem:[%s6665_s15 + $0x8] sm:$0xff] }
 0xe12   : > { %5568 = vpow2.f32 %v3860_v1  ;;  %v5365_v1 = vpack.c.bf16 %v4261_v63, %v4260_v62 }
 0xe1c   : > { %v5569_v2 = vpop.eup %5568 }
 0xe1d   : > { %v3862_v4 = vsel %vm3851_vm13, %v5569_v2, 0.0 }
 0xe1e   : > { %v3863_v5 = vrot.slane %v3862_v4, 4 }
 0xe20   : > { %v3864_v59 = vadd.f32 %v3863_v5, %v3862_v4 }
 0xe22   : > { %v3865_v9 = vrot.slane %v3864_v59, 2 }
 0xe24   : > { %v3866_v10 = vadd.f32 %v3865_v9, %v3864_v59 }
 0xe26   : > { %v3867_v58 = vrot.slane %v3866_v10, 1 }
 0xe28   : > { %v3868_v11 = vadd.f32 %v3867_v58, %v3866_v10 }
 0xe2a   : > { %5570 = vrcp.f32 %v3868_v11 }
 0xe34   : > { %v5571_v15 = vpop.eup %5570 }
 0xe35   : > { %v3870_v16 = vmul.f32 %v5571_v15, %v5569_v2 }
 0xe37   : > { %v3888_v17 = vrot.slane %v3870_v16, %v3887_v13  ;;  %v3874_v18 = vrot.slane %v3870_v16, %v3873_v14  ;;  %v3881_v20 = vrot.slane %v3870_v16, %v3880_v19  ;;  %v3895_v23 = vrot.slane %v3870_v16, %v3894_v21  ;;  %v4831_v13 = vld [vmem:[%s6666_s20] ss:$0 sm:$0xff] }
 0xe38   : > { %v3902_v25 = vrot.slane %v3870_v16, %v3901_v24  ;;  %v4344_v16 = vld [vmem:[%s6667_s1 + $0x8] sm:$0xff] }
 0xe39   : > { %3890 = vbcast.lane.b32.xlu0 %v3888_v17, 256  ;;  %3876 = vbcast.lane.b32.xlu1 %v3874_v18, 256  ;;  %v4834_v18 = vld [vmem:[%s6668_s2] ss:$0 sm:$0xff] }
 0xe3d   : > { %3883 = vbcast.lane.b32.xlu1 %v3881_v20, 256 }
 0xe41   : > { %3897 = vbcast.lane.b32.xlu1 %v3895_v23, 256 }
 0xe45   : > { %3904 = vbcast.lane.b32.xlu1 %v3902_v25, 256 }
 0xeab   : > { %v3877_v26 = vpop.permute.xlu1 %3876  ;;  %v3891_v27 = vpop.permute.xlu0 %3890 }
 0xeac   : > { %v3906_v29 = vmul.f32 %v3877_v26, %v3785_v28  ;;  %v3908_v33 = vmul.f32 %v3891_v27, %v3787_v30 }
 0xeae   : > { %v3911_v36 = vsel %vm3776_vm7, %v3906_v29, 0.0  ;;  %v3914_v35 = vsel %vm3776_vm7, %v3908_v33, 0.0 }
 0xeaf   : > { %v3884_v32 = vpop.permute.xlu1 %3883 }
 0xeb0   : > { %v3907_v34 = vmul.f32 %v3884_v32, %v3786_v31 }
 0xeb2   : > { %v3912_v37 = vsel %vm3776_vm7, %v3907_v34, 0.0 }
 0xeb3   : > { %v3913_v38 = vadd.f32 %v3912_v37, %v3911_v36  ;;  %v3898_v40 = vpop.permute.xlu1 %3897 }
 0xeb4   : > { %v3909_v41 = vmul.f32 %v3898_v40, %v3788_v39 }
 0xeb5   : > { %v3915_v42 = vadd.f32 %v3914_v35, %v3913_v38 }
 0xeb6   : > { %v3916_v43 = vsel %vm3776_vm7, %v3909_v41, 0.0 }
 0xeb7   : > { %v3905_v45 = vpop.permute.xlu1 %3904  ;;  %v3917_v47 = vadd.f32 %v3916_v43, %v3915_v42 }
 0xeb8   : > { %v3910_v46 = vmul.f32 %v3905_v45, %v3789_v44 }
 0xeba   : > { %v3918_v48 = vsel %vm3776_vm7, %v3910_v46, 0.0 }
 0xebb   : > { %v3919_v49 = vadd.f32 %v3918_v48, %v3917_v47 }
 0xebd   : > { %5214 = vmatmul.mubr.msk.f32.vlgmr.msra.gmra.mrb[12].mxu0 %vm3928_vm0, %v3919_v49 }
 0xebe   : > { %5360 = vmatpush3.bf16.msra.mxu0 %v6434_v0  ;;  %5231 = vmatprep.mubr.msk.f32.mxu0 %vm5805_vm15, %v5806_v8  ;;  %v4177_v0 = vld [vmem:[%s6664_s18 + $0x8] sm:$0xff]  ;;  %s6669_s18 = sld [smem:[#allocation32_spill]] }
 0xebf   : > { %5229 = vmatprep.subr.mxu0 %v5806_v8  ;;  %v5362_v57 = vpack.c.bf16 %v4177_v0, %v4176_v53 }
 0xec2   : > { %5230 = vmatpush3.msk.msra.mxu0 %vm1228_vm1, %v4092_v51 }
 0xec3   : > { %5364 = vmatprep.subr.bf16.mxu0 %v5804_v6 }
 0xec4   : > { %v4836_v23 = vld [vmem:[%s6669_s18] ss:$0 sm:$0xff] }
 0xf90   : > { %v3998_v54 = vpop.f32.mrb[12].mxu0 }
 0xf91   : > { %v3999_v55 = vadd.f32 %v4823_v52, %v3998_v54  ;;  %v5215_v56 = vpop.f32.mrb[13].mxu0 }
 0xf93   : > { %v4002_v60 = vmax.f32 %v3999_v55, 0.0 }
 0xf95   : > { %5223 = vmatmul.mubr.msk.f32.vlgmr.msra.gmra.mrb[12].mxu1 %vm1477_vm3, %v4002_v60  ;;  %5232 = vmatmul.mubr.msk.f32.vlgmr.msra.gmra.mrb[14].mxu0 %vm1477_vm3, %v4002_v60 }
 0xf96   : > { %5363 = vmatpush3.bf16.msra.mxu1 %v5362_v57  ;;  %5240 = vmatprep.mubr.msk.f32.mxu1 %vm5805_vm15, %v5806_v8 }
 0xf97   : > { %5238 = vmatprep.subr.mxu1 %v5806_v8  ;;  %5247 = vmatprep.mubr.msk.f32.mxu0 %vm5805_vm15, %v5806_v8 }
 0xf98   : > { %5366 = vmatpush3.bf16.msra.mxu0 %v5365_v1 }
 0xf99   : > { %5367 = vmatprep.subr.bf16.mxu0 %v5804_v6 }
 0xf9a   : > { %5239 = vmatpush3.msk.msra.mxu1 %vm1228_vm1, %v4178_v61  ;;  %vm4427_vm1 = vcmask 27648  }
 0xf9b   : > { %5241 = vmatmul.mubr.msk.f32.vlgmr.msra.gmra.mrb[14].mxu1 %vm1477_vm3, %v4002_v60 }
0x1068   : > { %v4085_v2 = vpop.f32.mrb[12].mxu1  ;;  %v4169_v4 = vpop.f32.mrb[14].mxu0 }
0x1069   : > { %v4086_v5 = vadd.f32 %v6452_v3, %v4085_v2  ;;  %v4170_v59 = vadd.f32 %v6457_v12, %v4169_v4  ;;  %v5224_v9 = vpop.f32.mrb[13].mxu1  ;;  %v5233_v10 = vpop.f32.mrb[15].mxu0  ;;  %v4343_v12 = vld [vmem:[%s6667_s1] sm:$0xff] }
0x106a   : > { %v5368_v17 = vpack.c.bf16 %v4344_v16, %v4343_v12 }
0x106b   : > { %v4089_v58 = vmax.f32 %v4086_v5, 0.0  ;;  %v4173_v11 = vmax.f32 %v4170_v59, 0.0 }
0x106d   : > { %4174 = vst.msk [vmem:[%s3775_s3] sm:$0xf] %vm3776_vm7, %v4089_v58  ;;  %4175 = vst.msk [vmem:[%s3778_s7] sm:$0xf] %vm3776_vm7, %v4173_v11  ;;  %s4426_s3 = scalar_lea.vmem %s6232_s23, %s6173_s27 [#allocation15] }
0x106e   : > { %v4255_v6 = vpop.f32.mrb[14].mxu1 }
0x106f   : > { %v4256_v14 = vadd.f32 %v4831_v13, %v4255_v6  ;;  %v5242_v15 = vpop.f32.mrb[15].mxu1 }
0x1071   : > { %v4259_v3 = vmax.f32 %v4256_v14, 0.0 }
0x1073   : > { %5248 = vmatmul.mubr.msk.f32.vlgmr.msra.gmra.mrb[16].mxu0 %vm2386_vm14, %v4259_v3 }
0x1074   : > { %5254 = vmatprep.mubr.msk.f32.mxu0 %vm5805_vm15, %v5806_v8  ;;  %5369 = vmatpush3.bf16.msra.mxu0 %v5368_v17 }
0x1146   : > { %v4338_v19 = vpop.f32.mrb[16].mxu0 }
0x1147   : > { %v4339_v20 = vadd.f32 %v4834_v18, %v4338_v19  ;;  %v5249_v21 = vpop.f32.mrb[17].mxu0 }
0x1149   : > { %v4342_v22 = vmax.f32 %v4339_v20, 0.0 }
0x114b   : > { %5255 = vmatmul.mubr.msk.f32.vlgmr.msra.gmra.mrb[18].mxu0 %vm2386_vm14, %v4342_v22 }
0x121e   : > { %v4421_v24 = vpop.f32.mrb[18].mxu0 }
0x121f   : > { %v4422_v25 = vadd.f32 %v4836_v23, %v4421_v24  ;;  %v5256_v26 = vpop.f32.mrb[19].mxu0 }
0x1221   : > { %v4425_v27 = vadd.f32 %v4422_v25, %v6176_v7 }
0x1223   : > { %4428 = vst.msk [vmem:[%s4426_s3] sm:$0xf] %vm4427_vm1, %v4425_v27 }
0x1224 PF: > { %s6670_s7 = sld [smem:[#allocation45_spill]] }
0x122a   : > { %p6671_p13 = scmp.ne.s32.totalorder %s6670_s7, 0 }
0x122b   : > { %s6672_s15 = sld [smem:[#allocation41_spill]] (%p6671_p13)  ;;  %s4838_s20 = sshll.u32 (%p6671_p13), %s5746_s16, 2  ;;  %v4453_v8 = vld [vmem:[%s6232_s23] sm:$0xf] (%p6671_p13)  ;;  %v4455_v28 = vld [vmem:[%s6232_s23 + $0x4] sm:$0xf] (%p6671_p13) }
0x122c   : > { %4435 = sbr.rel (!%p6671_p13) target bundleno = 4661 (0x1235), region = 221  ;;  %v4457_v29 = vld [vmem:[%s6232_s23 + $0x8] sm:$0xf] (%p6671_p13)  ;;  %v4459_v30 = vld [vmem:[%s6232_s23 + $0xc] sm:$0xf] (%p6671_p13) }
0x122d   : > { %v4461_v31 = vld [vmem:[%s6232_s23 + $0x10] sm:$0xf] (%p6671_p13) }
0x1231   : > { %s4437_s1 = scalar_lea.vmem (%p6671_p13), %s6672_s15, %s4838_s20 }
0x1232   : > { %4454 = vst [vmem:[%s4437_s1] sm:$0xf] (%p6671_p13), %v4453_v8  ;;  %4456 = vst [vmem:[%s4437_s1 + $0x8] sm:$0xf] (%p6671_p13), %v4455_v28 }
0x1233   : > { %4458 = vst [vmem:[%s4437_s1 + $0x10] sm:$0xf] %v4457_v29  ;;  %4460 = vst [vmem:[%s4437_s1 + $0x18] sm:$0xf] %v4459_v30 }
0x1234   : > { %4462 = vst [vmem:[%s4437_s1 + $0x20] sm:$0xf] %v4461_v31 }
0x1235 PF: > { %s82_s0 = sadd.s32 1, %s5758_s0   ;;  %s6673_s27 = sld [smem:[#allocation46_spill]] }
0x1236   : > { %p79_p12 = scmp.ge.s32.totalorder %s82_s0, 12   ;;  %s6674_s15 = sld [smem:[#allocation42_spill]] }
0x1237   : > { %s6675_s18 = sld [smem:[#allocation43_spill]]  ;;  %s6676_s2 = sld [smem:[#allocation44_spill]] }
0x1238   : > { %s6677_s7 = smov %s5734_s10  ;;  %s6678_s10 = smov %s5738_s11 }
0x1239   : > { %s6680_s16 = smov %s5754_s22  ;;  %81 = sbr.rel (!%p79_p12) target bundleno = 72 (0x48), region = 361 }
0x123b   : > { %s6679_s11 = smov %s6673_s27 }
0x123d   : > { %s6681_s22 = smov %s6676_s2 }
0x1240   :  { %4505 = vsyncpa [#allocation9], 1 }
0x1241   :  { %4507 = vsyncpa [#allocation9 + $0x1], 1 }
0x1242   :  { %4508 = vsyncpa [#allocation11], 1 }
0x1243   :  { %4509 = vsyncpa [#allocation14], 1 }

// kernel: tpu_custom_call.1
= control target key start
LH: loop header
LB: loop body
LE: loop exit
PB: predicated region body
PF: predicated region fallthrough
CT: control target
= control target key end

     0   :  { %s5760_s6 = smov 1   ;;  %s5761_s10 = smov 2   ;;  %s6569_s0 = inlined_call_operand.smem [shape: u32[34], index: -1, kind: input, shape index: {}] }
   0x1   :  { %s5817_s5 = sld [smem:[%s6569_s0]]   ;;  %s5762_s14 = smov 3  }
   0x2   :  { %s5822_s9 = sld [smem:[%s6569_s0 + %s5760_s6]]   ;;  %s5763_s18 = smov 4  }
   0x3   :  { %s5827_s13 = sld [smem:[%s6569_s0 + %s5761_s10]]   ;;  %s5764_s22 = smov 5  }
   0x4   :  { %s5832_s17 = sld [smem:[%s6569_s0 + %s5762_s14]]   ;;  %s5765_s26 = smov 6  }
   0x5   :  { %s5837_s21 = sld [smem:[%s6569_s0 + %s5763_s18]]   ;;  %s5766_s30 = smov 7  }
   0x6   :  { %s5842_s25 = sld [smem:[%s6569_s0 + %s5764_s22]]   ;;  %s5767_s4 = smov 8  }
   0x7   :  { %6597 = sst [smem:[#allocation19_spill]] %s5817_s5  ;;  %s5768_s10 = smov 9  }
   0x8   :  { %s5847_s29 = sld [smem:[%s6569_s0 + %s5765_s26]]   ;;  %s5769_s15 = smov 10  }
   0x9   :  { %s5852_s3 = sld [smem:[%s6569_s0 + %s5766_s30]]   ;;  %s5770_s20 = smov 11  }
   0xa   :  { %s5857_s8 = sld [smem:[%s6569_s0 + %s5767_s4]]   ;;  %s5771_s26 = smov 12  }
   0xb   :  { %s5862_s14 = sld [smem:[%s6569_s0 + %s5768_s10]]   ;;  %s5772_s1 = smov 13  }
   0xc   :  { %s5867_s19 = sld [smem:[%s6569_s0 + %s5769_s15]]   ;;  %s5773_s7 = smov 14  }
   0xd   :  { %s5872_s24 = sld [smem:[%s6569_s0 + %s5770_s20]]   ;;  %s5774_s15 = smov 15  }
   0xe   :  { %s5877_s30 = sld [smem:[%s6569_s0 + %s5771_s26]]   ;;  %s5775_s22 = smov 16  }
   0xf   :  { %6598 = sst [smem:[#allocation20_spill]] %s5852_s3  ;;  %s5776_s28 = smov 17  }
  0x10   :  { %s5882_s6 = sld [smem:[%s6569_s0 + %s5772_s1]]  }
  0x11   :  { %s5887_s12 = sld [smem:[%s6569_s0 + %s5773_s7]]   ;;  %s5777_s7 = smov 18  }
  0x12   :  { %s5892_s20 = sld [smem:[%s6569_s0 + %s5774_s15]]   ;;  %s5778_s15 = smov 19  }
  0x13   :  { %s5897_s27 = sld [smem:[%s6569_s0 + %s5775_s22]]   ;;  %s5779_s22 = smov 20  }
  0x14   :  { %s5902_s4 = sld [smem:[%s6569_s0 + %s5776_s28]]   ;;  %s5780_s28 = smov 21  }
  0x16   :  { %6599 = sst [smem:[#allocation21_spill]] %s5882_s6 }
  0x17   :  { %6600 = sst [smem:[#allocation22_spill]] %s5887_s12 }
  0x18   :  { %6601 = sst [smem:[#allocation23_spill]] %s5892_s20 }
  0x19   :  { %6602 = sst [smem:[#allocation24_spill]] %s5897_s27 }
  0x1a   :  { %6603 = sst [smem:[#allocation25_spill]] %s5902_s4 }
  0x1b   :  { %s5907_s12 = sld [smem:[%s6569_s0 + %s5777_s7]]   ;;  %s5781_s7 = smov 22  }
  0x1c   :  { %s5912_s20 = sld [smem:[%s6569_s0 + %s5778_s15]]   ;;  %s5782_s15 = smov 23  }
  0x1d   :  { %s5917_s27 = sld [smem:[%s6569_s0 + %s5779_s22]]   ;;  %s5783_s22 = smov 24  }
  0x1e   :  { %s5922_s4 = sld [smem:[%s6569_s0 + %s5780_s28]]   ;;  %s5784_s28 = smov 25  }
  0x1f   :  { %s5932_s6 = sld [smem:[%s6569_s0 + %s5782_s15]]   ;;  %s5786_s15 = smov 27  }
  0x21   :  { %6604 = sst [smem:[#allocation26_spill]] %s5907_s12 }
  0x22   :  { %6605 = sst [smem:[#allocation27_spill]] %s5912_s20 }
  0x23   :  { %6606 = sst [smem:[#allocation28_spill]] %s5917_s27 }
  0x24   :  { %6607 = sst [smem:[#allocation29_spill]] %s5922_s4 }
  0x25   :  { %s5927_s12 = sld [smem:[%s6569_s0 + %s5781_s7]]   ;;  %s5785_s7 = smov 26  }
  0x26   :  { %6609 = sst [smem:[#allocation31_spill]] %s5932_s6 }
  0x27   :  { %s5937_s27 = sld [smem:[%s6569_s0 + %s5783_s22]]   ;;  %s5787_s22 = smov 28  }
  0x28   :  { %s5942_s4 = sld [smem:[%s6569_s0 + %s5784_s28]]   ;;  %s5788_s28 = smov 29  }
  0x29   :  { %s5952_s6 = sld [smem:[%s6569_s0 + %s5786_s15]]   ;;  %s5790_s15 = smov 31  }
  0x2a   :  { %s5972_s20 = sld [smem:[%s6569_s0 + %s5790_s15]]  }
  0x2b   :  { %6608 = sst [smem:[#allocation30_spill]] %s5927_s12 }
  0x2c   :  { %s5947_s12 = sld [smem:[%s6569_s0 + %s5785_s7]]   ;;  %s5789_s7 = smov 30  }
  0x2d   :  { %6610 = sst [smem:[#allocation32_spill]] %s5937_s27 }
  0x2e   :  { %6611 = sst [smem:[#allocation33_spill]] %s5942_s4 }
  0x2f   :  { %6613 = sst [smem:[#allocation35_spill]] %s5952_s6 }
  0x30   :  { %s5957_s27 = sld [smem:[%s6569_s0 + %s5787_s22]]   ;;  %s5791_s22 = smov 32  }
  0x31   :  { %s5962_s4 = sld [smem:[%s6569_s0 + %s5788_s28]]   ;;  %s5792_s28 = smov 33  }
  0x32   :  { %6612 = sst [smem:[#allocation34_spill]] %s5947_s12 }
  0x33   :  { %s5967_s12 = sld [smem:[%s6569_s0 + %s5789_s7]]  }
  0x34   :  { %6617 = sst [smem:[#allocation39_spill]] %s5972_s20 }
  0x36   :  { %6614 = sst [smem:[#allocation36_spill]] %s5957_s27 }
  0x37   :  { %6615 = sst [smem:[#allocation37_spill]] %s5962_s4 }
  0x38   :  { %s5977_s27 = sld [smem:[%s6569_s0 + %s5791_s22]]  }
  0x39   :  { %6616 = sst [smem:[#allocation38_spill]] %s5967_s12 }
  0x3a   :  { %s5982_s4 = sld [smem:[%s6569_s0 + %s5792_s28]]  }
  0x3e   :  { %6618 = sst [smem:[#allocation40_spill]] %s5977_s27 }
  0x40   :  { %6619 = sst [smem:[#allocation41_spill]] %s5982_s4 }
  0x41   :  { %72 = vsyncpa [#allocation9], 0 }
  0x42   :  { %74 = vsyncpa [#allocation9 + $0x1], 0 }
  0x43   :  { %75 = vsyncpa [#allocation11], 0 }
  0x44   :  { %76 = vsyncpa [#allocation14], 0  ;;  %s5984_s7 = smov 0   ;;  %s5986_s10 = smov 0  }
  0x45   :  { %s5988_s11 = smov 0   ;;  %s5990_s15 = smov 0  }
  0x46   :  { %s5992_s16 = smov 0   ;;  %s5994_s18 = smov 0  }
  0x47   :  { %s5996_s22 = smov 0   ;;  %s5998_s0 = smov 0  }
  0x48 LB: > { %s6620_s3 = sld [smem:[#allocation20_spill]]  ;;  %6621 = sst [smem:[#allocation42_spill]] %s5750_s18  ;;  %s5730_s7 = sphi %s5984_s7, %s6677_s7   ;;  %s5758_s0 = sphi %s5998_s0, %s82_s0   ;;  %s5754_s22 = sphi %s5996_s22, %s6681_s22   ;;  %s5750_s18 = sphi %s5994_s18, %s6675_s18   ;;  %s5746_s16 = sphi %s5992_s16, %s6680_s16   ;;  %s5742_s15 = sphi %s5990_s15, %s6674_s15   ;;  %s5738_s11 = sphi %s5988_s11, %s6679_s11   ;;  %s5734_s10 = sphi %s5986_s10, %s6678_s10  }
  0x49   : > { %s4692_s23 = sadd.s32 4294967295, %s5758_s0   ;;  %s91_s26 = sadd.s32 1, %s5750_s18 }
  0x4a   : > { %p92_p0 = scmp.ge.s32.totalorder %s91_s26, 5  ;;  %s94_s28 = sadd.s32 1, %s5754_s22 }
  0x4b   : > { %s101_s1 = sadd.s32 1, %s5738_s11  ;;  %p108_p1 = scmp.ne.s32.totalorder %s5738_s11, %s5734_s10 }
  0x4c   : > { %s6683_s26 = smov (%p92_p0, %s91_s26), 0  ;;  %s6685_s28 = smov (!%p92_p0, %s94_s28), %s5754_s22 }
  0x4d   : > { %6622 = sst [smem:[#allocation43_spill]] %s6683_s26  ;;  %p109_p2 = scmp.eq.s32.totalorder %s5758_s0, 0 }
  0x4e   : > { %p192_p3 = scmp.ne.s32.totalorder %s5734_s10, %s5730_s7  ;;  %p96_p4 = scmp.ge.s32.totalorder %s6685_s28, 2 }
  0x4f   : > { %p6033_p5 = scmp.eq.s32.totalorder %s4692_s23, 0  ;;  %p6037_p6 = por %p109_p2, %p108_p1 }
  0x50   : > { %p830_p7 = scmp.eq.s32.totalorder %s4692_s23, 9  ;;  %s6687_s28 = smov (%p96_p4, %s6685_s28), 0 }
  0x51   : > { %s6623_s2 = scalar_select %p6033_p5, 1, 0 }
  0x52   : > { %s6624_s18 = scalar_select %p6037_p6, 1, 0 }
  0x53   : > { %6625 = sst [smem:[#allocation44_spill]] %s6687_s28  ;;  %p6045_p8 = por %p6033_p5, %p192_p3 }
  0x54   : > { %p6049_p9 = por %p830_p7, %p108_p1  ;;  %s98_s4 = ssub.s32 %s5754_s22, %s6687_s28 }
  0x55   : > { %s6626_s26 = scalar_select %p6045_p8, 1, 0 }
  0x56   : > { %s6627_s7 = scalar_select %p6049_p9, 1, 0 }
  0x57   : > { %p4694_p10 = scmp.ge.s32.totalorder %s5758_s0, 1  ;;  %p99_p11 = scmp.eq.s32.totalorder %s98_s4, 0 }
  0x58   : > { %6628 = sst [smem:[#allocation45_spill]] %s6627_s7  ;;  %p843_p12 = scmp.lt.s32.totalorder %s5758_s0, 11 }
  0x59   : > { %s6058_s23 = scalar_select %p99_p11, %s5738_s11, %s101_s1  }
  0x5a   : > { %p6060_p13 = pnand %p4694_p10, %p843_p12  ;;  %s5793_s20 = smov [#allocation10]  }
  0x5b   : > { %6629 = sst [smem:[#allocation46_spill]] %s6058_s23  ;;  %s856_s12 = sshll.u32 %s5793_s20, 4  ;;  %s857_s12 = int_to_ptr.vmem [resolvable:$true] %s856_s12 }
  0x5c   : > { %s6630_s27 = scalar_select %p6060_p13, 1, 0 }
  0x5d   : > { %p5402_p0 = pneg %p6060_p13  ;;  %s5794_s6 = smov [#allocation12]  }
  0x5e   : > { %s876_s7 = sshll.u32 %s5794_s6, 4  ;;  %s5795_s1 = smov [#allocation13]   ;;  %s6072_s7 = int_to_ptr.vmem [resolvable:$true] %s876_s7 }
  0x5f   : > { %p6068_p1 = pnand %p5402_p0, %p6033_p5  ;;  %s890_s28 = sshll.u32 %s5795_s1, 4  ;;  %s6074_s28 = int_to_ptr.vmem [resolvable:$true] %s890_s28 }
  0x60   : > { %s5572_s23 = scalar_lea.hbm %s5842_s25, 64 }
  0x61   : > { %p5573_p2 = scmp.ne.s32.totalorder %s5842_s25, %s5572_s23  ;;  %p6080_p3 = pneg %p6068_p1 }
  0x62   : > { %p5579_p10 = scmp.lt.u32.totalorder %s5572_s23, %s5842_s25 }
  0x63   : > { %p5575_p4 = pnand %p6080_p3, %p5573_p2 }
  0x65   : > { %p5576_p7 = pneg %p5575_p4 }
  0x67   : > { %p5581_p11 = pnand %p5579_p10, %p5576_p7 }
  0x69   : > { %5584 = shalt.err (!%p5581_p11)
}
  0x6a   : > { %s5585_s6 = scalar_lea.vmem %s857_s12, 64  ;;  %p5593_p5 = scmp.lt.s32.totalorder %s857_s12, %s857_s12 }
  0x6b   : > { %p5586_p12 = scmp.ne.s32.totalorder %s857_s12, %s5585_s6  ;;  %p5594_p8 = scmp.lt.s32.totalorder %s5585_s6, %s5585_s6 }
  0x6d   : > { %p5588_p0 = pnand %p5586_p12, %p6080_p3  ;;  %p5595_p13 = por %p5594_p8, %p5593_p5 }
  0x6f   : > { %p5589_p9 = pneg %p5588_p0 }
  0x71   : > { %p5596_p6 = pnand %p5595_p13, %p5589_p9 }
  0x73   : > { %5599 = shalt.err (!%p5596_p6)
}
  0x74   : > { %5405 = dma.hbm_to_vmem [thread:$0]  (!%p6068_p1), %s5842_s25, 64, %s857_s12, [#allocation11]  }
  0x75   : > { %s5600_s23 = scalar_lea.hbm %s5862_s14, 16 }
  0x76   : > { %p5601_p2 = scmp.ne.s32.totalorder %s5862_s14, %s5600_s23  ;;  %p5607_p10 = scmp.lt.u32.totalorder %s5600_s23, %s5862_s14 }
  0x78   : > { %p5603_p4 = pnand %p5601_p2, %p6080_p3 }
  0x7a   : > { %p5604_p7 = pneg %p5603_p4 }
  0x7c   : > { %p5609_p11 = pnand %p5607_p10, %p5604_p7 }
  0x7e   : > { %5612 = shalt.err (!%p5609_p11)
}
  0x7f   : > { %s5613_s1 = scalar_lea.vmem %s6072_s7, 16  ;;  %s5620_s6 = scalar_lea.vmem %s6072_s7, 32 }
  0x80   : > { %p5614_p5 = scmp.ne.s32.totalorder %s6072_s7, %s5613_s1  ;;  %p5621_p9 = scmp.lt.s32.totalorder %s6072_s7, %s6072_s7 }
  0x81   : > { %p5622_p13 = scmp.lt.s32.totalorder %s5620_s6, %s5613_s1 }
  0x82   : > { %p5616_p6 = pnand %p5614_p5, %p6080_p3 }
  0x83   : > { %p5623_p12 = por %p5622_p13, %p5621_p9 }
  0x84   : > { %p5617_p8 = pneg %p5616_p6 }
  0x86   : > { %p5624_p0 = pnand %p5623_p12, %p5617_p8 }
  0x88   : > { %5627 = shalt.err (!%p5624_p0)
}
  0x89   : > { %5408 = dma.hbm_to_vmem [thread:$0]  (!%p6068_p1), %s5862_s14, 16, %s6072_s7, [#allocation11]  }
  0x8a   : > { %s5628_s12 = scalar_lea.hbm %s5872_s24, 16 }
  0x8b   : > { %p5629_p2 = scmp.ne.s32.totalorder %s5872_s24, %s5628_s12  ;;  %p5635_p10 = scmp.lt.u32.totalorder %s5628_s12, %s5872_s24 }
  0x8d   : > { %p5631_p4 = pnand %p5629_p2, %p6080_p3 }
  0x8f   : > { %p5632_p7 = pneg %p5631_p4 }
  0x91   : > { %p5637_p11 = pnand %p5635_p10, %p5632_p7 }
  0x93   : > { %5640 = shalt.err (!%p5637_p11)
}
  0x94   : > { %s5641_s23 = scalar_lea.vmem %s6074_s28, 16  ;;  %s5648_s1 = scalar_lea.vmem %s6074_s28, 32 }
  0x95   : > { %p5642_p5 = scmp.ne.s32.totalorder %s6074_s28, %s5641_s23  ;;  %p5649_p9 = scmp.lt.s32.totalorder %s6074_s28, %s6074_s28 }
  0x96   : > { %p5650_p13 = scmp.lt.s32.totalorder %s5648_s1, %s5641_s23 }
  0x97   : > { %p5644_p6 = pnand %p5642_p5, %p6080_p3 }
  0x98   : > { %p5651_p12 = por %p5650_p13, %p5649_p9 }
  0x99   : > { %p5645_p8 = pneg %p5644_p6 }
  0x9b   : > { %p5652_p0 = pnand %p5651_p12, %p5645_p8 }
  0x9d   : > { %5655 = shalt.err (!%p5652_p0)
}
  0x9e   : > { %5411 = dma.hbm_to_vmem [thread:$0]  (!%p6068_p1), %s5872_s24, 16, %s6074_s28, [#allocation14]  }
  0x9f   : > { %p4698_p2 = scmp.ge.s32.totalorder %s5758_s0, 10 }
  0xa0   : > { %p6633_p4 = scmp.ne.s32.totalorder (!%p4698_p2), %s6624_s18, 0 }
  0xa1   : > { %960 = sbr.rel (%p4698_p2) target bundleno = 205 (0xcd), region = 128 }
  0xa8   : > { %963 = sbr.rel (!%p6633_p4) target bundleno = 179 (0xb3), region = 132  ;;  %s6634_s5 = sld [smem:[#allocation19_spill]] (%p6633_p4) }
  0xa9   : > { %s965_s7 = sand.u32 (%p6633_p4), 1, %s5738_s11   ;;  %s4699_s20 = sshll.u32 (%p6633_p4), %s5754_s22, 2 }
  0xaa   : > { %s5386_s6 = smul.u32 (%p6633_p4), 20, %s965_s7 }
  0xac   : > { %s967_s4 = scalar_lea.vmem (%p6633_p4), [#allocation7], %s5386_s6 }
  0xae   : > { %s969_s12 = scalar_lea.vmem (%p6633_p4), %s6634_s5, %s4699_s20 }
  0xaf   : > { %v985_v0 = vld [vmem:[%s969_s12] sm:$0xf]  ;;  %v987_v1 = vld [vmem:[%s969_s12 + $0x8] sm:$0xf]  ;;  %v989_v2 = vld [vmem:[%s969_s12 + $0x10] sm:$0xf] }
  0xb0   : > { %v991_v3 = vld [vmem:[%s969_s12 + $0x18] sm:$0xf]  ;;  %v993_v4 = vld [vmem:[%s969_s12 + $0x20] sm:$0xf]  ;;  %986 = vst [vmem:[%s967_s4] sm:$0xf] %v985_v0 }
  0xb1   : > { %988 = vst [vmem:[%s967_s4 + $0x4] sm:$0xf] %v987_v1  ;;  %990 = vst [vmem:[%s967_s4 + $0x8] sm:$0xf] %v989_v2 }
  0xb2   : > { %992 = vst [vmem:[%s967_s4 + $0xc] sm:$0xf] %v991_v3  ;;  %994 = vst [vmem:[%s967_s4 + $0x10] sm:$0xf] %v993_v4 }
  0xb3 PF: > { %s1044_s28 = sand.u32 1, %s5738_s11   ;;  %s4701_s23 = sshll.u32 %s5754_s22, 6 }
  0xb4   : > { %s4700_s1 = sshll.u32 %s1044_s28, 2  ;;  %s6133_s7 = scalar_lea.hbm %s5832_s17, %s4701_s23 }
  0xb5   : > { %s1048_s20 = scalar_lea.vmem [#allocation8], %s4700_s1  ;;  %s1045_s12 = scalar_lea.sflag [#allocation9], %s1044_s28 }
  0xb6   : > { %s1055_s6 = sshll.u32 %s1048_s20, 4  ;;  %s5656_s4 = scalar_lea.hbm %s6133_s7, 64  ;;  %s1056_s6 = int_to_ptr.vmem [resolvable:$true] %s1055_s6 }
  0xb7   : > { %p5657_p1 = scmp.ne.s32.totalorder %s6133_s7, %s5656_s4  ;;  %p6635_p3 = scmp.ne.s32.totalorder %s6624_s18, 0 }
  0xb8   : > { %s5660_s5 = scalar_lea.hbm %s5832_s17, 128  ;;  %p5661_p11 = scmp.lt.u32.totalorder %s6133_s7, %s5832_s17 }
  0xb9   : > { %p5658_p7 = pnand %p5657_p1, %p6635_p3  ;;  %p5662_p5 = scmp.lt.u32.totalorder %s5660_s5, %s5656_s4 }
  0xba   : > { %p5664_p8 = scmp.lt.u32.totalorder %s5656_s4, %s6133_s7 }
  0xbb   : > { %p5659_p10 = pneg %p5658_p7  ;;  %p5663_p6 = por %p5662_p5, %p5661_p11 }
  0xbd   : > { %p5665_p9 = por %p5664_p8, %p5663_p6 }
  0xbf   : > { %p5666_p13 = pnand %p5665_p9, %p5659_p10 }
  0xc1   : > { %5669 = shalt.err (!%p5666_p13)
}
  0xc2   : > { %s5670_s23 = scalar_lea.vmem %s1056_s6, 64  ;;  %s5796_s28 = smov [#allocation8]  }
  0xc3   : > { %p5671_p12 = scmp.ne.s32.totalorder %s1056_s6, %s5670_s23  ;;  %s5674_s1 = sshll.u32 %s5796_s28, 4  ;;  %s5675_s1 = int_to_ptr.vmem [resolvable:$false] %s5674_s1 }
  0xc4   : > { %s5676_s20 = scalar_lea.vmem %s5675_s1, 128  ;;  %p5677_p4 = scmp.lt.s32.totalorder %s1056_s6, %s5675_s1 }
  0xc5   : > { %p5672_p0 = pnand %p5671_p12, %p6635_p3  ;;  %p5678_p1 = scmp.lt.s32.totalorder %s5676_s20, %s5670_s23 }
  0xc7   : > { %p5673_p2 = pneg %p5672_p0  ;;  %p5679_p7 = por %p5678_p1, %p5677_p4 }
  0xc9   : > { %p5680_p5 = pnand %p5679_p7, %p5673_p2 }
  0xcb   : > { %5683 = shalt.err (!%p5680_p5)
}
  0xcc   : > { %5394 = dma.hbm_to_vmem [thread:$0]  (%p6635_p3), %s6133_s7, 64, %s1056_s6, %s1045_s12  }
  0xcd PF: > { %p6636_p10 = scmp.ne.s32.totalorder %s6630_s27, 0 }
  0xce   : > { %s6151_s5 = sand.u32 (!%p6636_p10), 1, %s5734_s10   ;;  %p6637_p3 = scmp.ne.s32.totalorder (!%p6636_p10), %s6626_s26, 0 }
  0xcf   : > { %1072 = sbr.rel (%p6636_p10) target bundleno = 4661 (0x1235), region = 189  ;;  %s4703_s23 = sshll.u32 (!%p6636_p10), %s6151_s5, 2 }
  0xd0   : > { %s5387_s4 = smul.u32 (!%p6636_p10), 20, %s6151_s5  ;;  %s1082_s1 = scalar_lea.sflag (!%p6636_p10), [#allocation9], %s6151_s5 }
  0xd1   : > { %s6158_s18 = scalar_lea.vmem (!%p6636_p10), [#allocation8], %s4703_s23 }
  0xd2   : > { %s1077_s28 = scalar_lea.vmem (!%p6636_p10), [#allocation7], %s5387_s4 }
  0xd6   : > { %5717 = dma.done.wait (%p6637_p3), %s1082_s1, 64  }
  0xd7   : > { %5719 = vsyncadd (%p6637_p3), %s1082_s1, 4294967232  ;;  %p6638_p11 = scmp.ne.s32.totalorder %s6623_s2, 0 }
  0xd9   : > { %5721 = dma.done.wait (%p6638_p11), [#allocation11], 80  }
  0xda   : > { %5723 = vsyncadd (%p6638_p11), [#allocation11], 4294967216 }
  0xdb   : > { %5725 = dma.done.wait (%p6638_p11), [#allocation14], 16  }
  0xdc   : > { %5727 = vsyncadd (%p6638_p11), [#allocation14], 4294967280  ;;  %v5797_v5 = vmov 0.0   ;;  %vm5798_vm0 = vmmov 0   ;;  %s6173_s27 = sshll.u32 %s5742_s15, 2  ;;  %vm1228_vm1 = vcmask 1043456  }
  0xdd   : > { %4978 = vmatprep.subr.mxu1 %v5797_v5  ;;  %4980 = vmatprep.mubr.msk.f32.mxu1 %vm5798_vm0, %v5797_v5  ;;  %s1214_s26 = scalar_lea.vmem %s1077_s28, %s6173_s27 [#allocation7]  ;;  %vm1224_vm2 = vcmask 31744   ;;  %v1216_v6 = vld [vmem:[#allocation10] sm:$0xf]  ;;  %p1198_p6 = scmp.lt.s32.totalorder %s5746_s16, 1  ;;  %v4714_v10 = vld [vmem:[%s5847_s29] ss:$0 sm:$0xff] }
  0xde   : > { %v6176_v7 = vld [vmem:[%s1214_s26] sm:$0xf]  ;;  %4979 = vmatpush3.msk.msra.mxu1 %vm1228_vm1, %v1216_v6  ;;  %v1475_v12 = vld [vmem:[%s5857_s8 + $0x8] sm:$0xff]  ;;  %v1476_v19 = vld [vmem:[%s5857_s8 + $0x10] sm:$0xf]  ;;  %vm1477_vm3 = vcmask 162816  }
  0xdf   : > { %4981 = vmatmul.mubr.msk.f32.vlgmr.msra.gmra.mrb[0].mxu1 %vm1224_vm2, %v6176_v7  ;;  %s1199_s2 = scalar_select %p1198_p6, %s5746_s16, 1  ;;  %v1474_v11 = vld [vmem:[%s5857_s8] sm:$0xff]  ;;  %v1472_v21 = vld [vmem:[%s6620_s3 + $0x8] sm:$0xff]  ;;  %v1473_v27 = vld [vmem:[%s6620_s3 + $0x10] sm:$0xf]  ;;  %vm1668_vm4 = vcmask 261120  }
  0xe0   : > { %v5257_v18 = vpack.c.bf16 %v1475_v12, %v1474_v11  ;;  %v1471_v20 = vld [vmem:[%s6620_s3] sm:$0xff]  ;;  %v1658_v29 = vld [vmem:[%s5867_s19 + $0x8] sm:$0xff]  ;;  %v1659_v30 = vld [vmem:[%s5867_s19 + $0x10] sm:$0xff]  ;;  %s6232_s23 = scalar_lea.vmem [#allocation15], %s5387_s4  ;;  %p4735_p8 = scmp.ne.s32.totalorder %s5742_s15, 0 }
  0xe1   : > { %s6183_s7 = sshll.u32 %s1199_s2, 4  ;;  %v5261_v22 = vpack.c.bf16 %v1472_v21, %v1471_v20  ;;  %v1657_v28 = vld [vmem:[%s5867_s19] sm:$0xff]  ;;  %v1660_v32 = vld [vmem:[%s5867_s19 + $0x18] sm:$0xff]  ;;  %v4729_v34 = vld [vmem:[#allocation12] ss:$0 sm:$0xff]  ;;  %v5799_v61 = vmov (!%p4735_p8), 0.0|0.0  }
  0xe2   : > { %s1207_s6 = scalar_lea.vmem %s5827_s13, %s6183_s7  ;;  %s1202_s12 = scalar_lea.vmem %s5822_s9, %s6183_s7  ;;  %v5265_v31 = vpack.c.bf16 %v1658_v29, %v1657_v28  ;;  %v5269_v33 = vpack.c.bf16 %v1660_v32, %v1659_v30  ;;  %v1756_v41 = vld [vmem:[%s5877_s30] sm:$0xff]  ;;  %v1757_v42 = vld [vmem:[%s5877_s30 + $0x8] sm:$0xff]  ;;  %v1758_v43 = vld [vmem:[%s5877_s30 + $0x10] sm:$0xff]  ;;  %vm5800_vm5 = vmmov (!%p4735_p8), 1   ;;  %vm5801_vm7 = vmmov (!%p4735_p8), 0  }
  0xe3   : > { %v1388_v8 = vld [vmem:[%s1207_s6] sm:$0xff]  ;;  %v1389_v16 = vld [vmem:[%s1207_s6 + $0x8] sm:$0xf]  ;;  %v5273_v44 = vpack.c.bf16 %v1757_v42, %v1756_v41  ;;  %v1759_v45 = vld [vmem:[%s5877_s30 + $0x18] sm:$0xff]  ;;  %s1212_s20 = scalar_lea.vmem %s5837_s21, %s6183_s7  ;;  %s6639_s28 = sld [smem:[#allocation35_spill]] (!%p4735_p8)  ;;  %v5802_v62 = vmov (!%p4735_p8), 0.0  }
  0xe4   : > { %4990 = vmatprep.mubr.msk.f32.mxu0 %vm1224_vm2, %v1388_v8  ;;  %v1302_v9 = vld [vmem:[%s1202_s12] sm:$0xff]  ;;  %v1303_v17 = vld [vmem:[%s1202_s12 + $0x8] sm:$0xf]  ;;  %v5277_v46 = vpack.c.bf16 %v1759_v45, %v1758_v43  ;;  %v4730_v47 = vld [vmem:[#allocation13] ss:$0 sm:$0xff]  ;;  %s6640_s1 = sld [smem:[#allocation37_spill]] (!%p4735_p8) }
  0xe5   : > { %4985 = vmatprep.mubr.msk.f32.mxu1 %vm1224_vm2, %v1302_v9  ;;  %v1753_v52 = vld [vmem:[%s1212_s20 + $0x8] sm:$0xf]  ;;  %v1752_v53 = vld [vmem:[%s1212_s20] sm:$0xff]  ;;  %vm5283_vm6 = vmpackc.low (!%p4735_p8), %vm1228_vm1, %vm5800_vm5  ;;  %vm1846_vm8 = vcmask (!%p4735_p8), 97280   ;;  %vm1930_vm9 = vcmask (!%p4735_p8), 125952   ;;  %s6641_s5 = sld [smem:[#allocation27_spill]] (!%p4735_p8) }
  0xe6   : > { %v1845_v63 = vld [vmem:[%s6158_s18] sm:$0xf] (!%p4735_p8)  ;;  %vm1934_vm10 = vcmask (!%p4735_p8), 60416   ;;  %s5803_s4 = smov (!%p4735_p8), 4   ;;  %vm1932_vm11 = vcmask (!%p4735_p8), 158720   ;;  %s6642_s26 = sld [smem:[#allocation29_spill]] (!%p4735_p8) }
  0xe7   : > { %1935 = vst.msk [vmem:[#allocation4] sm:$0xf] (!%p4735_p8), %vm1934_vm10, %v5802_v62  ;;  %1936 = vst.msk [vmem:[#allocation4 + $0x4] sm:$0xf] (!%p4735_p8), %vm1934_vm10, %v5802_v62  ;;  %s6643_s2 = sld [smem:[#allocation36_spill]] (!%p4735_p8)  ;;  %s6644_s7 = sld [smem:[#allocation38_spill]] (!%p4735_p8) }
  0xe8   : > { %1937 = vst.msk [vmem:[#allocation4 + $0x8] sm:$0xf] (!%p4735_p8), %vm1934_vm10, %v5802_v62  ;;  %1938 = vst.msk [vmem:[#allocation4 + $0xc] sm:$0xf] (!%p4735_p8), %vm1934_vm10, %v5802_v62  ;;  %s6645_s6 = sld [smem:[#allocation28_spill]] (!%p4735_p8)  ;;  %vm1928_vm12 = vcmask (!%p4735_p8), 130048  }
  0xe9   : > { %v1945_v0 = vld [vmem:[%s6639_s28] sm:$0xff] (!%p4735_p8)  ;;  %v1946_v1 = vld [vmem:[%s6639_s28 + $0x8] sm:$0xff] (!%p4735_p8)  ;;  %v1947_v6 = vld [vmem:[%s6639_s28 + $0x10] sm:$0xf] (!%p4735_p8)  ;;  %1939 = vst.msk [vmem:[#allocation4 + $0x10] sm:$0xf] (!%p4735_p8), %vm1934_vm10, %v5802_v62 }
  0xea   : > { %v2032_v2 = vld [vmem:[%s6640_s1] sm:$0xff] (!%p4735_p8)  ;;  %v5286_v3 = vpack.c.bf16 (!%p4735_p8), %v1946_v1, %v1945_v0  ;;  %v2033_v4 = vld [vmem:[%s6640_s1 + $0x8] sm:$0xff] (!%p4735_p8)  ;;  %v2034_v8 = vld [vmem:[%s6640_s1 + $0x10] sm:$0xf] (!%p4735_p8)  ;;  %1941 = vst.msk [vmem:[#allocation5 + $0x4] sm:$0xf] (!%p4735_p8), %vm1934_vm10, %v5802_v62  ;;  %s2368_s1 = scalar_lea.vmem (!%p4735_p8), %s6232_s23, %s6173_s27 [#allocation15] }
  0xeb   : > { %v5289_v5 = vpack.c.bf16 (!%p4735_p8), %v2033_v4, %v2032_v2  ;;  %1942 = vst.msk [vmem:[#allocation5 + $0x8] sm:$0xf] (!%p4735_p8), %vm1934_vm10, %v5802_v62  ;;  %1943 = vst.msk [vmem:[#allocation5 + $0xc] sm:$0xf] (!%p4735_p8), %vm1934_vm10, %v5802_v62  ;;  %v2118_v11 = vld [vmem:[%s6641_s5] sm:$0xff] (!%p4735_p8)  ;;  %v2119_v12 = vld [vmem:[%s6641_s5 + $0x8] sm:$0xff] (!%p4735_p8) }
  0xec   : > { %1944 = vst.msk [vmem:[#allocation5 + $0x10] sm:$0xf] (!%p4735_p8), %vm1934_vm10, %v5802_v62  ;;  %1940 = vst.msk [vmem:[#allocation5] sm:$0xf] (!%p4735_p8), %vm1934_vm10, %v5802_v62  ;;  %s6646_s12 = sld [smem:[#allocation31_spill]] (!%p4735_p8)  ;;  %s6647_s20 = sld [smem:[#allocation30_spill]] (!%p4735_p8) }
  0xed   : > { %v4738_v20 = vld [vmem:[%s6643_s2] ss:$0 sm:$0xff] (!%p4735_p8)  ;;  %s6648_s28 = sld [smem:[#allocation32_spill]] (!%p4735_p8)  ;;  %vm2369_vm13 = vcmask (!%p4735_p8), 27648  }
  0xee   : > { %v4741_v21 = vld [vmem:[%s6644_s7] ss:$0 sm:$0xff] (!%p4735_p8) }
  0xef   : > { %v4744_v30 = vld [vmem:[%s6645_s6] ss:$0 sm:$0xff] (!%p4735_p8) }
  0xf3   : > { %v4749_v43 = vld [vmem:[%s6648_s28] ss:$0 sm:$0xff] (!%p4735_p8) }
 0x1b2   : > { %v1298_v13 = vpop.f32.mrb[0].mxu1 }
 0x1b3   : > { %v1299_v14 = vadd.f32 %v4714_v10, %v1298_v13  ;;  %v4982_v15 = vpop.f32.mrb[1].mxu1  ;;  %v5292_v13 = vpack.c.bf16 (!%p4735_p8), %v2119_v12, %v2118_v11 }
 0x1b5   : > { %4983 = vmatprep.subr.msk.mxu1 %vm1228_vm1, %v1299_v14  ;;  %4988 = vmatprep.subr.msk.mxu0 %vm1228_vm1, %v1299_v14 }
 0x1b6   : > { %4984 = vmatpush3.msk.msra.mxu1 %vm1228_vm1, %v1299_v14  ;;  %4989 = vmatpush3.msk.msra.mxu0 %vm1228_vm1, %v1299_v14 }
 0x1b7   : > { %4991 = vmatmul.mubr.msk.f32.vlgmr.msra.gmra.mrb[0].mxu0 %vm1224_vm2, %v1389_v16  ;;  %4986 = vmatmul.mubr.msk.f32.vlgmr.msra.gmra.mrb[2].mxu1 %vm1224_vm2, %v1303_v17  ;;  %v2120_v16 = vld [vmem:[%s6641_s5 + $0x10] sm:$0xf] (!%p4735_p8)  ;;  %v2202_v17 = vld [vmem:[%s6642_s26] sm:$0xff] (!%p4735_p8) }
 0x1b8   : > { %5258 = vmatprep.subr.bf16.mxu1 %v5257_v18  ;;  %5266 = vmatprep.subr.bf16.mxu0 %v5265_v31 }
 0x1b9   : > { %5260 = vmatpush3.bf16.msra.mxu1 %v5257_v18  ;;  %5268 = vmatpush3.bf16.msra.mxu0 %v5265_v31  ;;  %v2203_v18 = vld [vmem:[%s6642_s26 + $0x8] sm:$0xff] (!%p4735_p8) }
 0x1ba   : > { %4997 = vmatprep.subr.msk.mxu1 %vm1228_vm1, %v1476_v19  ;;  %5270 = vmatprep.subr.bf16.mxu0 %v5269_v33 }
 0x1bd   : > { %4998 = vmatpush3.msk.msra.mxu1 %vm1228_vm1, %v1476_v19  ;;  %5272 = vmatpush3.bf16.msra.mxu0 %v5269_v33  ;;  %v5295_v19 = vpack.c.bf16 (!%p4735_p8), %v2203_v18, %v2202_v17 }
 0x1be   : > { %5262 = vmatprep.subr.bf16.mxu1 %v5261_v22  ;;  %5274 = vmatprep.subr.bf16.mxu0 %v5273_v44 }
 0x28a   : > { %v4992_v23 = vpop.f32.mrb[0].mxu0  ;;  %v4987_v24 = vpop.f32.mrb[2].mxu1 }
 0x28b   : > { %v1462_v25 = vpop.f32.mrb[1].mxu0  ;;  %v1379_v26 = vpop.f32.mrb[3].mxu1 }
 0x28c   : > { %4999 = vmatprep.mubr.msk.f32.mxu1 %vm1477_vm3, %v1462_v25 }
 0x28d   : > { %5000 = vmatmul.mubr.msk.f32.vlgmr.msra.gmra.mrb[4].mxu1 %vm1477_vm3, %v4992_v23 }
 0x28e   : > { %5264 = vmatpush3.bf16.msra.mxu1 %v5261_v22  ;;  %5008 = vmatprep.mubr.msk.f32.mxu1 %vm1477_vm3, %v1379_v26 }
 0x28f   : > { %5006 = vmatprep.subr.msk.mxu1 %vm1228_vm1, %v1473_v27 }
 0x292   : > { %5007 = vmatpush3.msk.msra.mxu1 %vm1228_vm1, %v1473_v27 }
 0x293   : > { %5285 = vmatprep.subr.bf16.mxu1 (!%p4735_p8), %v5799_v61 }
 0x295   : > { %5009 = vmatmul.mubr.msk.f32.vlgmr.msra.gmra.mrb[4].mxu1 %vm1477_vm3, %v4987_v24 }
 0x296   : > { %5046 = vmatprep.mubr.msk.f32.mxu1 (!%p4735_p8), %vm5801_vm7, %v5802_v62  ;;  %5287 = vmatpush3.bf16.msra.mxu1 (!%p4735_p8), %v5286_v3 }
 0x297   : > { %5044 = vmatprep.subr.mxu1 (!%p4735_p8), %v5802_v62 }
 0x29a   : > { %5045 = vmatpush3.msk.msra.mxu1 (!%p4735_p8), %vm1228_vm1, %v1947_v6 }
 0x29b   : > { %5291 = vmatprep.subr.bf16.mxu1 (!%p4735_p8), %v5799_v61 }
 0x368   : > { %v5010_v35 = vpop.f32.mrb[4].mxu1 }
 0x369   : > { %v1654_v36 = vadd.f32 %v5010_v35, %v4729_v34  ;;  %v1637_v37 = vpop.f32.mrb[5].mxu1  ;;  %v2285_v35 = vld [vmem:[%s6646_s12] sm:$0xff] (!%p4735_p8) }
 0x36a   : > { %v1653_v38 = vadd.f32 %v4729_v34, %v1637_v37 }
 0x36c   : > { %5530 = vtanh.f32 %v1653_v38  ;;  %v4747_v38 = vld [vmem:[%s6647_s20] ss:$0 sm:$0xff] (!%p4735_p8) }
 0x36d   : > { %5532 = vtanh.f32 %v1654_v36  ;;  %v2286_v36 = vld [vmem:[%s6646_s12 + $0x8] sm:$0xff] (!%p4735_p8) }
 0x36e   : > { %v5298_v37 = vpack.c.bf16 (!%p4735_p8), %v2286_v36, %v2285_v35 }
 0x376   : > { %v5531_v39 = vpop.eup %5530 }
 0x377   : > { %v5533_v40 = vpop.eup %5532  ;;  %5019 = vmatprep.mubr.msk.f32.mxu0 %vm1668_vm4, %v5531_v39 }
 0x378   : > { %5020 = vmatmul.mubr.msk.f32.vlgmr.msra.gmra.mrb[2].mxu0 %vm1668_vm4, %v5533_v40 }
 0x379   : > { %5276 = vmatpush3.bf16.msra.mxu0 %v5273_v44 }
 0x37a   : > { %5278 = vmatprep.subr.bf16.mxu0 %v5277_v46 }
 0x37d   : > { %5280 = vmatpush3.bf16.msra.mxu0 %v5277_v46 }
 0x37e   : > { %5281 = vmatprep.subr.bf16.mxu0 (!%p4735_p8), %v5799_v61 }
 0x44b   : > { %v5021_v48 = vpop.f32.mrb[2].mxu0 }
 0x44c   : > { %v1747_v49 = vadd.f32 %v5021_v48, %v4730_v47  ;;  %v1741_v50 = vpop.f32.mrb[3].mxu0 }
 0x44d   : > { %v1742_v51 = vadd.f32 %v4730_v47, %v1741_v50 }
 0x44e   : > { %5534 = vtanh.f32 %v1747_v49 }
 0x44f   : > { %5536 = vtanh.f32 %v1742_v51 }
 0x458   : > { %v5535_v54 = vpop.eup %5534 }
 0x459   : > { %v5537_v55 = vpop.eup %5536  ;;  %v1755_v56 = vmul.f32 %v5535_v54, %v1753_v52 }
 0x45a   : > { %v1754_v57 = vmul.f32 %v5537_v55, %v1752_v53 }
 0x45c   : > { %5030 = vmatprep.mubr.msk.f32.mxu0 %vm1668_vm4, %v1754_v57 }
 0x45d   : > { %5031 = vmatmul.mubr.msk.f32.vlgmr.msra.gmra.mrb[4].mxu0 %vm1668_vm4, %v1755_v56 }
 0x45e   : > { %5037 = vmatprep.mubr.msk.f32.mxu0 (!%p4735_p8), %vm5801_vm7, %v5802_v62 }
 0x52b   : > { %1844 = sbr.rel (%p4735_p8) target bundleno = 2318 (0x90e), region = 213 }
 0x530   : > { %v6226_v58 = vpop.f32.mrb[4].mxu0 }
 0x531   : > { %v6228_v59 = vpop.f32.mrb[5].mxu0  ;;  %1931 = vst.msk [vmem:[#allocation3 + $0x8] sm:$0xf] (!%p4735_p8), %vm1930_vm9, %v6226_v58 }
 0x532   : > { %v5282_v60 = vpack.c.bf16 %v6226_v58, %v6228_v59  ;;  %1929 = vst.msk [vmem:[#allocation3] sm:$0xff] %vm1928_vm12, %v6228_v59 }
 0x534   : > { %5284 = vmatpush3.bf16.msk.msra.mxu0 %vm5283_vm6, %v5282_v60 }
 0x535   : > { %5288 = vmatprep.subr.bf16.mxu0 %v5799_v61 }
 0x537   : > { %5038 = vmatmul.mubr.msk.f32.vlgmr.msra.gmra.mrb[0].mxu0 %vm1846_vm8, %v1845_v63 }
 0x538   : > { %5055 = vmatprep.mubr.msk.f32.mxu0 %vm5801_vm7, %v5802_v62  ;;  %5290 = vmatpush3.bf16.msra.mxu0 %v5289_v5 }
 0x539   : > { %5053 = vmatprep.subr.mxu0 %v5802_v62 }
 0x53c   : > { %5054 = vmatpush3.msk.msra.mxu0 %vm1228_vm1, %v2034_v8 }
 0x53d   : > { %5294 = vmatprep.subr.bf16.mxu0 %v5799_v61 }
 0x60a   : > { %v1919_v9 = vpop.f32.mrb[0].mxu0 }
 0x60b   : > { %v5039_v10 = vpop.f32.mrb[1].mxu0  ;;  %1924 = vrot.lane.b32.xlu0 %v1919_v9, %s5803_s4 }
 0x67d   : > { %v1925_v14 = vpop.permute.xlu0 %1924 }
 0x67e   : > { %v1927_v15 = vsel %vm1224_vm2, %v6176_v7, %v1925_v14 }
 0x67f   : > { %1933 = vst.msk [vmem:[#allocation2] sm:$0xf] %vm1932_vm11, %v1927_v15  ;;  %5047 = vmatmul.mubr.msk.f32.vlgmr.msra.gmra.mrb[0].mxu1 %vm1477_vm3, %v1927_v15  ;;  %5056 = vmatmul.mubr.msk.f32.vlgmr.msra.gmra.mrb[2].mxu0 %vm1477_vm3, %v1927_v15 }
 0x680   : > { %5293 = vmatpush3.bf16.msra.mxu1 %v5292_v13  ;;  %5064 = vmatprep.mubr.msk.f32.mxu1 %vm5801_vm7, %v5802_v62 }
 0x681   : > { %5062 = vmatprep.subr.mxu1 %v5802_v62  ;;  %5071 = vmatprep.mubr.msk.f32.mxu0 %vm5801_vm7, %v5802_v62 }
 0x682   : > { %5296 = vmatpush3.bf16.msra.mxu0 %v5295_v19 }
 0x684   : > { %5063 = vmatpush3.msk.msra.mxu1 %vm1228_vm1, %v2120_v16 }
 0x685   : > { %5065 = vmatmul.mubr.msk.f32.vlgmr.msra.gmra.mrb[2].mxu1 %vm1477_vm3, %v1927_v15  ;;  %5297 = vmatprep.subr.bf16.mxu1 %v5799_v61 }
 0x686   : > { %5078 = vmatprep.mubr.msk.f32.mxu1 %vm5801_vm7, %v5802_v62  ;;  %5299 = vmatpush3.bf16.msra.mxu1 %v5298_v37 }
 0x752   : > { %v2027_v22 = vpop.f32.mrb[0].mxu1  ;;  %v2111_v23 = vpop.f32.mrb[2].mxu0 }
 0x753   : > { %v2028_v24 = vadd.f32 %v4738_v20, %v2027_v22  ;;  %v2112_v25 = vadd.f32 %v4741_v21, %v2111_v23  ;;  %v5048_v26 = vpop.f32.mrb[1].mxu1  ;;  %v5057_v27 = vpop.f32.mrb[3].mxu0 }
 0x755   : > { %v2031_v28 = vmax.f32 %v2028_v24, 0.0  ;;  %v2115_v29 = vmax.f32 %v2112_v25, 0.0 }
 0x757   : > { %2116 = vst.msk [vmem:[#allocation4] sm:$0xf] %vm1934_vm10, %v2031_v28  ;;  %2117 = vst.msk [vmem:[#allocation5] sm:$0xf] %vm1934_vm10, %v2115_v29 }
 0x758   : > { %v2197_v31 = vpop.f32.mrb[2].mxu1 }
 0x759   : > { %v2198_v32 = vadd.f32 %v4744_v30, %v2197_v31  ;;  %v5066_v33 = vpop.f32.mrb[3].mxu1 }
 0x75b   : > { %v2201_v34 = vmax.f32 %v2198_v32, 0.0 }
 0x75d   : > { %5072 = vmatmul.mubr.msk.f32.vlgmr.msra.gmra.mrb[4].mxu0 %vm1928_vm12, %v2201_v34 }
 0x830   : > { %v2280_v39 = vpop.f32.mrb[4].mxu0 }
 0x831   : > { %v2281_v40 = vadd.f32 %v4747_v38, %v2280_v39  ;;  %v5073_v41 = vpop.f32.mrb[5].mxu0 }
 0x833   : > { %v2284_v42 = vmax.f32 %v2281_v40, 0.0 }
 0x835   : > { %5079 = vmatmul.mubr.msk.f32.vlgmr.msra.gmra.mrb[4].mxu1 %vm1928_vm12, %v2284_v42 }
 0x908   : > { %v2363_v44 = vpop.f32.mrb[4].mxu1 }
 0x909   : > { %v2364_v45 = vadd.f32 %v4749_v43, %v2363_v44  ;;  %v5080_v46 = vpop.f32.mrb[5].mxu1 }
 0x90b   : > { %v2367_v47 = vadd.f32 %v2364_v45, %v6176_v7 }
 0x90d   : > { %2370 = vst.msk [vmem:[%s2368_s1] sm:$0xf] %vm2369_vm13, %v2367_v47 }
 0x90e PF: > { %p4751_p9 = scmp.le.s32.totalorder %s5742_s15, 0 }
 0x90f   : > { %s6649_s5 = sld [smem:[#allocation21_spill]] (!%p4751_p9)  ;;  %s6650_s4 = sld [smem:[#allocation23_spill]] (!%p4751_p9)  ;;  %vm2386_vm14 = vcmask (!%p4751_p9), 130048   ;;  %v5804_v6 = vmov (!%p4751_p9), 0.0|0.0   ;;  %vm5805_vm15 = vmmov (!%p4751_p9), 0   ;;  %v5806_v8 = vmov (!%p4751_p9), 0.0  }
 0x910   : > { %2374 = sbr.rel (%p4751_p9) target bundleno = 4644 (0x1224), region = 217  ;;  %5085 = vmatprep.mubr.msk.f32.mxu0 (!%p4751_p9), %vm2386_vm14, %v6228_v59  ;;  %5099 = vmatprep.mubr.msk.f32.mxu1 (!%p4751_p9), %vm2386_vm14, %v6228_v59  ;;  %s6651_s26 = sld [smem:[#allocation22_spill]] (!%p4751_p9)  ;;  %vm3516_vm0 = vcmask (!%p4751_p9), 125952   ;;  %vm5807_vm4 = vmmov (!%p4751_p9), 1   ;;  %vm2922_vm6 = vcmask (!%p4751_p9), 97280   ;;  %vm3776_vm7 = vcmask (!%p4751_p9), 60416  }
 0x911   : > { %s6652_s2 = sld [smem:[#allocation24_spill]] (!%p4751_p9)  ;;  %vm5326_vm5 = vmpackc.low (!%p4751_p9), %vm1228_vm1, %vm5807_vm4  ;;  %s6653_s7 = sld [smem:[#allocation26_spill]] (!%p4751_p9)  ;;  %vm3841_vm8 = vcmask (!%p4751_p9), 1041409   ;;  %vm3843_vm9 = vcmask (!%p4751_p9), 1042434   ;;  %vm3845_vm10 = vcmask (!%p4751_p9), 1043459   ;;  %vm3847_vm11 = vcmask (!%p4751_p9), 1044484  }
 0x912   : > { %s6655_s12 = sld [smem:[#allocation33_spill]] (!%p4751_p9)  ;;  %s6656_s20 = sld [smem:[#allocation35_spill]] (!%p4751_p9)  ;;  %vm3851_vm13 = vcmask (!%p4751_p9), 28672  }
 0x913   : > { %s6657_s28 = sld [smem:[#allocation25_spill]] (!%p4751_p9)  ;;  %s6658_s1 = sld [smem:[#allocation37_spill]] (!%p4751_p9) }
 0x914   : > { %v6324_v5 = vld [vmem:[#allocation3 + $0x8] sm:$0xf] (!%p4751_p9)  ;;  %s3775_s3 = scalar_lea.vmem (!%p4751_p9), [#allocation4], %s6173_s27 }
 0x915   : > { %v2377_v48 = vld [vmem:[%s6649_s5] sm:$0xff] (!%p4751_p9)  ;;  %v2378_v49 = vld [vmem:[%s6649_s5 + $0x8] sm:$0xff] (!%p4751_p9)  ;;  %v4759_v53 = vld [vmem:[%s6649_s5 + $0x10] sm:$0xff] (!%p4751_p9) }
 0x916   : > { %v2468_v50 = vld [vmem:[%s6650_s4] sm:$0xff] (!%p4751_p9)  ;;  %v5300_v51 = vpack.c.bf16 (!%p4751_p9), %v2378_v49, %v2377_v48  ;;  %v2469_v52 = vld [vmem:[%s6650_s4 + $0x8] sm:$0xff] (!%p4751_p9)  ;;  %v4760_v54 = vld [vmem:[%s6649_s5 + $0x18] sm:$0xff] (!%p4751_p9) }
 0x917   : > { %v5304_v55 = vpack.c.bf16 %v2469_v52, %v2468_v50  ;;  %v5308_v56 = vpack.c.bf16 %v4760_v54, %v4759_v53  ;;  %v4765_v57 = vld [vmem:[%s6650_s4 + $0x10] sm:$0xff]  ;;  %v4766_v60 = vld [vmem:[%s6650_s4 + $0x18] sm:$0xff]  ;;  %v4771_v61 = vld [vmem:[%s6649_s5 + $0x20] sm:$0xff]  ;;  %s6654_s6 = smov %s6653_s7 }
 0x918   : > { %5301 = vmatprep.subr.bf16.mxu0 %v5300_v51  ;;  %v4772_v62 = vld [vmem:[%s6649_s5 + $0x28] sm:$0xff]  ;;  %v5312_v63 = vpack.c.bf16 %v4766_v60, %v4765_v57  ;;  %v4777_v0 = vld [vmem:[%s6650_s4 + $0x20] sm:$0xff]  ;;  %v4789_v60 = vld [vmem:[%s6652_s2 + $0x18] sm:$0xff] }
 0x919   : > { %5303 = vmatpush3.bf16.msra.mxu0 %v5300_v51  ;;  %5309 = vmatprep.subr.bf16.mxu1 %v5308_v56  ;;  %v4778_v1 = vld [vmem:[%s6650_s4 + $0x28] sm:$0xff]  ;;  %v5316_v3 = vpack.c.bf16 %v4772_v62, %v4771_v61  ;;  %v4762_v11 = vld [vmem:[%s6651_s26 + $0x1] ss:$0 sm:$0xff]  ;;  %v4774_v31 = vld [vmem:[%s6651_s26 + $0x2] ss:$0 sm:$0xff] }
 0x91a   : > { %5305 = vmatprep.subr.bf16.mxu0 %v5304_v55  ;;  %5311 = vmatpush3.bf16.msra.mxu1 %v5308_v56  ;;  %v6314_v2 = vld [vmem:[#allocation3] sm:$0xff]  ;;  %v5320_v4 = vpack.c.bf16 %v4778_v1, %v4777_v0  ;;  %v3007_v0 = vld [vmem:[%s6652_s2 + $0x10] sm:$0xf] }
 0x91b   : > { %5313 = vmatprep.subr.bf16.mxu1 %v5312_v63  ;;  %v3005_v56 = vld [vmem:[%s6652_s2] sm:$0xff]  ;;  %v3006_v57 = vld [vmem:[%s6652_s2 + $0x8] sm:$0xff] }
 0x91c   : > { %5086 = vmatmul.mubr.msk.f32.vlgmr.msra.gmra.mrb[0].mxu0 %vm2386_vm14, %v6226_v58  ;;  %v5329_v61 = vpack.c.bf16 %v3006_v57, %v3005_v56  ;;  %v4790_v62 = vld [vmem:[%s6652_s2 + $0x20] sm:$0xff]  ;;  %v4791_v1 = vld [vmem:[%s6652_s2 + $0x28] sm:$0xf] }
 0x91d   : > { %5307 = vmatpush3.bf16.msra.mxu0 %v5304_v55  ;;  %5100 = vmatmul.mubr.msk.f32.vlgmr.msra.gmra.mrb[0].mxu1 %vm2386_vm14, %v6226_v58  ;;  %v2921_v55 = vld [vmem:[%s6158_s18] sm:$0xf]  ;;  %s5808_s18 = smov 4  }
 0x91e   : > { %5092 = vmatprep.mubr.msk.f32.mxu0 %vm2386_vm14, %v6314_v2  ;;  %5315 = vmatpush3.bf16.msra.mxu1 %v5312_v63  ;;  %v5335_v63 = vpack.c.bf16 %v4790_v62, %v4789_v60  ;;  %v3691_v57 = vld [vmem:[%s6658_s1] sm:$0xff]  ;;  %v3692_v60 = vld [vmem:[%s6658_s1 + $0x8] sm:$0xff] }
 0x91f   : > { %5106 = vmatprep.mubr.msk.f32.mxu1 %vm2386_vm14, %v6314_v2  ;;  %5317 = vmatprep.subr.bf16.mxu0 %v5316_v3 }
 0x920   : > { %5321 = vmatprep.subr.bf16.mxu1 %v5320_v4 }
 0x924   : > { %5093 = vmatmul.mubr.msk.f32.vlgmr.msra.gmra.mrb[0].mxu0 %vm2386_vm14, %v6324_v5 }
 0x925   : > { %5107 = vmatmul.mubr.msk.f32.vlgmr.msra.gmra.mrb[0].mxu1 %vm2386_vm14, %v6324_v5  ;;  %5319 = vmatpush3.bf16.msra.mxu0 %v5316_v3 }
 0x926   : > { %5323 = vmatpush3.bf16.msra.mxu1 %v5320_v4  ;;  %5113 = vmatprep.mubr.msk.f32.mxu0 %vm2386_vm14, %v6228_v59  ;;  %v4752_v59 = vld [vmem:[%s6651_s26] ss:$0 sm:$0xff] }
 0x927   : > { %5120 = vmatprep.mubr.msk.f32.mxu1 %vm2386_vm14, %v6314_v2  ;;  %5324 = vmatprep.subr.bf16.mxu0 %v5804_v6  ;;  %v3091_v4 = vld [vmem:[%s6653_s7] sm:$0xff]  ;;  %s6659_s7 = sld [smem:[#allocation36_spill]] }
 0x928   : > { %5114 = vmatmul.mubr.msk.f32.vlgmr.msra.gmra.mrb[2].mxu0 %vm2386_vm14, %v6226_v58  ;;  %5328 = vmatprep.subr.bf16.mxu1 %v5804_v6 }
 0x929   : > { %5121 = vmatmul.mubr.msk.f32.vlgmr.msra.gmra.mrb[2].mxu1 %vm2386_vm14, %v6324_v5  ;;  %5127 = vmatprep.mubr.msk.f32.mxu0 %vm5805_vm15, %v5806_v8 }
 0x92a   : > { %5136 = vmatprep.mubr.msk.f32.mxu1 %vm5805_vm15, %v5806_v8  ;;  %5330 = vmatpush3.bf16.msra.mxu1 %v5329_v61 }
 0x92b   : > { %5134 = vmatprep.subr.mxu1 %v5806_v8 }
 0x92e   : > { %5135 = vmatpush3.msk.msra.mxu1 %vm1228_vm1, %v3007_v0  ;;  %v6434_v0 = vpack.c.bf16 %v3692_v60, %v3691_v57 }
 0x92f   : > { %5331 = vmatprep.subr.bf16.mxu1 %v5804_v6 }
 0x9f7   : > { %v5094_v9 = vpop.f32.mrb[0].mxu0 }
 0x9f8   : > { %v5372_v10 = vadd.f32 %v5094_v9, %v4752_v59  ;;  %v2542_v58 = vpop.f32.mrb[1].mxu0  ;;  %v5108_v12 = vpop.f32.mrb[0].mxu1  ;;  %v4797_v9 = vld [vmem:[%s6654_s6 + $0x20] sm:$0xff] }
 0x9f9   : > { %v5373_v13 = vadd.f32 %v4752_v59, %v2542_v58  ;;  %v2720_v14 = vpop.f32.mrb[1].mxu1  ;;  %v5374_v17 = vadd.f32 %v5108_v12, %v4762_v11  ;;  %v4796_v59 = vld [vmem:[%s6654_s6 + $0x18] sm:$0xff] }
 0x9fa   : > { %v4758_v15 = vmul.f32 -1.442695, %v5372_v10  ;;  %v5375_v19 = vadd.f32 %v4762_v11, %v2720_v14  ;;  %v5338_v58 = vpack.c.bf16 %v4797_v9, %v4796_v59  ;;  %v4798_v14 = vld [vmem:[%s6654_s6 + $0x28] sm:$0xf] }
 0x9fb   : > { %v4757_v16 = vmul.f32 -1.442695, %v5373_v13  ;;  %v5115_v18 = vpop.f32.mrb[2].mxu0  ;;  %v4770_v23 = vmul.f32 -1.442695, %v5374_v17  ;;  %v4809_v17 = vld [vmem:[%s6654_s6 + $0x30] sm:$0xff] }
 0x9fc   : > { %5538 = vpow2.f32 %v4758_v15  ;;  %v5122_v20 = vpop.f32.mrb[2].mxu1  ;;  %v2820_v21 = vpop.f32.mrb[3].mxu0  ;;  %v4769_v24 = vmul.f32 -1.442695, %v5375_v19  ;;  %v2826_v34 = vadd.f32 %v5115_v18, %v4774_v31  ;;  %v3093_v13 = vld [vmem:[%s6654_s6 + $0x10] sm:$0xf] }
 0x9fd   : > { %5540 = vpow2.f32 %v4757_v16  ;;  %v2898_v22 = vpop.f32.mrb[3].mxu1  ;;  %v2821_v36 = vadd.f32 %v4774_v31, %v2820_v21  ;;  %v4802_v15 = vld [vmem:[%s6652_s2 + $0x30] sm:$0xff]  ;;  %v4803_v16 = vld [vmem:[%s6652_s2 + $0x38] sm:$0xff]  ;;  %v6389_v19 = vld [vmem:[#allocation2] sm:$0xf] }
 0x9fe   : > { %5542 = vpow2.f32 %v4770_v23  ;;  %v4810_v18 = vld [vmem:[%s6654_s6 + $0x38] sm:$0xff]  ;;  %v4811_v23 = vld [vmem:[%s6654_s6 + $0x40] sm:$0xf]  ;;  %v3609_v31 = vld [vmem:[%s6656_s20 + $0x10] sm:$0xf] }
 0x9ff   : > { %5544 = vpow2.f32 %v4769_v24  ;;  %v5344_v21 = vpack.c.bf16 %v4810_v18, %v4809_v17  ;;  %v3520_v24 = vld [vmem:[%s6655_s12] sm:$0xff] }
 0xa06   : > { %v5539_v25 = vpop.eup %5538 }
 0xa07   : > { %v5541_v26 = vpop.eup %5540  ;;  %v2560_v27 = vadd.f32 1.0, %v5539_v25  ;;  %v3521_v25 = vld [vmem:[%s6655_s12 + $0x8] sm:$0xff] }
 0xa08   : > { %v2559_v28 = vadd.f32 1.0, %v5541_v26  ;;  %v5543_v29 = vpop.eup %5542  ;;  %v3607_v26 = vld [vmem:[%s6656_s20] sm:$0xff] }
 0xa09   : > { %5546 = vrcp.f32 %v2560_v27  ;;  %v5545_v30 = vpop.eup %5544  ;;  %v2738_v32 = vadd.f32 1.0, %v5543_v29  ;;  %v5347_v27 = vpack.c.bf16 %v3521_v25, %v3520_v24 }
 0xa0a   : > { %5548 = vrcp.f32 %v2559_v28  ;;  %v2737_v33 = vadd.f32 1.0, %v5545_v30  ;;  %v3608_v28 = vld [vmem:[%s6656_s20 + $0x8] sm:$0xff]  ;;  %v3522_v30 = vld [vmem:[%s6655_s12 + $0x10] sm:$0xf] }
 0xa0b   : > { %5550 = vrcp.f32 %v2738_v32  ;;  %v5350_v29 = vpack.c.bf16 %v3608_v28, %v3607_v26  ;;  %v4783_v32 = vld [vmem:[%s6657_s28] ss:$0 sm:$0xff] }
 0xa0c   : > { %5552 = vrcp.f32 %v2737_v33 }
 0xa13   : > { %v5547_v35 = vpop.eup %5546 }
 0xa14   : > { %v5549_v37 = vpop.eup %5548  ;;  %v2908_v38 = vmul.f32 %v5547_v35, %v5122_v20  ;;  %v5341_v20 = vpack.c.bf16 %v4803_v16, %v4802_v15 }
 0xa15   : > { %v2907_v39 = vmul.f32 %v5549_v37, %v2898_v22  ;;  %v5551_v42 = vpop.eup %5550  ;;  %v4804_v22 = vld [vmem:[%s6652_s2 + $0x40] sm:$0xf]  ;;  %s6661_s2 = sld [smem:[#allocation38_spill]] }
 0xa16   : > { %v2910_v40 = vadd.f32 %v2908_v38, %v2826_v34  ;;  %v5553_v43 = vpop.eup %5552  ;;  %v2914_v44 = vsub.f32 1.0, %v5551_v42  ;;  %v2918_v48 = vmul.f32 %v5551_v42, %v6324_v5  ;;  %v3092_v5 = vld [vmem:[%s6654_s6 + $0x8] sm:$0xff] }
 0xa17   : > { %v2909_v41 = vadd.f32 %v2907_v39, %v2821_v36  ;;  %v2913_v46 = vsub.f32 1.0, %v5553_v43  ;;  %v2917_v50 = vmul.f32 %v5553_v43, %v6314_v2  ;;  %v5332_v10 = vpack.c.bf16 %v3092_v5, %v3091_v4  ;;  %v4793_v36 = vld [vmem:[%s6657_s28 + $0x1] ss:$0 sm:$0xff] }
 0xa18   : > { %5554 = vtanh.f32 %v2910_v40 }
 0xa19   : > { %5556 = vtanh.f32 %v2909_v41 }
 0xa22   : > { %v5555_v45 = vpop.eup %5554 }
 0xa23   : > { %v5557_v47 = vpop.eup %5556  ;;  %v2916_v49 = vmul.f32 %v5555_v45, %v2914_v44 }
 0xa24   : > { %v2915_v51 = vmul.f32 %v5557_v47, %v2913_v46 }
 0xa25   : > { %v2920_v52 = vadd.f32 %v2918_v48, %v2916_v49 }
 0xa26   : > { %v2919_v53 = vadd.f32 %v2917_v50, %v2915_v51  ;;  %v4806_v50 = vld [vmem:[%s6657_s28 + $0x2] ss:$0 sm:$0xff] }
 0xa27   : > { %3517 = vst.msk [vmem:[#allocation3 + $0x8] sm:$0xf] %vm3516_vm0, %v2920_v52  ;;  %vm3928_vm0 = vcmask 64512  }
 0xa28   : > { %v5325_v54 = vpack.c.bf16 %v2920_v52, %v2919_v53  ;;  %3515 = vst.msk [vmem:[#allocation3] sm:$0xff] %vm2386_vm14, %v2919_v53 }
 0xa2a   : > { %5327 = vmatpush3.bf16.msk.msra.mxu0 %vm5326_vm5, %v5325_v54 }
 0xa2b   : > { %5334 = vmatprep.subr.bf16.mxu0 %v5804_v6 }
 0xa2d   : > { %5128 = vmatmul.mubr.msk.f32.vlgmr.msra.gmra.mrb[4].mxu0 %vm2922_vm6, %v2921_v55 }
 0xa2e   : > { %5154 = vmatprep.mubr.msk.f32.mxu0 %vm5805_vm15, %v5806_v8  ;;  %5336 = vmatpush3.bf16.msra.mxu0 %v5335_v63 }
 0xa2f   : > { %5152 = vmatprep.subr.mxu0 %v5806_v8 }
 0xa32   : > { %5153 = vmatpush3.msk.msra.mxu0 %vm1228_vm1, %v4791_v1 }
 0xa33   : > { %5337 = vmatprep.subr.bf16.mxu0 %v5804_v6 }
 0xb00   : > { %v2995_v2 = vpop.f32.mrb[4].mxu0 }
 0xb01   : > { %3000 = vrot.lane.b32.xlu0 %v2995_v2, %s5808_s18  ;;  %v5129_v3 = vpop.f32.mrb[5].mxu0  ;;  %v3693_v2 = vld [vmem:[%s6658_s1 + $0x10] sm:$0xf]  ;;  %s6660_s18 = sld [smem:[#allocation34_spill]] }
 0xb02   : > { %v6452_v3 = vld [vmem:[%s6659_s7] ss:$0 sm:$0xff]  ;;  %s3778_s7 = scalar_lea.vmem [#allocation5], %s6173_s27 }
 0xb73   : > { %v3001_v11 = vpop.permute.xlu0 %3000 }
 0xb74   : > { %v3003_v12 = vsel %vm1224_vm2, %v6176_v7, %v3001_v11  ;;  %vm3518_vm2 = vcmask 158720   ;;  %v4814_v11 = vld [vmem:[%s6660_s18] ss:$0 sm:$0xff]  ;;  %s6664_s18 = sld [smem:[#allocation27_spill]] }
 0xb75   : > { %5137 = vmatmul.mubr.msk.f32.vlgmr.msra.gmra.mrb[4].mxu1 %vm1477_vm3, %v3003_v12  ;;  %5155 = vmatmul.mubr.msk.f32.vlgmr.msra.gmra.mrb[6].mxu0 %vm1477_vm3, %v3003_v12 }
 0xb76   : > { %5333 = vmatpush3.bf16.msra.mxu1 %v5332_v10  ;;  %5339 = vmatpush3.bf16.msra.mxu0 %v5338_v58 }
 0xb77   : > { %5143 = vmatprep.subr.mxu1 %v5806_v8  ;;  %5161 = vmatprep.subr.mxu0 %v5806_v8 }
 0xb78   : > { %5145 = vmatprep.mubr.msk.f32.mxu1 %vm5805_vm15, %v5806_v8  ;;  %5163 = vmatprep.mubr.msk.f32.mxu0 %vm5805_vm15, %v5806_v8 }
 0xb7a   : > { %5144 = vmatpush3.msk.msra.mxu1 %vm1228_vm1, %v3093_v13  ;;  %5162 = vmatpush3.msk.msra.mxu0 %vm1228_vm1, %v4798_v14 }
 0xb7b   : > { %5340 = vmatprep.subr.bf16.mxu1 %v5804_v6  ;;  %5343 = vmatprep.subr.bf16.mxu0 %v5804_v6 }
 0xb7d   : > { %5146 = vmatmul.mubr.msk.f32.vlgmr.msra.gmra.mrb[4].mxu1 %vm1477_vm3, %v6389_v19  ;;  %5164 = vmatmul.mubr.msk.f32.vlgmr.msra.gmra.mrb[6].mxu0 %vm1477_vm3, %v6389_v19 }
 0xb7e   : > { %5342 = vmatpush3.bf16.msra.mxu1 %v5341_v20  ;;  %5172 = vmatprep.mubr.msk.f32.mxu1 %vm5805_vm15, %v5806_v8 }
 0xb7f   : > { %5170 = vmatprep.subr.mxu1 %v5806_v8  ;;  %5345 = vmatpush3.bf16.msra.mxu0 %v5344_v21 }
 0xb80   : > { %5179 = vmatprep.subr.mxu0 %v5806_v8  ;;  %5181 = vmatprep.mubr.msk.f32.mxu0 %vm5805_vm15, %v5806_v8 }
 0xb82   : > { %5171 = vmatpush3.msk.msra.mxu1 %vm1228_vm1, %v4804_v22 }
 0xb83   : > { %5173 = vmatmul.mubr.msk.f32.vlgmr.msra.gmra.mrb[6].mxu1 %vm1477_vm3, %v3003_v12  ;;  %5180 = vmatpush3.msk.msra.mxu0 %vm1228_vm1, %v4811_v23  ;;  %v6457_v12 = vld [vmem:[%s6661_s2] ss:$0 sm:$0xff]  ;;  %s6663_s2 = sld [smem:[#allocation40_spill]] }
 0xb84   : > { %5182 = vmatmul.mubr.msk.f32.vlgmr.msra.gmra.mrb[8].mxu0 %vm1477_vm3, %v6389_v19  ;;  %5346 = vmatprep.subr.bf16.mxu1 %v5804_v6 }
 0xb85   : > { %5349 = vmatprep.subr.bf16.mxu0 %v5804_v6  ;;  %5190 = vmatprep.mubr.msk.f32.mxu1 %vm5805_vm15, %v5806_v8 }
 0xb86   : > { %5199 = vmatprep.mubr.msk.f32.mxu0 %vm5805_vm15, %v5806_v8  ;;  %5348 = vmatpush3.bf16.msra.mxu1 %v5347_v27 }
 0xb87   : > { %5351 = vmatpush3.bf16.msra.mxu0 %v5350_v29  ;;  %5188 = vmatprep.subr.mxu1 %v5806_v8 }
 0xb88   : > { %5197 = vmatprep.subr.mxu0 %v5806_v8 }
 0xb8a   : > { %5189 = vmatpush3.msk.msra.mxu1 %vm1228_vm1, %v3522_v30 }
 0xb8b   : > { %5198 = vmatpush3.msk.msra.mxu0 %vm1228_vm1, %v3609_v31  ;;  %5352 = vmatprep.subr.bf16.mxu1 %v5804_v6 }
 0xb8c   : > { %5211 = vmatprep.subr.mxu0 %v5806_v8 }
 0xc50   : > { %v3166_v33 = vpop.f32.mrb[4].mxu1  ;;  %v3335_v34 = vpop.f32.mrb[6].mxu0 }
 0xc51   : > { %v5376_v35 = vadd.f32 %v4783_v32, %v3166_v33  ;;  %v5147_v37 = vpop.f32.mrb[5].mxu1  ;;  %v5165_v38 = vpop.f32.mrb[7].mxu0  ;;  %v5377_v40 = vadd.f32 %v4793_v36, %v3335_v34  ;;  %v3810_v34 = vlaneseq }
 0xc53   : > { %v4788_v39 = vmul.f32 -1.442695, %v5376_v35  ;;  %v4801_v44 = vmul.f32 -1.442695, %v5377_v40  ;;  %v6473_v35 = vshrl.u32 %v3810_v34, 7  ;;  %v3820_v36 = vand.u32 127, %v3810_v34 }
 0xc55   : > { %5558 = vpow2.f32 %v4788_v39  ;;  %v3823_v38 = vsub.s32 %v3820_v36, %v6473_v35 }
 0xc56   : > { %v3427_v41 = vpop.f32.mrb[6].mxu1  ;;  %5560 = vpow2.f32 %v4801_v44 }
 0xc57   : > { %v5174_v42 = vpop.f32.mrb[7].mxu1  ;;  %v3504_v43 = vpop.f32.mrb[8].mxu0  ;;  %v3428_v52 = vadd.f32 %v4806_v50, %v3427_v41 }
 0xc58   : > { %v5183_v45 = vpop.f32.mrb[9].mxu0 }
 0xc5f   : > { %v5559_v46 = vpop.eup %5558 }
 0xc60   : > { %v3174_v47 = vadd.f32 1.0, %v5559_v46  ;;  %v5561_v48 = vpop.eup %5560  ;;  %v3812_v46 = vstv %s5742_s15  ;;  %s6662_s15 = sld [smem:[#allocation39_spill]] }
 0xc61   : > { %v3343_v49 = vadd.f32 1.0, %v5561_v48  ;;  %vm3813_vm12 = vcmp.le.s32.totalorder %v6473_v35, %v3812_v46 }
 0xc62   : > { %5562 = vrcp.f32 %v3174_v47 }
 0xc63   : > { %5564 = vrcp.f32 %v3343_v49 }
 0xc6c   : > { %v5563_v51 = vpop.eup %5562 }
 0xc6d   : > { %v3508_v53 = vmul.f32 %v5563_v51, %v3504_v43  ;;  %v5565_v55 = vpop.eup %5564 }
 0xc6e   : > { %v3511_v56 = vsub.f32 1.0, %v5565_v55  ;;  %v3513_v63 = vmul.f32 %v5565_v55, %v6389_v19 }
 0xc6f   : > { %v3509_v54 = vadd.f32 %v3508_v53, %v3428_v52 }
 0xc71   : > { %5566 = vtanh.f32 %v3509_v54 }
 0xc7b   : > { %v5567_v61 = vpop.eup %5566 }
 0xc7c   : > { %v3512_v62 = vmul.f32 %v5567_v61, %v3511_v56 }
 0xc7e   : > { %v3514_v1 = vadd.f32 %v3513_v63, %v3512_v62 }
 0xc80   : > { %3519 = vst.msk [vmem:[#allocation2] sm:$0xf] %vm3518_vm2, %v3514_v1  ;;  %5191 = vmatmul.mubr.msk.f32.vlgmr.msra.gmra.mrb[8].mxu1 %vm1477_vm3, %v3514_v1  ;;  %5200 = vmatmul.mubr.msk.f32.vlgmr.msra.gmra.mrb[10].mxu0 %vm1477_vm3, %v3514_v1 }
 0xc81   : > { %5354 = vmatpush3.bf16.msra.mxu1 %v6434_v0  ;;  %5208 = vmatprep.mubr.msk.f32.mxu1 %vm5805_vm15, %v5806_v8 }
 0xc82   : > { %5206 = vmatprep.subr.mxu1 %v5806_v8  ;;  %5213 = vmatprep.mubr.msk.f32.mxu0 %vm5805_vm15, %v5806_v8 }
 0xc85   : > { %5207 = vmatpush3.msk.msra.mxu1 %vm1228_vm1, %v3693_v2 }
 0xc86   : > { %5209 = vmatmul.mubr.msk.f32.vlgmr.msra.gmra.mrb[10].mxu1 %vm1477_vm3, %v3514_v1  ;;  %5355 = vmatprep.subr.bf16.mxu1 %v5804_v6 }
 0xc87   : > { %5357 = vmatpush3.bf16.msra.mxu1 %v5350_v29  ;;  %5222 = vmatprep.mubr.msk.f32.mxu1 %vm5805_vm15, %v5806_v8 }
 0xc88   : > { %5220 = vmatprep.subr.mxu1 %v5806_v8 }
 0xd53   : > { %v3602_v4 = vpop.f32.mrb[8].mxu1  ;;  %v3686_v5 = vpop.f32.mrb[10].mxu0 }
 0xd54   : > { %v3687_v59 = vadd.f32 %v6452_v3, %v3686_v5  ;;  %v5192_v9 = vpop.f32.mrb[9].mxu1  ;;  %v5201_v10 = vpop.f32.mrb[11].mxu0  ;;  %v3603_v14 = vadd.f32 %v4814_v11, %v3602_v4 }
 0xd56   : > { %v3690_v58 = vmax.f32 %v3687_v59, 0.0  ;;  %v3606_v18 = vmax.f32 %v3603_v14, 0.0  ;;  %v3873_v14 = vsub.s32 0, %v6473_v35 }
 0xd58   : > { %3777 = vst.msk [vmem:[%s3775_s3] sm:$0xf] %vm3776_vm7, %v3690_v58 }
 0xd59   : > { %v3770_v13 = vpop.f32.mrb[10].mxu1 }
 0xd5a   : > { %v3771_v15 = vadd.f32 %v6457_v12, %v3770_v13  ;;  %v5210_v16 = vpop.f32.mrb[11].mxu1  ;;  %v3887_v13 = vsub.s32 2, %v6473_v35 }
 0xd5c   : > { %v3774_v17 = vmax.f32 %v3771_v15, 0.0 }
 0xd5e   : > { %3779 = vst.msk [vmem:[%s3778_s7] sm:$0xf] %vm3776_vm7, %v3774_v17 }
 0xd5f   : > { %v3781_v19 = vld [vmem:[#allocation4 + $0x4] sm:$0xf]  ;;  %v3780_v20 = vld [vmem:[#allocation4] sm:$0xf]  ;;  %v3782_v21 = vld [vmem:[#allocation4 + $0x8] sm:$0xf] }
 0xd60   : > { %v3791_v22 = vmul.f32 %v3781_v19, %v3606_v18  ;;  %v3790_v23 = vmul.f32 %v3780_v20, %v3606_v18  ;;  %v3792_v26 = vmul.f32 %v3782_v21, %v3606_v18  ;;  %v3783_v27 = vld [vmem:[#allocation4 + $0xc] sm:$0xf]  ;;  %v3784_v30 = vld [vmem:[#allocation4 + $0x10] sm:$0xf]  ;;  %v3880_v19 = vsub.s32 1, %v6473_v35 }
 0xd61   : > { %v3793_v29 = vmul.f32 %v3783_v27, %v3606_v18  ;;  %v3794_v32 = vmul.f32 %v3784_v30, %v3606_v18  ;;  %v3894_v21 = vsub.s32 3, %v6473_v35 }
 0xd62   : > { %v3798_v24 = vsel %vm3776_vm7, %v3791_v22, 0.0  ;;  %v3795_v25 = vsel %vm3776_vm7, %v3790_v23, 0.0  ;;  %v3801_v28 = vsel %vm3776_vm7, %v3792_v26, 0.0  ;;  %v3920_v22 = vld [vmem:[%s6662_s15] sm:$0xff]  ;;  %s6665_s15 = sld [smem:[#allocation29_spill]] }
 0xd63   : > { %3799 = vadd.xlane.f32.xlu1 %v3798_v24  ;;  %3796 = vadd.xlane.f32.xlu0 %v3795_v25  ;;  %v3804_v31 = vsel %vm3776_vm7, %v3793_v29, 0.0  ;;  %v3807_v33 = vsel %vm3776_vm7, %v3794_v32, 0.0  ;;  %v3901_v24 = vsub.s32 4, %v6473_v35 }
 0xd64   : > { %5212 = vmatpush3.msra.mxu0 %v3920_v22 }
 0xd65   : > { %5358 = vmatprep.subr.bf16.mxu0 %v5804_v6  ;;  %v3787_v30 = vld [vmem:[#allocation5 + $0x8] sm:$0xf] }
 0xd67   : > { %3802 = vadd.xlane.f32.xlu1 %v3801_v28  ;;  %v3785_v28 = vld [vmem:[#allocation5] sm:$0xf] }
 0xd6b   : > { %3805 = vadd.xlane.f32.xlu1 %v3804_v31  ;;  %v3786_v31 = vld [vmem:[#allocation5 + $0x4] sm:$0xf] }
 0xd6f   : > { %3808 = vadd.xlane.f32.xlu1 %v3807_v33 }
 0xdf0   : > { %v3800_v37 = vpop.xlane.xlu1 %3799  ;;  %v3797_v40 = vpop.xlane.xlu0 %3796 }
 0xdf1   : > { %v3828_v41 = vrot.slane %v3800_v37, %v3823_v38  ;;  %v3824_v42 = vrot.slane %v3797_v40, %v3823_v38 }
 0xdf3   : > { %v3842_v47 = vsel %vm3841_vm8, %v3828_v41, %v3824_v42 }
 0xdf4   : > { %v3803_v39 = vpop.xlane.xlu1 %3802 }
 0xdf5   : > { %v3832_v44 = vrot.slane %v3803_v39, %v3823_v38  ;;  %v3788_v39 = vld [vmem:[#allocation5 + $0xc] sm:$0xf] }
 0xdf7   : > { %v3844_v49 = vsel %vm3843_vm9, %v3832_v44, %v3842_v47  ;;  %v3789_v44 = vld [vmem:[#allocation5 + $0x10] sm:$0xf] }
 0xdf8   : > { %v3806_v43 = vpop.xlane.xlu1 %3805 }
 0xdf9   : > { %v3836_v45 = vrot.slane %v3806_v43, %v3823_v38 }
 0xdfb   : > { %v3846_v51 = vsel %vm3845_vm10, %v3836_v45, %v3844_v49 }
 0xdfc   : > { %v3809_v48 = vpop.xlane.xlu1 %3808 }
 0xdfd   : > { %v3840_v50 = vrot.slane %v3809_v48, %v3823_v38 }
 0xdff   : > { %v3848_v52 = vsel %vm3847_vm11, %v3840_v50, %v3846_v51  ;;  %v4005_v50 = vld [vmem:[%s6656_s20 + $0x10] sm:$0xf]  ;;  %s6666_s20 = sld [smem:[#allocation28_spill]] }
 0xe00   : > { %v3850_v53 = vsel %vm3813_vm12, %v3848_v52, -1e+30  ;;  %v4092_v51 = vld [vmem:[%s6658_s1 + $0x10] sm:$0xf]  ;;  %5221 = vmatpush3.msk.msra.mxu1 %vm1228_vm1, %v4005_v50  ;;  %v4823_v52 = vld [vmem:[%s6663_s2] ss:$0 sm:$0xff] }
 0xe01   : > { %v3852_v54 = vsel %vm3851_vm13, %v3850_v53, -inf  ;;  %5361 = vmatprep.subr.bf16.mxu1 %v5804_v6  ;;  %s6667_s1 = sld [smem:[#allocation31_spill]]  ;;  %s6668_s2 = sld [smem:[#allocation30_spill]] }
 0xe02   : > { %v3853_v55 = vrot.slane %v3852_v54, 4 }
 0xe04   : > { %v3854_v56 = vmax.f32 %v3852_v54, %v3853_v55 }
 0xe06   : > { %v3855_v57 = vrot.slane %v3854_v56, 2 }
 0xe08   : > { %v3856_v60 = vmax.f32 %v3854_v56, %v3855_v57 }
 0xe0a   : > { %v3857_v61 = vrot.slane %v3856_v60, 1 }
 0xe0c   : > { %v3858_v62 = vmax.f32 %v3856_v60, %v3857_v61  ;;  %v4178_v61 = vld [vmem:[%s6664_s18 + $0x10] sm:$0xf] }
 0xe0e   : > { %v3859_v63 = vsub.f32 %v3850_v53, %v3858_v62  ;;  %v4176_v53 = vld [vmem:[%s6664_s18] sm:$0xff] }
 0xe0f   : > { %v4260_v62 = vld [vmem:[%s6665_s15] sm:$0xff] }
 0xe10   : > { %v3860_v1 = vmul.f32 1.442695, %v3859_v63  ;;  %v4261_v63 = vld [vmem:[%s6665_s15 + $0x8] sm:$0xff] }
 0xe12   : > { %5568 = vpow2.f32 %v3860_v1  ;;  %v5365_v1 = vpack.c.bf16 %v4261_v63, %v4260_v62 }
 0xe1c   : > { %v5569_v2 = vpop.eup %5568 }
 0xe1d   : > { %v3862_v4 = vsel %vm3851_vm13, %v5569_v2, 0.0 }
 0xe1e   : > { %v3863_v5 = vrot.slane %v3862_v4, 4 }
 0xe20   : > { %v3864_v59 = vadd.f32 %v3863_v5, %v3862_v4 }
 0xe22   : > { %v3865_v9 = vrot.slane %v3864_v59, 2 }
 0xe24   : > { %v3866_v10 = vadd.f32 %v3865_v9, %v3864_v59 }
 0xe26   : > { %v3867_v58 = vrot.slane %v3866_v10, 1 }
 0xe28   : > { %v3868_v11 = vadd.f32 %v3867_v58, %v3866_v10 }
 0xe2a   : > { %5570 = vrcp.f32 %v3868_v11 }
 0xe34   : > { %v5571_v15 = vpop.eup %5570 }
 0xe35   : > { %v3870_v16 = vmul.f32 %v5571_v15, %v5569_v2 }
 0xe37   : > { %v3888_v17 = vrot.slane %v3870_v16, %v3887_v13  ;;  %v3874_v18 = vrot.slane %v3870_v16, %v3873_v14  ;;  %v3881_v20 = vrot.slane %v3870_v16, %v3880_v19  ;;  %v3895_v23 = vrot.slane %v3870_v16, %v3894_v21  ;;  %v4831_v13 = vld [vmem:[%s6666_s20] ss:$0 sm:$0xff] }
 0xe38   : > { %v3902_v25 = vrot.slane %v3870_v16, %v3901_v24  ;;  %v4344_v16 = vld [vmem:[%s6667_s1 + $0x8] sm:$0xff] }
 0xe39   : > { %3890 = vbcast.lane.b32.xlu0 %v3888_v17, 256  ;;  %3876 = vbcast.lane.b32.xlu1 %v3874_v18, 256  ;;  %v4834_v18 = vld [vmem:[%s6668_s2] ss:$0 sm:$0xff] }
 0xe3d   : > { %3883 = vbcast.lane.b32.xlu1 %v3881_v20, 256 }
 0xe41   : > { %3897 = vbcast.lane.b32.xlu1 %v3895_v23, 256 }
 0xe45   : > { %3904 = vbcast.lane.b32.xlu1 %v3902_v25, 256 }
 0xeab   : > { %v3877_v26 = vpop.permute.xlu1 %3876  ;;  %v3891_v27 = vpop.permute.xlu0 %3890 }
 0xeac   : > { %v3906_v29 = vmul.f32 %v3877_v26, %v3785_v28  ;;  %v3908_v33 = vmul.f32 %v3891_v27, %v3787_v30 }
 0xeae   : > { %v3911_v36 = vsel %vm3776_vm7, %v3906_v29, 0.0  ;;  %v3914_v35 = vsel %vm3776_vm7, %v3908_v33, 0.0 }
 0xeaf   : > { %v3884_v32 = vpop.permute.xlu1 %3883 }
 0xeb0   : > { %v3907_v34 = vmul.f32 %v3884_v32, %v3786_v31 }
 0xeb2   : > { %v3912_v37 = vsel %vm3776_vm7, %v3907_v34, 0.0 }
 0xeb3   : > { %v3913_v38 = vadd.f32 %v3912_v37, %v3911_v36  ;;  %v3898_v40 = vpop.permute.xlu1 %3897 }
 0xeb4   : > { %v3909_v41 = vmul.f32 %v3898_v40, %v3788_v39 }
 0xeb5   : > { %v3915_v42 = vadd.f32 %v3914_v35, %v3913_v38 }
 0xeb6   : > { %v3916_v43 = vsel %vm3776_vm7, %v3909_v41, 0.0 }
 0xeb7   : > { %v3905_v45 = vpop.permute.xlu1 %3904  ;;  %v3917_v47 = vadd.f32 %v3916_v43, %v3915_v42 }
 0xeb8   : > { %v3910_v46 = vmul.f32 %v3905_v45, %v3789_v44 }
 0xeba   : > { %v3918_v48 = vsel %vm3776_vm7, %v3910_v46, 0.0 }
 0xebb   : > { %v3919_v49 = vadd.f32 %v3918_v48, %v3917_v47 }
 0xebd   : > { %5214 = vmatmul.mubr.msk.f32.vlgmr.msra.gmra.mrb[12].mxu0 %vm3928_vm0, %v3919_v49 }
 0xebe   : > { %5360 = vmatpush3.bf16.msra.mxu0 %v6434_v0  ;;  %5231 = vmatprep.mubr.msk.f32.mxu0 %vm5805_vm15, %v5806_v8  ;;  %v4177_v0 = vld [vmem:[%s6664_s18 + $0x8] sm:$0xff]  ;;  %s6669_s18 = sld [smem:[#allocation32_spill]] }
 0xebf   : > { %5229 = vmatprep.subr.mxu0 %v5806_v8  ;;  %v5362_v57 = vpack.c.bf16 %v4177_v0, %v4176_v53 }
 0xec2   : > { %5230 = vmatpush3.msk.msra.mxu0 %vm1228_vm1, %v4092_v51 }
 0xec3   : > { %5364 = vmatprep.subr.bf16.mxu0 %v5804_v6 }
 0xec4   : > { %v4836_v23 = vld [vmem:[%s6669_s18] ss:$0 sm:$0xff] }
 0xf90   : > { %v3998_v54 = vpop.f32.mrb[12].mxu0 }
 0xf91   : > { %v3999_v55 = vadd.f32 %v4823_v52, %v3998_v54  ;;  %v5215_v56 = vpop.f32.mrb[13].mxu0 }
 0xf93   : > { %v4002_v60 = vmax.f32 %v3999_v55, 0.0 }
 0xf95   : > { %5223 = vmatmul.mubr.msk.f32.vlgmr.msra.gmra.mrb[12].mxu1 %vm1477_vm3, %v4002_v60  ;;  %5232 = vmatmul.mubr.msk.f32.vlgmr.msra.gmra.mrb[14].mxu0 %vm1477_vm3, %v4002_v60 }
 0xf96   : > { %5363 = vmatpush3.bf16.msra.mxu1 %v5362_v57  ;;  %5240 = vmatprep.mubr.msk.f32.mxu1 %vm5805_vm15, %v5806_v8 }
 0xf97   : > { %5238 = vmatprep.subr.mxu1 %v5806_v8  ;;  %5247 = vmatprep.mubr.msk.f32.mxu0 %vm5805_vm15, %v5806_v8 }
 0xf98   : > { %5366 = vmatpush3.bf16.msra.mxu0 %v5365_v1 }
 0xf99   : > { %5367 = vmatprep.subr.bf16.mxu0 %v5804_v6 }
 0xf9a   : > { %5239 = vmatpush3.msk.msra.mxu1 %vm1228_vm1, %v4178_v61  ;;  %vm4427_vm1 = vcmask 27648  }
 0xf9b   : > { %5241 = vmatmul.mubr.msk.f32.vlgmr.msra.gmra.mrb[14].mxu1 %vm1477_vm3, %v4002_v60 }
0x1068   : > { %v4085_v2 = vpop.f32.mrb[12].mxu1  ;;  %v4169_v4 = vpop.f32.mrb[14].mxu0 }
0x1069   : > { %v4086_v5 = vadd.f32 %v6452_v3, %v4085_v2  ;;  %v4170_v59 = vadd.f32 %v6457_v12, %v4169_v4  ;;  %v5224_v9 = vpop.f32.mrb[13].mxu1  ;;  %v5233_v10 = vpop.f32.mrb[15].mxu0  ;;  %v4343_v12 = vld [vmem:[%s6667_s1] sm:$0xff] }
0x106a   : > { %v5368_v17 = vpack.c.bf16 %v4344_v16, %v4343_v12 }
0x106b   : > { %v4089_v58 = vmax.f32 %v4086_v5, 0.0  ;;  %v4173_v11 = vmax.f32 %v4170_v59, 0.0 }
0x106d   : > { %4174 = vst.msk [vmem:[%s3775_s3] sm:$0xf] %vm3776_vm7, %v4089_v58  ;;  %4175 = vst.msk [vmem:[%s3778_s7] sm:$0xf] %vm3776_vm7, %v4173_v11  ;;  %s4426_s3 = scalar_lea.vmem %s6232_s23, %s6173_s27 [#allocation15] }
0x106e   : > { %v4255_v6 = vpop.f32.mrb[14].mxu1 }
0x106f   : > { %v4256_v14 = vadd.f32 %v4831_v13, %v4255_v6  ;;  %v5242_v15 = vpop.f32.mrb[15].mxu1 }
0x1071   : > { %v4259_v3 = vmax.f32 %v4256_v14, 0.0 }
0x1073   : > { %5248 = vmatmul.mubr.msk.f32.vlgmr.msra.gmra.mrb[16].mxu0 %vm2386_vm14, %v4259_v3 }
0x1074   : > { %5254 = vmatprep.mubr.msk.f32.mxu0 %vm5805_vm15, %v5806_v8  ;;  %5369 = vmatpush3.bf16.msra.mxu0 %v5368_v17 }
0x1146   : > { %v4338_v19 = vpop.f32.mrb[16].mxu0 }
0x1147   : > { %v4339_v20 = vadd.f32 %v4834_v18, %v4338_v19  ;;  %v5249_v21 = vpop.f32.mrb[17].mxu0 }
0x1149   : > { %v4342_v22 = vmax.f32 %v4339_v20, 0.0 }
0x114b   : > { %5255 = vmatmul.mubr.msk.f32.vlgmr.msra.gmra.mrb[18].mxu0 %vm2386_vm14, %v4342_v22 }
0x121e   : > { %v4421_v24 = vpop.f32.mrb[18].mxu0 }
0x121f   : > { %v4422_v25 = vadd.f32 %v4836_v23, %v4421_v24  ;;  %v5256_v26 = vpop.f32.mrb[19].mxu0 }
0x1221   : > { %v4425_v27 = vadd.f32 %v4422_v25, %v6176_v7 }
0x1223   : > { %4428 = vst.msk [vmem:[%s4426_s3] sm:$0xf] %vm4427_vm1, %v4425_v27 }
0x1224 PF: > { %s6670_s7 = sld [smem:[#allocation45_spill]] }
0x122a   : > { %p6671_p13 = scmp.ne.s32.totalorder %s6670_s7, 0 }
0x122b   : > { %s6672_s15 = sld [smem:[#allocation41_spill]] (%p6671_p13)  ;;  %s4838_s20 = sshll.u32 (%p6671_p13), %s5746_s16, 2  ;;  %v4453_v8 = vld [vmem:[%s6232_s23] sm:$0xf] (%p6671_p13)  ;;  %v4455_v28 = vld [vmem:[%s6232_s23 + $0x4] sm:$0xf] (%p6671_p13) }
0x122c   : > { %4435 = sbr.rel (!%p6671_p13) target bundleno = 4661 (0x1235), region = 221  ;;  %v4457_v29 = vld [vmem:[%s6232_s23 + $0x8] sm:$0xf] (%p6671_p13)  ;;  %v4459_v30 = vld [vmem:[%s6232_s23 + $0xc] sm:$0xf] (%p6671_p13) }
0x122d   : > { %v4461_v31 = vld [vmem:[%s6232_s23 + $0x10] sm:$0xf] (%p6671_p13) }
0x1231   : > { %s4437_s1 = scalar_lea.vmem (%p6671_p13), %s6672_s15, %s4838_s20 }
0x1232   : > { %4454 = vst [vmem:[%s4437_s1] sm:$0xf] (%p6671_p13), %v4453_v8  ;;  %4456 = vst [vmem:[%s4437_s1 + $0x8] sm:$0xf] (%p6671_p13), %v4455_v28 }
0x1233   : > { %4458 = vst [vmem:[%s4437_s1 + $0x10] sm:$0xf] %v4457_v29  ;;  %4460 = vst [vmem:[%s4437_s1 + $0x18] sm:$0xf] %v4459_v30 }
0x1234   : > { %4462 = vst [vmem:[%s4437_s1 + $0x20] sm:$0xf] %v4461_v31 }
0x1235 PF: > { %s82_s0 = sadd.s32 1, %s5758_s0   ;;  %s6673_s27 = sld [smem:[#allocation46_spill]] }
0x1236   : > { %p79_p12 = scmp.ge.s32.totalorder %s82_s0, 12   ;;  %s6674_s15 = sld [smem:[#allocation42_spill]] }
0x1237   : > { %s6675_s18 = sld [smem:[#allocation43_spill]]  ;;  %s6676_s2 = sld [smem:[#allocation44_spill]] }
0x1238   : > { %s6677_s7 = smov %s5734_s10  ;;  %s6678_s10 = smov %s5738_s11 }
0x1239   : > { %s6680_s16 = smov %s5754_s22  ;;  %81 = sbr.rel (!%p79_p12) target bundleno = 72 (0x48), region = 361 }
0x123b   : > { %s6679_s11 = smov %s6673_s27 }
0x123d   : > { %s6681_s22 = smov %s6676_s2 }
0x1240   :  { %4505 = vsyncpa [#allocation9], 1 }
0x1241   :  { %4507 = vsyncpa [#allocation9 + $0x1], 1 }
0x1242   :  { %4508 = vsyncpa [#allocation11], 1 }
0x1243   :  { %4509 = vsyncpa [#allocation14], 1 }

</bundles_post_ra>
